<compile_context>
chip_gen: v7x
topology: tpu7x:2x2x1
jax: 0.10.0
libtpu: 0.0.40
codegen_flags: <defaults>
</compile_context>

<pallas_src>
import functools
import math

import numpy as np
import jax
import jax.numpy as jnp
from jax import lax
from jax.experimental import pallas as pl
from jax.experimental.pallas import tpu as pltpu


# ----------------------------- host-side helpers -----------------------------

def _round_up(v, m):
    return ((v + m - 1) // m) * m


def _segments(W, steps, geometric):
    # Matches the torch module exactly (dtype=int truncation included).
    if geometric:
        return np.logspace(np.log10(1), np.log10(W / 2), num=steps + 1, dtype=int)
    return np.linspace(1, W / 2, steps + 1, dtype=int)


def _pad_amounts(W, circle):
    if circle:
        return 0, 0, W
    diagonal = math.sqrt(2.0) * W
    pad = int(math.ceil(diagonal - W))
    new_center = (W + pad) // 2
    old_center = W // 2
    pad_before = new_center - old_center
    return pad_before, pad - pad_before, W + pad


def _reduction_matrix_np(W, segments, P_pad):
    """RM[r*W + c, s*W + c] = hard_mask(segments[s], W, normalized=True)[r, c].
    Rows >= W*W (strip padding) stay zero, so padded output-pixel columns of
    the sampling matrix contribute nothing."""
    S = len(segments)
    rm = np.zeros((P_pad, S * W), np.float32)
    center = (W - 1) / 2.0
    dist = np.abs(np.arange(W) - center)
    cols = np.arange(W)
    for si, t in enumerate(segments):
        band = dist < float(t)          # rows inside the band
        k = float(band.sum())           # == mask.sum(-2) per column
        for r in np.nonzero(band)[0]:
            rm[r * W + cols, si * W + cols] = 1.0 / k
    return rm


def _base_grid_np(W, P_pad):
    """Normalized output-grid coords (align_corners=False) per flat output
    pixel p = r*W + c, precomputed on host (kernel never does // or %)."""
    p = np.arange(P_pad, dtype=np.int64)
    r = p // W
    c = p % W
    xn = ((2.0 * c + 1.0) / W - 1.0).astype(np.float32).reshape(1, P_pad)
    yn = ((2.0 * r + 1.0) / W - 1.0).astype(np.float32).reshape(1, P_pad)
    return xn, yn


def _vmem_budget_bytes():
    try:
        cap = int(pltpu.get_tpu_info().vmem_capacity_bytes)
    except Exception:
        cap = 64 * 1024 * 1024          # conservative fallback (v7x-sized)
    return max(32 * 1024 * 1024, min(cap * 3 // 4, 100 * 1024 * 1024))


# --------------------------------- the kernel --------------------------------

def _partial_radon_kernel(trig_ref, x_ref, xn_ref, yn_ref, rm_ref, out_ref,
                          *scratch, W, AB, Pt, n_strips, compose, rm_full):
    """Grid = (angle_block, strip).  Per step: build the (Q, Pt) bilinear
    sampling strip for each of AB angles and either
      compose path : composed[ab] += mt @ rm   (M = Q, MXU-efficient),
                     out written once at the last strip as x @ composed[ab];
      fallback     : out[ab]      += (x @ mt) @ rm  (streamed accumulation)."""
    a_blk = pl.program_id(0)
    s = pl.program_id(1)

    if compose:
        comp_ref = scratch[0]

        @pl.when(s == 0)
        def _():
            comp_ref[...] = jnp.zeros_like(comp_ref)
    else:
        @pl.when(s == 0)
        def _():
            out_ref[...] = jnp.zeros_like(out_ref)

    xn = xn_ref[...]                          # (1, Pt)  p-only base grid x
    yn = yn_ref[...]                          # (1, Pt)  p-only base grid y

    if rm_full:                               # resident RM: slice this strip
        start = pl.multiple_of(s * Pt, 128)
        rm = rm_ref[pl.ds(start, Pt), :]      # (Pt, SW)
    else:
        rm = rm_ref[...]                      # (Pt, SW) streamed strip

    Q = x_ref.shape[1]
    # angle-independent input-pixel row ids (built once per grid step)
    q_ids = lax.broadcasted_iota(jnp.int32, (Q, Pt), 0)

    if not compose:
        x_img = x_ref[...]                    # (N, Q), resident

    def ab_body(ab, carry):
        a_idx = a_blk * AB + ab
        cos_t = trig_ref[2 * a_idx]
        sin_t = trig_ref[2 * a_idx + 1]

        # ---- p-only math on (1, Pt) slabs (hoisted off the (Q, Pt) plane) ----
        gx = cos_t * xn + sin_t * yn
        gy = -sin_t * xn + cos_t * yn
        ix = ((gx + 1.0) * W - 1.0) * 0.5     # unnormalize, align_corners=False
        iy = ((gy + 1.0) * W - 1.0) * 0.5
        ix0f = jnp.floor(ix)
        iy0f = jnp.floor(iy)
        fx = ix - ix0f
        fy = iy - iy0f
        ix0 = ix0f.astype(jnp.int32)
        iy0 = iy0f.astype(jnp.int32)

        # ---- full (Q, Pt) work: 4 compare/select passes, accumulated in place
        mt = None
        for dy in (0, 1):
            wy = fy if dy == 1 else 1.0 - fy
            iyc = iy0 + dy
            for dx in (0, 1):
                wx = fx if dx == 1 else 1.0 - fx
                ixc = ix0 + dx
                valid = (iyc >= 0) & (iyc < W) & (ixc >= 0) & (ixc < W)
                w = jnp.where(valid, wy * wx, 0.0)      # (1, Pt), zeros padding
                idx = iyc * W + ixc                     # (1, Pt)
                term = jnp.where(q_ids == idx, w, 0.0)  # (Q, Pt)
                mt = term if mt is None else mt + term

        if compose:
            # (Q, Pt) @ (Pt, SW): M = Q rows of useful MXU work.
            comp_ref[ab] = comp_ref[ab] + jnp.dot(
                mt, rm, preferred_element_type=jnp.float32)
        else:
            rotated = jnp.dot(x_img, mt, preferred_element_type=jnp.float32)
            out_ref[ab] = out_ref[ab] + jnp.dot(
                rotated, rm, preferred_element_type=jnp.float32)
        return carry

    lax.fori_loop(0, AB, ab_body, 0, unroll=True)

    if compose:
        @pl.when(s == n_strips - 1)
        def _():
            x_img = x_ref[...]                # (N, Q)
            for ab in range(AB):              # once per angle block, tiny dots
                out_ref[ab] = jnp.dot(x_img, comp_ref[ab],
                                      preferred_element_type=jnp.float32)


# --------------------------------- wrapper ------------------------------------

def partial_radon(x, theta_deg, steps=1, circle=True, geometric=False,
                  angle_batch=2, force_compose=None, max_pt=None,
                  rm_stream=False):
    """Pallas TPU implementation of PartialRadon.forward.  x: (N, 1, W, W)."""
    N, C, H, W0 = x.shape
    assert C == 1 and H == W0
    pb, pa, W = _pad_amounts(W0, circle)
    if pb or pa:
        x = jnp.pad(x, ((0, 0), (0, 0), (pb, pa), (pb, pa)))

    segments = _segments(W, steps, geometric)
    S = steps + 1
    SW = S * W
    A = len(theta_deg)
    P = W * W
    Q = P

    budget = _vmem_budget_bytes()

    # Angle batching: AB <= 2 and A_blocks >= 2, so the "parallel" angle axis
    # can shard across both TensorCores on v7x (no-op on v5e/v6e) and the live
    # per-step mt footprint stays small.
    AB = max(1, min(angle_batch, 2, max(1, A // 2)))

    # Compose-path gating: the per-angle composed (Q, SW) matrices must fit.
    comp_bytes = 4 * AB * Q * SW
    if force_compose is None:
        compose = comp_bytes <= budget // 3
        if not compose and 4 * Q * SW <= budget // 3:
            AB, compose = 1, True
    else:
        compose = bool(force_compose)
    comp_bytes = 4 * AB * Q * SW if compose else 0

    # Strip width: account for ALL live VMEM, not just one mt copy.
    #   static : resident image, output block (x2), mt@rm result temp, composed
    #   per Pt : q_ids + mt + one corner temp at (Q, Pt), streamed-rm buffers
    static_bytes = 4 * (2 * N * Q + 2 * AB * N * SW + Q * SW) + comp_bytes
    per_pt = 4 * (3 * Q + 2 * SW + 8)
    avail = budget - static_bytes - (2 << 20)
    Pt_cap = _round_up(P, 128)
    if avail < per_pt * 128:
        Pt = 128   # TODO(synk): add a Q-tiling grid axis for very large W.
    else:
        Pt = min(Pt_cap, (avail // per_pt) // 128 * 128)
    if max_pt is not None:
        Pt = min(Pt, _round_up(max_pt, 128))
    Pt = max(128, Pt)
    P_pad = _round_up(P, Pt)
    n_strips = P_pad // Pt

    # Angle-independent reduction matrix: resident (constant index map, one
    # DMA total) when it fits; otherwise streamed per strip (re-read once per
    # angle block, amortized by AB).
    rm_bytes = 4 * P_pad * SW
    rm_full = (not rm_stream) and (
        rm_bytes <= min(16 << 20, budget // 4)
        and static_bytes + rm_bytes + per_pt * Pt + (2 << 20) <= budget)

    A_pad = _round_up(A, AB)
    A_blocks = A_pad // AB

    # Flat 1-D trig table in SMEM (2-D SMEM pads to [*,128] words).
    rad = np.deg2rad(np.asarray(theta_deg, dtype=np.float64))
    trig_np = np.zeros((2 * A_pad,), np.float32)
    trig_np[0:2 * A:2] = np.cos(rad)
    trig_np[1:2 * A:2] = np.sin(rad)
    trig_np[2 * A::2] = 1.0                   # identity rotation for pad angles

    xn_np, yn_np = _base_grid_np(W, P_pad)                       # (1, P_pad)
    rm_np = _reduction_matrix_np(W, tuple(int(t) for t in segments), P_pad)

    x_flat = x.reshape(N, P).astype(jnp.float32)

    rm_spec = (pl.BlockSpec((P_pad, SW), lambda a, s: (0, 0)) if rm_full
               else pl.BlockSpec((Pt, SW), lambda a, s: (s, 0)))
    scratch_shapes = ([pltpu.VMEM((AB, Q, SW), jnp.float32)] if compose else [])

    kernel = functools.partial(
        _partial_radon_kernel, W=W, AB=AB, Pt=Pt, n_strips=n_strips,
        compose=compose, rm_full=rm_full)

    out_blk = pl.pallas_call(
        kernel,
        out_shape=jax.ShapeDtypeStruct((A_pad, N, SW), jnp.float32),
        grid=(A_blocks, n_strips),
        in_specs=[
            pl.BlockSpec(memory_space=pltpu.MemorySpace.SMEM),      # cos/sin
            pl.BlockSpec((N, P), lambda a, s: (0, 0)),              # image (resident)
            pl.BlockSpec((1, Pt), lambda a, s: (0, s)),             # xn strip
            pl.BlockSpec((1, Pt), lambda a, s: (0, s)),             # yn strip
            rm_spec,                                                # reduction mat
        ],
        out_specs=pl.BlockSpec((AB, N, SW), lambda a, s: (a, 0, 0)),
        scratch_shapes=scratch_shapes,
        compiler_params=pltpu.CompilerParams(
            dimension_semantics=("parallel", "arbitrary"),
            vmem_limit_bytes=budget),
    )(jnp.asarray(trig_np), x_flat, jnp.asarray(xn_np), jnp.asarray(yn_np),
      jnp.asarray(rm_np))

    # (A_pad, N, S*W) -> (N, 1+steps, W, A) to match the PyTorch output layout.
    out = jnp.transpose(out_blk.reshape(A_pad, N, S, W), (1, 2, 3, 0))
    return out[..., :A]


# --------------------- independent numpy reference (gather) -------------------

def partial_radon_reference(x, theta_deg, steps=1, circle=True, geometric=False):
    """Gather-based numpy reference (bilinear grid_sample, zeros padding,
    align_corners=False), independent of the in-kernel matrix construction."""
    x = np.asarray(x, np.float32)
    N, C, H, W0 = x.shape
    pb, pa, W = _pad_amounts(W0, circle)
    if pb or pa:
        x = np.pad(x, ((0, 0), (0, 0), (pb, pa), (pb, pa)))
    img = x[:, 0]                                     # (N, W, W)
    segments = _segments(W, steps, geometric)
    S = steps + 1
    A = len(theta_deg)
    out = np.zeros((N, S, W, A), np.float32)

    coords = ((2.0 * np.arange(W) + 1.0) / W - 1.0).astype(np.float32)
    XN = np.broadcast_to(coords[None, :], (W, W))     # varies along columns (x)
    YN = np.broadcast_to(coords[:, None], (W, W))     # varies along rows (y)
    center = (W - 1) / 2.0
    dist = np.abs(np.arange(W) - center)

    for ai, th in enumerate(theta_deg):
        t = np.deg2rad(float(th))
        cos_t = np.float32(np.cos(t))
        sin_t = np.float32(np.sin(t))
        gx = cos_t * XN + sin_t * YN
        gy = -sin_t * XN + cos_t * YN
        ix = ((gx + 1.0) * W - 1.0) * np.float32(0.5)
        iy = ((gy + 1.0) * W - 1.0) * np.float32(0.5)
        ix0 = np.floor(ix).astype(np.int64)
        iy0 = np.floor(iy).astype(np.int64)
        fx = ix - ix0
        fy = iy - iy0
        rotated = np.zeros((N, W, W), np.float32)
        for dy in (0, 1):
            wy = fy if dy == 1 else 1.0 - fy
            iyc = iy0 + dy
            for dx in (0, 1):
                wx = fx if dx == 1 else 1.0 - fx
                ixc = ix0 + dx
                valid = (iyc >= 0) & (iyc < W) & (ixc >= 0) & (ixc < W)
                iycc = np.clip(iyc, 0, W - 1)
                ixcc = np.clip(ixc, 0, W - 1)
                vals = img[:, iycc, ixcc]             # (N, W, W)
                rotated += (np.where(valid, wy * wx, 0.0)[None] * vals).astype(np.float32)
        for si, tseg in enumerate(segments):
            band = (dist < float(tseg)).astype(np.float32)
            k = band.sum()
            out[:, si, :, ai] = (rotated * band[None, :, None]).sum(axis=1) / k
    return out


# ----------------------------------- main -------------------------------------

if __name__ == "__main__":
    key = jax.random.PRNGKey(0)
    N, C, W = 2, 1, 16
    theta_deg = np.linspace(0.0, 180.0, 8, endpoint=False)     # 8 angles (small)

    x = jax.random.normal(key, (N, C, W, W), dtype=jnp.float32)

    # 1) circle=True, steps=2: auto (compose) path, single strip, resident RM.
    out = jax.block_until_ready(partial_radon(x, theta_deg, steps=2, circle=True))
    assert out.shape == (N, 3, W, len(theta_deg)), out.shape
    ref = partial_radon_reference(np.asarray(x), theta_deg, steps=2, circle=True)
    np.testing.assert_allclose(np.asarray(out), ref, atol=2e-4, rtol=2e-4)

    # 2) circle=False, steps=1: non-power-of-two padded width, strip padding.
    out2 = jax.block_until_ready(partial_radon(x, theta_deg, steps=1, circle=False))
    ref2 = partial_radon_reference(np.asarray(x), theta_deg, steps=1, circle=False)
    assert out2.shape == ref2.shape, (out2.shape, ref2.shape)
    np.testing.assert_allclose(np.asarray(out2), ref2, atol=2e-4, rtol=2e-4)

    # 3) forced fallback path (streamed RM, 2 strips, out accumulation).
    out3 = jax.block_until_ready(partial_radon(
        x, theta_deg, steps=2, circle=True,
        force_compose=False, rm_stream=True, max_pt=128))
    np.testing.assert_allclose(np.asarray(out3), ref, atol=2e-4, rtol=2e-4)

    # 4) compose path with multiple strips (exercises composed-accumulator
    #    reduction across strips and the in-kernel resident-RM strip slice).
    out4 = jax.block_until_ready(partial_radon(
        x, theta_deg, steps=2, circle=True, max_pt=128))
    np.testing.assert_allclose(np.asarray(out4), ref, atol=2e-4, rtol=2e-4)

    print("KERNEL_OK")
</pallas_src>

<mosaic_0001>
module attributes {stable_mosaic.version = 11 : i64} {
  func.func @_partial_radon_kernel(%arg0: i32, %arg1: i32, %arg2: memref<16xf32, #tpu.memory_space<smem>>, %arg3: memref<2x256xf32, #tpu.memory_space<vmem>>, %arg4: memref<1x256xf32, #tpu.memory_space<vmem>>, %arg5: memref<1x256xf32, #tpu.memory_space<vmem>>, %arg6: memref<256x48xf32, #tpu.memory_space<vmem>>, %arg7: memref<2x2x48xf32, #tpu.memory_space<vmem>>, %arg8: memref<2x256x48xf32, #tpu.memory_space<vmem>>) attributes {dimension_semantics = [#tpu.dimension_semantics<parallel>, #tpu.dimension_semantics<arbitrary>], iteration_bounds = array<i64: 4, 1>, scalar_prefetch = 0 : i64, scratch_operands = 1 : i64, tpu.core_type = #tpu.core_type<tc>, window_params = [{transform_indices = @transform_0, window_bounds = array<i64: 16>}, {pipeline_mode = #tpu.pipeline_mode<synchronous>, transform_indices = @transform_1, window_bounds = array<i64: 2, 256>}, {transform_indices = @transform_2, window_bounds = array<i64: 1, 256>}, {transform_indices = @transform_3, window_bounds = array<i64: 1, 256>}, {pipeline_mode = #tpu.pipeline_mode<synchronous>, transform_indices = @transform_4, window_bounds = array<i64: 256, 48>}, {transform_indices = @transform_5, window_bounds = array<i64: 2, 2, 48>}]} {
    %c0_i32 = arith.constant 0 : i32
    %0 = arith.cmpi eq, %arg1, %c0_i32 : i32
    %1 = arith.extui %0 : i1 to i32
    %c0_i32_0 = arith.constant 0 : i32
    %2 = arith.cmpi ne, %1, %c0_i32_0 : i32
    scf.if %2 {
      %cst_116 = arith.constant 0.000000e+00 : f32
      %341 = vector.broadcast %cst_116 : f32 to vector<2x256x48xf32>
      %c0_117 = arith.constant 0 : index
      %c0_118 = arith.constant 0 : index
      %c0_119 = arith.constant 0 : index
      %342 = vector.load %arg8[%c0_117, %c0_118, %c0_119] : memref<2x256x48xf32, #tpu.memory_space<vmem>>, vector<2x256x48xf32>
      tpu.vector_store %arg8[%c0_117, %c0_118, %c0_119], %341 {strides = array<i32>} : memref<2x256x48xf32, #tpu.memory_space<vmem>>, vector<2x256x48xf32>,
    } else {
    }
    %c0 = arith.constant 0 : index
    %c0_1 = arith.constant 0 : index
    %3 = vector.load %arg4[%c0, %c0_1] : memref<1x256xf32, #tpu.memory_space<vmem>>, vector<1x256xf32>
    %c0_2 = arith.constant 0 : index
    %c0_3 = arith.constant 0 : index
    %4 = vector.load %arg5[%c0_2, %c0_3] : memref<1x256xf32, #tpu.memory_space<vmem>>, vector<1x256xf32>
    %c256_i32 = arith.constant 256 : i32
    %5 = arith.muli %arg1, %c256_i32 : i32
    %6 = tpu.assume_multiple %5, 128 : i32
    %7 = arith.index_cast %6 : i32 to index
    %c0_4 = arith.constant 0 : index
    %8 = vector.load %arg6[%7, %c0_4] : memref<256x48xf32, #tpu.memory_space<vmem>>, vector<256x48xf32>
    %9 = tpu.iota {dimensions = array<i32: 0>} : vector<256x256xi32>
    %c0_i32_5 = arith.constant 0 : i32
    %c2_i32 = arith.constant 2 : i32
    %10 = arith.muli %arg0, %c2_i32 : i32
    %11 = arith.addi %10, %c0_i32_5 : i32
    %c2_i32_6 = arith.constant 2 : i32
    %12 = arith.muli %c2_i32_6, %11 : i32
    %13 = arith.index_cast %12 : i32 to index
    %14 = memref.load %arg2[%13] : memref<16xf32, #tpu.memory_space<smem>>
    %c2_i32_7 = arith.constant 2 : i32
    %15 = arith.muli %c2_i32_7, %11 : i32
    %c1_i32 = arith.constant 1 : i32
    %16 = arith.addi %15, %c1_i32 : i32
    %17 = arith.index_cast %16 : i32 to index
    %18 = memref.load %arg2[%17] : memref<16xf32, #tpu.memory_space<smem>>
    %19 = vector.broadcast %14 : f32 to vector<1x256xf32>
    %20 = arith.mulf %19, %3 : vector<1x256xf32>
    %21 = vector.broadcast %18 : f32 to vector<1x256xf32>
    %22 = arith.mulf %21, %4 : vector<1x256xf32>
    %23 = arith.addf %20, %22 : vector<1x256xf32>
    %cst = arith.constant 0.000000e+00 : f32
    %24 = arith.subf %cst, %18 : f32
    %25 = vector.broadcast %24 : f32 to vector<1x256xf32>
    %26 = arith.mulf %25, %3 : vector<1x256xf32>
    %27 = vector.broadcast %14 : f32 to vector<1x256xf32>
    %28 = arith.mulf %27, %4 : vector<1x256xf32>
    %29 = arith.addf %26, %28 : vector<1x256xf32>
    %cst_8 = arith.constant 1.000000e+00 : f32
    %30 = vector.broadcast %cst_8 : f32 to vector<1x256xf32>
    %31 = arith.addf %23, %30 : vector<1x256xf32>
    %cst_9 = arith.constant 1.600000e+01 : f32
    %32 = vector.broadcast %cst_9 : f32 to vector<1x256xf32>
    %33 = arith.mulf %31, %32 : vector<1x256xf32>
    %cst_10 = arith.constant 1.000000e+00 : f32
    %34 = vector.broadcast %cst_10 : f32 to vector<1x256xf32>
    %35 = arith.subf %33, %34 : vector<1x256xf32>
    %cst_11 = arith.constant 5.000000e-01 : f32
    %36 = vector.broadcast %cst_11 : f32 to vector<1x256xf32>
    %37 = arith.mulf %35, %36 : vector<1x256xf32>
    %cst_12 = arith.constant 1.000000e+00 : f32
    %38 = vector.broadcast %cst_12 : f32 to vector<1x256xf32>
    %39 = arith.addf %29, %38 : vector<1x256xf32>
    %cst_13 = arith.constant 1.600000e+01 : f32
    %40 = vector.broadcast %cst_13 : f32 to vector<1x256xf32>
    %41 = arith.mulf %39, %40 : vector<1x256xf32>
    %cst_14 = arith.constant 1.000000e+00 : f32
    %42 = vector.broadcast %cst_14 : f32 to vector<1x256xf32>
    %43 = arith.subf %41, %42 : vector<1x256xf32>
    %cst_15 = arith.constant 5.000000e-01 : f32
    %44 = vector.broadcast %cst_15 : f32 to vector<1x256xf32>
    %45 = arith.mulf %43, %44 : vector<1x256xf32>
    %46 = math.floor %37 : vector<1x256xf32>
    %47 = math.floor %45 : vector<1x256xf32>
    %48 = arith.subf %37, %46 : vector<1x256xf32>
    %49 = arith.subf %45, %47 : vector<1x256xf32>
    %50 = arith.fptosi %46 : vector<1x256xf32> to vector<1x256xi32>
    %51 = arith.fptosi %47 : vector<1x256xf32> to vector<1x256xi32>
    %cst_16 = arith.constant 1.000000e+00 : f32
    %52 = vector.broadcast %cst_16 : f32 to vector<1x256xf32>
    %53 = arith.subf %52, %49 : vector<1x256xf32>
    %c0_i32_17 = arith.constant 0 : i32
    %54 = vector.broadcast %c0_i32_17 : i32 to vector<1x256xi32>
    %55 = arith.addi %51, %54 : vector<1x256xi32>
    %cst_18 = arith.constant 1.000000e+00 : f32
    %56 = vector.broadcast %cst_18 : f32 to vector<1x256xf32>
    %57 = arith.subf %56, %48 : vector<1x256xf32>
    %c0_i32_19 = arith.constant 0 : i32
    %58 = vector.broadcast %c0_i32_19 : i32 to vector<1x256xi32>
    %59 = arith.addi %50, %58 : vector<1x256xi32>
    %c0_i32_20 = arith.constant 0 : i32
    %60 = vector.broadcast %c0_i32_20 : i32 to vector<1x256xi32>
    %61 = arith.cmpi sge, %55, %60 : vector<1x256xi32>
    %c16_i32 = arith.constant 16 : i32
    %62 = vector.broadcast %c16_i32 : i32 to vector<1x256xi32>
    %63 = arith.cmpi slt, %55, %62 : vector<1x256xi32>
    %64 = arith.andi %61, %63 : vector<1x256xi1>
    %c0_i32_21 = arith.constant 0 : i32
    %65 = vector.broadcast %c0_i32_21 : i32 to vector<1x256xi32>
    %66 = arith.cmpi sge, %59, %65 : vector<1x256xi32>
    %67 = arith.andi %64, %66 : vector<1x256xi1>
    %c16_i32_22 = arith.constant 16 : i32
    %68 = vector.broadcast %c16_i32_22 : i32 to vector<1x256xi32>
    %69 = arith.cmpi slt, %59, %68 : vector<1x256xi32>
    %70 = arith.andi %67, %69 : vector<1x256xi1>
    %71 = arith.mulf %53, %57 : vector<1x256xf32>
    %cst_23 = arith.constant 0.000000e+00 : f32
    %72 = vector.broadcast %cst_23 : f32 to vector<1x256xf32>
    %73 = arith.select %70, %71, %72 : vector<1x256xi1>, vector<1x256xf32>
    %c16_i32_24 = arith.constant 16 : i32
    %74 = vector.broadcast %c16_i32_24 : i32 to vector<1x256xi32>
    %75 = arith.muli %55, %74 : vector<1x256xi32>
    %76 = arith.addi %75, %59 : vector<1x256xi32>
    %77 = vector.broadcast %76 : vector<1x256xi32> to vector<256x256xi32>
    %78 = arith.cmpi eq, %9, %77 : vector<256x256xi32>
    %cst_25 = arith.constant 0.000000e+00 : f32
    %79 = vector.shape_cast %73 : vector<1x256xf32> to vector<1x256xf32>
    %80 = vector.broadcast %79 : vector<1x256xf32> to vector<256x256xf32>
    %81 = vector.broadcast %cst_25 : f32 to vector<256x256xf32>
    %82 = arith.select %78, %80, %81 : vector<256x256xi1>, vector<256x256xf32>
    %c1_i32_26 = arith.constant 1 : i32
    %83 = vector.broadcast %c1_i32_26 : i32 to vector<1x256xi32>
    %84 = arith.addi %50, %83 : vector<1x256xi32>
    %c0_i32_27 = arith.constant 0 : i32
    %85 = vector.broadcast %c0_i32_27 : i32 to vector<1x256xi32>
    %86 = arith.cmpi sge, %55, %85 : vector<1x256xi32>
    %c16_i32_28 = arith.constant 16 : i32
    %87 = vector.broadcast %c16_i32_28 : i32 to vector<1x256xi32>
    %88 = arith.cmpi slt, %55, %87 : vector<1x256xi32>
    %89 = arith.andi %86, %88 : vector<1x256xi1>
    %c0_i32_29 = arith.constant 0 : i32
    %90 = vector.broadcast %c0_i32_29 : i32 to vector<1x256xi32>
    %91 = arith.cmpi sge, %84, %90 : vector<1x256xi32>
    %92 = arith.andi %89, %91 : vector<1x256xi1>
    %c16_i32_30 = arith.constant 16 : i32
    %93 = vector.broadcast %c16_i32_30 : i32 to vector<1x256xi32>
    %94 = arith.cmpi slt, %84, %93 : vector<1x256xi32>
    %95 = arith.andi %92, %94 : vector<1x256xi1>
    %96 = arith.mulf %53, %48 : vector<1x256xf32>
    %cst_31 = arith.constant 0.000000e+00 : f32
    %97 = vector.broadcast %cst_31 : f32 to vector<1x256xf32>
    %98 = arith.select %95, %96, %97 : vector<1x256xi1>, vector<1x256xf32>
    %c16_i32_32 = arith.constant 16 : i32
    %99 = vector.broadcast %c16_i32_32 : i32 to vector<1x256xi32>
    %100 = arith.muli %55, %99 : vector<1x256xi32>
    %101 = arith.addi %100, %84 : vector<1x256xi32>
    %102 = vector.broadcast %101 : vector<1x256xi32> to vector<256x256xi32>
    %103 = arith.cmpi eq, %9, %102 : vector<256x256xi32>
    %cst_33 = arith.constant 0.000000e+00 : f32
    %104 = vector.shape_cast %98 : vector<1x256xf32> to vector<1x256xf32>
    %105 = vector.broadcast %104 : vector<1x256xf32> to vector<256x256xf32>
    %106 = vector.broadcast %cst_33 : f32 to vector<256x256xf32>
    %107 = arith.select %103, %105, %106 : vector<256x256xi1>, vector<256x256xf32>
    %108 = arith.addf %82, %107 : vector<256x256xf32>
    %c1_i32_34 = arith.constant 1 : i32
    %109 = vector.broadcast %c1_i32_34 : i32 to vector<1x256xi32>
    %110 = arith.addi %51, %109 : vector<1x256xi32>
    %cst_35 = arith.constant 1.000000e+00 : f32
    %111 = vector.broadcast %cst_35 : f32 to vector<1x256xf32>
    %112 = arith.subf %111, %48 : vector<1x256xf32>
    %c0_i32_36 = arith.constant 0 : i32
    %113 = vector.broadcast %c0_i32_36 : i32 to vector<1x256xi32>
    %114 = arith.addi %50, %113 : vector<1x256xi32>
    %c0_i32_37 = arith.constant 0 : i32
    %115 = vector.broadcast %c0_i32_37 : i32 to vector<1x256xi32>
    %116 = arith.cmpi sge, %110, %115 : vector<1x256xi32>
    %c16_i32_38 = arith.constant 16 : i32
    %117 = vector.broadcast %c16_i32_38 : i32 to vector<1x256xi32>
    %118 = arith.cmpi slt, %110, %117 : vector<1x256xi32>
    %119 = arith.andi %116, %118 : vector<1x256xi1>
    %c0_i32_39 = arith.constant 0 : i32
    %120 = vector.broadcast %c0_i32_39 : i32 to vector<1x256xi32>
    %121 = arith.cmpi sge, %114, %120 : vector<1x256xi32>
    %122 = arith.andi %119, %121 : vector<1x256xi1>
    %c16_i32_40 = arith.constant 16 : i32
    %123 = vector.broadcast %c16_i32_40 : i32 to vector<1x256xi32>
    %124 = arith.cmpi slt, %114, %123 : vector<1x256xi32>
    %125 = arith.andi %122, %124 : vector<1x256xi1>
    %126 = arith.mulf %49, %112 : vector<1x256xf32>
    %cst_41 = arith.constant 0.000000e+00 : f32
    %127 = vector.broadcast %cst_41 : f32 to vector<1x256xf32>
    %128 = arith.select %125, %126, %127 : vector<1x256xi1>, vector<1x256xf32>
    %c16_i32_42 = arith.constant 16 : i32
    %129 = vector.broadcast %c16_i32_42 : i32 to vector<1x256xi32>
    %130 = arith.muli %110, %129 : vector<1x256xi32>
    %131 = arith.addi %130, %114 : vector<1x256xi32>
    %132 = vector.broadcast %131 : vector<1x256xi32> to vector<256x256xi32>
    %133 = arith.cmpi eq, %9, %132 : vector<256x256xi32>
    %cst_43 = arith.constant 0.000000e+00 : f32
    %134 = vector.shape_cast %128 : vector<1x256xf32> to vector<1x256xf32>
    %135 = vector.broadcast %134 : vector<1x256xf32> to vector<256x256xf32>
    %136 = vector.broadcast %cst_43 : f32 to vector<256x256xf32>
    %137 = arith.select %133, %135, %136 : vector<256x256xi1>, vector<256x256xf32>
    %138 = arith.addf %108, %137 : vector<256x256xf32>
    %c1_i32_44 = arith.constant 1 : i32
    %139 = vector.broadcast %c1_i32_44 : i32 to vector<1x256xi32>
    %140 = arith.addi %50, %139 : vector<1x256xi32>
    %c0_i32_45 = arith.constant 0 : i32
    %141 = vector.broadcast %c0_i32_45 : i32 to vector<1x256xi32>
    %142 = arith.cmpi sge, %110, %141 : vector<1x256xi32>
    %c16_i32_46 = arith.constant 16 : i32
    %143 = vector.broadcast %c16_i32_46 : i32 to vector<1x256xi32>
    %144 = arith.cmpi slt, %110, %143 : vector<1x256xi32>
    %145 = arith.andi %142, %144 : vector<1x256xi1>
    %c0_i32_47 = arith.constant 0 : i32
    %146 = vector.broadcast %c0_i32_47 : i32 to vector<1x256xi32>
    %147 = arith.cmpi sge, %140, %146 : vector<1x256xi32>
    %148 = arith.andi %145, %147 : vector<1x256xi1>
    %c16_i32_48 = arith.constant 16 : i32
    %149 = vector.broadcast %c16_i32_48 : i32 to vector<1x256xi32>
    %150 = arith.cmpi slt, %140, %149 : vector<1x256xi32>
    %151 = arith.andi %148, %150 : vector<1x256xi1>
    %152 = arith.mulf %49, %48 : vector<1x256xf32>
    %cst_49 = arith.constant 0.000000e+00 : f32
    %153 = vector.broadcast %cst_49 : f32 to vector<1x256xf32>
    %154 = arith.select %151, %152, %153 : vector<1x256xi1>, vector<1x256xf32>
    %c16_i32_50 = arith.constant 16 : i32
    %155 = vector.broadcast %c16_i32_50 : i32 to vector<1x256xi32>
    %156 = arith.muli %110, %155 : vector<1x256xi32>
    %157 = arith.addi %156, %140 : vector<1x256xi32>
    %158 = vector.broadcast %157 : vector<1x256xi32> to vector<256x256xi32>
    %159 = arith.cmpi eq, %9, %158 : vector<256x256xi32>
    %cst_51 = arith.constant 0.000000e+00 : f32
    %160 = vector.shape_cast %154 : vector<1x256xf32> to vector<1x256xf32>
    %161 = vector.broadcast %160 : vector<1x256xf32> to vector<256x256xf32>
    %162 = vector.broadcast %cst_51 : f32 to vector<256x256xf32>
    %163 = arith.select %159, %161, %162 : vector<256x256xi1>, vector<256x256xf32>
    %164 = arith.addf %138, %163 : vector<256x256xf32>
    %165 = arith.index_cast %c0_i32_5 : i32 to index
    %c0_52 = arith.constant 0 : index
    %c0_53 = arith.constant 0 : index
    %166 = vector.load %arg8[%165, %c0_52, %c0_53] : memref<2x256x48xf32, #tpu.memory_space<vmem>>, vector<1x256x48xf32>
    %167 = vector.shape_cast %166 : vector<1x256x48xf32> to vector<256x48xf32>
    %cst_54 = arith.constant dense<0.000000e+00> : vector<256x48xf32>
    %168 = tpu.matmul %164, %8, %cst_54 {dimension_numbers = #tpu.dot_dimension_numbers<[1], [0], [0], [1], [0, 0, 1, 1], [], []>} : vector<256x256xf32>, vector<256x48xf32>, vector<256x48xf32> -> vector<256x48xf32>
    %169 = arith.addf %167, %168 : vector<256x48xf32>
    %170 = arith.index_cast %c0_i32_5 : i32 to index
    %c0_55 = arith.constant 0 : index
    %c0_56 = arith.constant 0 : index
    %171 = vector.load %arg8[%170, %c0_55, %c0_56] : memref<2x256x48xf32, #tpu.memory_space<vmem>>, vector<1x256x48xf32>
    %172 = vector.shape_cast %171 : vector<1x256x48xf32> to vector<256x48xf32>
    %173 = vector.shape_cast %169 : vector<256x48xf32> to vector<1x256x48xf32>
    tpu.vector_store %arg8[%170, %c0_55, %c0_56], %173 {strides = array<i32>} : memref<2x256x48xf32, #tpu.memory_space<vmem>>, vector<1x256x48xf32>,
    %c1_i32_57 = arith.constant 1 : i32
    %c2_i32_58 = arith.constant 2 : i32
    %174 = arith.muli %arg0, %c2_i32_58 : i32
    %175 = arith.addi %174, %c1_i32_57 : i32
    %c2_i32_59 = arith.constant 2 : i32
    %176 = arith.muli %c2_i32_59, %175 : i32
    %177 = arith.index_cast %176 : i32 to index
    %178 = memref.load %arg2[%177] : memref<16xf32, #tpu.memory_space<smem>>
    %c2_i32_60 = arith.constant 2 : i32
    %179 = arith.muli %c2_i32_60, %175 : i32
    %c1_i32_61 = arith.constant 1 : i32
    %180 = arith.addi %179, %c1_i32_61 : i32
    %181 = arith.index_cast %180 : i32 to index
    %182 = memref.load %arg2[%181] : memref<16xf32, #tpu.memory_space<smem>>
    %183 = vector.broadcast %178 : f32 to vector<1x256xf32>
    %184 = arith.mulf %183, %3 : vector<1x256xf32>
    %185 = vector.broadcast %182 : f32 to vector<1x256xf32>
    %186 = arith.mulf %185, %4 : vector<1x256xf32>
    %187 = arith.addf %184, %186 : vector<1x256xf32>
    %cst_62 = arith.constant 0.000000e+00 : f32
    %188 = arith.subf %cst_62, %182 : f32
    %189 = vector.broadcast %188 : f32 to vector<1x256xf32>
    %190 = arith.mulf %189, %3 : vector<1x256xf32>
    %191 = vector.broadcast %178 : f32 to vector<1x256xf32>
    %192 = arith.mulf %191, %4 : vector<1x256xf32>
    %193 = arith.addf %190, %192 : vector<1x256xf32>
    %cst_63 = arith.constant 1.000000e+00 : f32
    %194 = vector.broadcast %cst_63 : f32 to vector<1x256xf32>
    %195 = arith.addf %187, %194 : vector<1x256xf32>
    %cst_64 = arith.constant 1.600000e+01 : f32
    %196 = vector.broadcast %cst_64 : f32 to vector<1x256xf32>
    %197 = arith.mulf %195, %196 : vector<1x256xf32>
    %cst_65 = arith.constant 1.000000e+00 : f32
    %198 = vector.broadcast %cst_65 : f32 to vector<1x256xf32>
    %199 = arith.subf %197, %198 : vector<1x256xf32>
    %cst_66 = arith.constant 5.000000e-01 : f32
    %200 = vector.broadcast %cst_66 : f32 to vector<1x256xf32>
    %201 = arith.mulf %199, %200 : vector<1x256xf32>
    %cst_67 = arith.constant 1.000000e+00 : f32
    %202 = vector.broadcast %cst_67 : f32 to vector<1x256xf32>
    %203 = arith.addf %193, %202 : vector<1x256xf32>
    %cst_68 = arith.constant 1.600000e+01 : f32
    %204 = vector.broadcast %cst_68 : f32 to vector<1x256xf32>
    %205 = arith.mulf %203, %204 : vector<1x256xf32>
    %cst_69 = arith.constant 1.000000e+00 : f32
    %206 = vector.broadcast %cst_69 : f32 to vector<1x256xf32>
    %207 = arith.subf %205, %206 : vector<1x256xf32>
    %cst_70 = arith.constant 5.000000e-01 : f32
    %208 = vector.broadcast %cst_70 : f32 to vector<1x256xf32>
    %209 = arith.mulf %207, %208 : vector<1x256xf32>
    %210 = math.floor %201 : vector<1x256xf32>
    %211 = math.floor %209 : vector<1x256xf32>
    %212 = arith.subf %201, %210 : vector<1x256xf32>
    %213 = arith.subf %209, %211 : vector<1x256xf32>
    %214 = arith.fptosi %210 : vector<1x256xf32> to vector<1x256xi32>
    %215 = arith.fptosi %211 : vector<1x256xf32> to vector<1x256xi32>
    %cst_71 = arith.constant 1.000000e+00 : f32
    %216 = vector.broadcast %cst_71 : f32 to vector<1x256xf32>
    %217 = arith.subf %216, %213 : vector<1x256xf32>
    %c0_i32_72 = arith.constant 0 : i32
    %218 = vector.broadcast %c0_i32_72 : i32 to vector<1x256xi32>
    %219 = arith.addi %215, %218 : vector<1x256xi32>
    %cst_73 = arith.constant 1.000000e+00 : f32
    %220 = vector.broadcast %cst_73 : f32 to vector<1x256xf32>
    %221 = arith.subf %220, %212 : vector<1x256xf32>
    %c0_i32_74 = arith.constant 0 : i32
    %222 = vector.broadcast %c0_i32_74 : i32 to vector<1x256xi32>
    %223 = arith.addi %214, %222 : vector<1x256xi32>
    %c0_i32_75 = arith.constant 0 : i32
    %224 = vector.broadcast %c0_i32_75 : i32 to vector<1x256xi32>
    %225 = arith.cmpi sge, %219, %224 : vector<1x256xi32>
    %c16_i32_76 = arith.constant 16 : i32
    %226 = vector.broadcast %c16_i32_76 : i32 to vector<1x256xi32>
    %227 = arith.cmpi slt, %219, %226 : vector<1x256xi32>
    %228 = arith.andi %225, %227 : vector<1x256xi1>
    %c0_i32_77 = arith.constant 0 : i32
    %229 = vector.broadcast %c0_i32_77 : i32 to vector<1x256xi32>
    %230 = arith.cmpi sge, %223, %229 : vector<1x256xi32>
    %231 = arith.andi %228, %230 : vector<1x256xi1>
    %c16_i32_78 = arith.constant 16 : i32
    %232 = vector.broadcast %c16_i32_78 : i32 to vector<1x256xi32>
    %233 = arith.cmpi slt, %223, %232 : vector<1x256xi32>
    %234 = arith.andi %231, %233 : vector<1x256xi1>
    %235 = arith.mulf %217, %221 : vector<1x256xf32>
    %cst_79 = arith.constant 0.000000e+00 : f32
    %236 = vector.broadcast %cst_79 : f32 to vector<1x256xf32>
    %237 = arith.select %234, %235, %236 : vector<1x256xi1>, vector<1x256xf32>
    %c16_i32_80 = arith.constant 16 : i32
    %238 = vector.broadcast %c16_i32_80 : i32 to vector<1x256xi32>
    %239 = arith.muli %219, %238 : vector<1x256xi32>
    %240 = arith.addi %239, %223 : vector<1x256xi32>
    %241 = vector.broadcast %240 : vector<1x256xi32> to vector<256x256xi32>
    %242 = arith.cmpi eq, %9, %241 : vector<256x256xi32>
    %cst_81 = arith.constant 0.000000e+00 : f32
    %243 = vector.shape_cast %237 : vector<1x256xf32> to vector<1x256xf32>
    %244 = vector.broadcast %243 : vector<1x256xf32> to vector<256x256xf32>
    %245 = vector.broadcast %cst_81 : f32 to vector<256x256xf32>
    %246 = arith.select %242, %244, %245 : vector<256x256xi1>, vector<256x256xf32>
    %c1_i32_82 = arith.constant 1 : i32
    %247 = vector.broadcast %c1_i32_82 : i32 to vector<1x256xi32>
    %248 = arith.addi %214, %247 : vector<1x256xi32>
    %c0_i32_83 = arith.constant 0 : i32
    %249 = vector.broadcast %c0_i32_83 : i32 to vector<1x256xi32>
    %250 = arith.cmpi sge, %219, %249 : vector<1x256xi32>
    %c16_i32_84 = arith.constant 16 : i32
    %251 = vector.broadcast %c16_i32_84 : i32 to vector<1x256xi32>
    %252 = arith.cmpi slt, %219, %251 : vector<1x256xi32>
    %253 = arith.andi %250, %252 : vector<1x256xi1>
    %c0_i32_85 = arith.constant 0 : i32
    %254 = vector.broadcast %c0_i32_85 : i32 to vector<1x256xi32>
    %255 = arith.cmpi sge, %248, %254 : vector<1x256xi32>
    %256 = arith.andi %253, %255 : vector<1x256xi1>
    %c16_i32_86 = arith.constant 16 : i32
    %257 = vector.broadcast %c16_i32_86 : i32 to vector<1x256xi32>
    %258 = arith.cmpi slt, %248, %257 : vector<1x256xi32>
    %259 = arith.andi %256, %258 : vector<1x256xi1>
    %260 = arith.mulf %217, %212 : vector<1x256xf32>
    %cst_87 = arith.constant 0.000000e+00 : f32
    %261 = vector.broadcast %cst_87 : f32 to vector<1x256xf32>
    %262 = arith.select %259, %260, %261 : vector<1x256xi1>, vector<1x256xf32>
    %c16_i32_88 = arith.constant 16 : i32
    %263 = vector.broadcast %c16_i32_88 : i32 to vector<1x256xi32>
    %264 = arith.muli %219, %263 : vector<1x256xi32>
    %265 = arith.addi %264, %248 : vector<1x256xi32>
    %266 = vector.broadcast %265 : vector<1x256xi32> to vector<256x256xi32>
    %267 = arith.cmpi eq, %9, %266 : vector<256x256xi32>
    %cst_89 = arith.constant 0.000000e+00 : f32
    %268 = vector.shape_cast %262 : vector<1x256xf32> to vector<1x256xf32>
    %269 = vector.broadcast %268 : vector<1x256xf32> to vector<256x256xf32>
    %270 = vector.broadcast %cst_89 : f32 to vector<256x256xf32>
    %271 = arith.select %267, %269, %270 : vector<256x256xi1>, vector<256x256xf32>
    %272 = arith.addf %246, %271 : vector<256x256xf32>
    %c1_i32_90 = arith.constant 1 : i32
    %273 = vector.broadcast %c1_i32_90 : i32 to vector<1x256xi32>
    %274 = arith.addi %215, %273 : vector<1x256xi32>
    %cst_91 = arith.constant 1.000000e+00 : f32
    %275 = vector.broadcast %cst_91 : f32 to vector<1x256xf32>
    %276 = arith.subf %275, %212 : vector<1x256xf32>
    %c0_i32_92 = arith.constant 0 : i32
    %277 = vector.broadcast %c0_i32_92 : i32 to vector<1x256xi32>
    %278 = arith.addi %214, %277 : vector<1x256xi32>
    %c0_i32_93 = arith.constant 0 : i32
    %279 = vector.broadcast %c0_i32_93 : i32 to vector<1x256xi32>
    %280 = arith.cmpi sge, %274, %279 : vector<1x256xi32>
    %c16_i32_94 = arith.constant 16 : i32
    %281 = vector.broadcast %c16_i32_94 : i32 to vector<1x256xi32>
    %282 = arith.cmpi slt, %274, %281 : vector<1x256xi32>
    %283 = arith.andi %280, %282 : vector<1x256xi1>
    %c0_i32_95 = arith.constant 0 : i32
    %284 = vector.broadcast %c0_i32_95 : i32 to vector<1x256xi32>
    %285 = arith.cmpi sge, %278, %284 : vector<1x256xi32>
    %286 = arith.andi %283, %285 : vector<1x256xi1>
    %c16_i32_96 = arith.constant 16 : i32
    %287 = vector.broadcast %c16_i32_96 : i32 to vector<1x256xi32>
    %288 = arith.cmpi slt, %278, %287 : vector<1x256xi32>
    %289 = arith.andi %286, %288 : vector<1x256xi1>
    %290 = arith.mulf %213, %276 : vector<1x256xf32>
    %cst_97 = arith.constant 0.000000e+00 : f32
    %291 = vector.broadcast %cst_97 : f32 to vector<1x256xf32>
    %292 = arith.select %289, %290, %291 : vector<1x256xi1>, vector<1x256xf32>
    %c16_i32_98 = arith.constant 16 : i32
    %293 = vector.broadcast %c16_i32_98 : i32 to vector<1x256xi32>
    %294 = arith.muli %274, %293 : vector<1x256xi32>
    %295 = arith.addi %294, %278 : vector<1x256xi32>
    %296 = vector.broadcast %295 : vector<1x256xi32> to vector<256x256xi32>
    %297 = arith.cmpi eq, %9, %296 : vector<256x256xi32>
    %cst_99 = arith.constant 0.000000e+00 : f32
    %298 = vector.shape_cast %292 : vector<1x256xf32> to vector<1x256xf32>
    %299 = vector.broadcast %298 : vector<1x256xf32> to vector<256x256xf32>
    %300 = vector.broadcast %cst_99 : f32 to vector<256x256xf32>
    %301 = arith.select %297, %299, %300 : vector<256x256xi1>, vector<256x256xf32>
    %302 = arith.addf %272, %301 : vector<256x256xf32>
    %c1_i32_100 = arith.constant 1 : i32
    %303 = vector.broadcast %c1_i32_100 : i32 to vector<1x256xi32>
    %304 = arith.addi %214, %303 : vector<1x256xi32>
    %c0_i32_101 = arith.constant 0 : i32
    %305 = vector.broadcast %c0_i32_101 : i32 to vector<1x256xi32>
    %306 = arith.cmpi sge, %274, %305 : vector<1x256xi32>
    %c16_i32_102 = arith.constant 16 : i32
    %307 = vector.broadcast %c16_i32_102 : i32 to vector<1x256xi32>
    %308 = arith.cmpi slt, %274, %307 : vector<1x256xi32>
    %309 = arith.andi %306, %308 : vector<1x256xi1>
    %c0_i32_103 = arith.constant 0 : i32
    %310 = vector.broadcast %c0_i32_103 : i32 to vector<1x256xi32>
    %311 = arith.cmpi sge, %304, %310 : vector<1x256xi32>
    %312 = arith.andi %309, %311 : vector<1x256xi1>
    %c16_i32_104 = arith.constant 16 : i32
    %313 = vector.broadcast %c16_i32_104 : i32 to vector<1x256xi32>
    %314 = arith.cmpi slt, %304, %313 : vector<1x256xi32>
    %315 = arith.andi %312, %314 : vector<1x256xi1>
    %316 = arith.mulf %213, %212 : vector<1x256xf32>
    %cst_105 = arith.constant 0.000000e+00 : f32
    %317 = vector.broadcast %cst_105 : f32 to vector<1x256xf32>
    %318 = arith.select %315, %316, %317 : vector<1x256xi1>, vector<1x256xf32>
    %c16_i32_106 = arith.constant 16 : i32
    %319 = vector.broadcast %c16_i32_106 : i32 to vector<1x256xi32>
    %320 = arith.muli %274, %319 : vector<1x256xi32>
    %321 = arith.addi %320, %304 : vector<1x256xi32>
    %322 = vector.broadcast %321 : vector<1x256xi32> to vector<256x256xi32>
    %323 = arith.cmpi eq, %9, %322 : vector<256x256xi32>
    %cst_107 = arith.constant 0.000000e+00 : f32
    %324 = vector.shape_cast %318 : vector<1x256xf32> to vector<1x256xf32>
    %325 = vector.broadcast %324 : vector<1x256xf32> to vector<256x256xf32>
    %326 = vector.broadcast %cst_107 : f32 to vector<256x256xf32>
    %327 = arith.select %323, %325, %326 : vector<256x256xi1>, vector<256x256xf32>
    %328 = arith.addf %302, %327 : vector<256x256xf32>
    %329 = arith.index_cast %c1_i32_57 : i32 to index
    %c0_108 = arith.constant 0 : index
    %c0_109 = arith.constant 0 : index
    %330 = vector.load %arg8[%329, %c0_108, %c0_109] : memref<2x256x48xf32, #tpu.memory_space<vmem>>, vector<1x256x48xf32>
    %331 = vector.shape_cast %330 : vector<1x256x48xf32> to vector<256x48xf32>
    %cst_110 = arith.constant dense<0.000000e+00> : vector<256x48xf32>
    %332 = tpu.matmul %328, %8, %cst_110 {dimension_numbers = #tpu.dot_dimension_numbers<[1], [0], [0], [1], [0, 0, 1, 1], [], []>} : vector<256x256xf32>, vector<256x48xf32>, vector<256x48xf32> -> vector<256x48xf32>
    %333 = arith.addf %331, %332 : vector<256x48xf32>
    %334 = arith.index_cast %c1_i32_57 : i32 to index
    %c0_111 = arith.constant 0 : index
    %c0_112 = arith.constant 0 : index
    %335 = vector.load %arg8[%334, %c0_111, %c0_112] : memref<2x256x48xf32, #tpu.memory_space<vmem>>, vector<1x256x48xf32>
    %336 = vector.shape_cast %335 : vector<1x256x48xf32> to vector<256x48xf32>
    %337 = vector.shape_cast %333 : vector<256x48xf32> to vector<1x256x48xf32>
    tpu.vector_store %arg8[%334, %c0_111, %c0_112], %337 {strides = array<i32>} : memref<2x256x48xf32, #tpu.memory_space<vmem>>, vector<1x256x48xf32>,
    %c2_i32_113 = arith.constant 2 : i32
    %c0_i32_114 = arith.constant 0 : i32
    %338 = arith.cmpi eq, %arg1, %c0_i32_114 : i32
    %339 = arith.extui %338 : i1 to i32
    %c0_i32_115 = arith.constant 0 : i32
    %340 = arith.cmpi ne, %339, %c0_i32_115 : i32
    scf.if %340 {
      %c0_116 = arith.constant 0 : index
      %c0_117 = arith.constant 0 : index
      %341 = vector.load %arg3[%c0_116, %c0_117] : memref<2x256xf32, #tpu.memory_space<vmem>>, vector<2x256xf32>
      %c0_118 = arith.constant 0 : index
      %c0_119 = arith.constant 0 : index
      %c0_120 = arith.constant 0 : index
      %342 = vector.load %arg8[%c0_118, %c0_119, %c0_120] : memref<2x256x48xf32, #tpu.memory_space<vmem>>, vector<1x256x48xf32>
      %343 = vector.shape_cast %342 : vector<1x256x48xf32> to vector<256x48xf32>
      %cst_121 = arith.constant dense<0.000000e+00> : vector<2x48xf32>
      %344 = tpu.matmul %341, %343, %cst_121 {dimension_numbers = #tpu.dot_dimension_numbers<[1], [0], [0], [1], [0, 0, 1, 1], [], []>} : vector<2x256xf32>, vector<256x48xf32>, vector<2x48xf32> -> vector<2x48xf32>
      %c0_122 = arith.constant 0 : index
      %c0_123 = arith.constant 0 : index
      %c0_124 = arith.constant 0 : index
      %345 = vector.load %arg7[%c0_122, %c0_123, %c0_124] : memref<2x2x48xf32, #tpu.memory_space<vmem>>, vector<1x2x48xf32>
      %346 = vector.shape_cast %345 : vector<1x2x48xf32> to vector<2x48xf32>
      %347 = vector.shape_cast %344 : vector<2x48xf32> to vector<1x2x48xf32>
      tpu.vector_store %arg7[%c0_122, %c0_123, %c0_124], %347 {strides = array<i32>} : memref<2x2x48xf32, #tpu.memory_space<vmem>>, vector<1x2x48xf32>,
      %c1 = arith.constant 1 : index
      %c0_125 = arith.constant 0 : index
      %c0_126 = arith.constant 0 : index
      %348 = vector.load %arg8[%c1, %c0_125, %c0_126] : memref<2x256x48xf32, #tpu.memory_space<vmem>>, vector<1x256x48xf32>
      %349 = vector.shape_cast %348 : vector<1x256x48xf32> to vector<256x48xf32>
      %cst_127 = arith.constant dense<0.000000e+00> : vector<2x48xf32>
      %350 = tpu.matmul %341, %349, %cst_127 {dimension_numbers = #tpu.dot_dimension_numbers<[1], [0], [0], [1], [0, 0, 1, 1], [], []>} : vector<2x256xf32>, vector<256x48xf32>, vector<2x48xf32> -> vector<2x48xf32>
      %c1_128 = arith.constant 1 : index
      %c0_129 = arith.constant 0 : index
      %c0_130 = arith.constant 0 : index
      %351 = vector.load %arg7[%c1_128, %c0_129, %c0_130] : memref<2x2x48xf32, #tpu.memory_space<vmem>>, vector<1x2x48xf32>
      %352 = vector.shape_cast %351 : vector<1x2x48xf32> to vector<2x48xf32>
      %353 = vector.shape_cast %350 : vector<2x48xf32> to vector<1x2x48xf32>
      tpu.vector_store %arg7[%c1_128, %c0_129, %c0_130], %353 {strides = array<i32>} : memref<2x2x48xf32, #tpu.memory_space<vmem>>, vector<1x2x48xf32>,
    } else {
    }
    return
  }
  func.func @transform_0(%arg0: i32, %arg1: i32) -> i32 {
    %c0_i32 = arith.constant 0 : i32
    %c0_i32_0 = arith.constant 0 : i32
    return %c0_i32 : i32
  }
  func.func @transform_1(%arg0: i32, %arg1: i32) -> (i32, i32) {
    %c0_i32 = arith.constant 0 : i32
    %c0_i32_0 = arith.constant 0 : i32
    %c0_i32_1 = arith.constant 0 : i32
    return %c0_i32, %c0_i32_0 : i32, i32
  }
  func.func @transform_2(%arg0: i32, %arg1: i32) -> (i32, i32) {
    %c0_i32 = arith.constant 0 : i32
    %c0_i32_0 = arith.constant 0 : i32
    return %c0_i32, %arg1 : i32, i32
  }
  func.func @transform_3(%arg0: i32, %arg1: i32) -> (i32, i32) {
    %c0_i32 = arith.constant 0 : i32
    %c0_i32_0 = arith.constant 0 : i32
    return %c0_i32, %arg1 : i32, i32
  }
  func.func @transform_4(%arg0: i32, %arg1: i32) -> (i32, i32) {
    %c0_i32 = arith.constant 0 : i32
    %c0_i32_0 = arith.constant 0 : i32
    %c0_i32_1 = arith.constant 0 : i32
    return %c0_i32, %c0_i32_0 : i32, i32
  }
  func.func @transform_5(%arg0: i32, %arg1: i32) -> (i32, i32, i32) {
    %c0_i32 = arith.constant 0 : i32
    %c0_i32_0 = arith.constant 0 : i32
    %c0_i32_1 = arith.constant 0 : i32
    return %arg0, %c0_i32, %c0_i32_0 : i32, i32, i32
  }
}

</mosaic_0001>

<bundles_post_ra>
// kernel: tpu_custom_call.1
= control target key start
LH: loop header
LB: loop body
LE: loop exit
PB: predicated region body
PF: predicated region fallthrough
CT: control target
= control target key end

     0   :  { %10 = vsyncpa [#allocation5], 0  ;;  %s5920_s0 = inlined_call_operand.vmem [shape: f32[16], index: 0, kind: input, shape index: {}]   ;;  %s5921_s1 = inlined_call_operand.vmem [shape: f32[2,256], index: 1, kind: input, shape index: {}]   ;;  %s5922_s2 = inlined_call_operand.vmem [shape: f32[1,256], index: 2, kind: input, shape index: {}]   ;;  %s5923_s3 = inlined_call_operand.vmem [shape: f32[1,256], index: 3, kind: input, shape index: {}]   ;;  %s5924_s4 = inlined_call_operand.vmem [shape: f32[256,48], index: 4, kind: input, shape index: {}]   ;;  %s5925_s5 = inlined_call_operand.hbm [shape: f32[8,2,48], index: 5, kind: output, shape index: {}]  }
   0x1   :  { %11 = vsyncpa [#allocation4], 0 }
   0x2   :  { %13 = vsyncpa [#allocation4 + $0x1], 0  ;;  %s3543_s18 = smov 0   ;;  %s3545_s19 = smov 0  }
   0x3   :  { %s3547_s20 = smov 0   ;;  %s3549_s21 = smov 0  }
   0x4   :  { %s3551_s22 = smov 0   ;;  %s3553_s23 = smov 0  }
   0x5 LB: > { %s3073_s24 = sadd.s32 4294967295, %s3505_s23   ;;  %s3074_s25 = sadd.s32 4294967294, %s3505_s23   ;;  %s3505_s23 = sphi %s3553_s23, %s19_s23   ;;  %s3501_s22 = sphi %s3551_s22, %s5954_s22   ;;  %s3497_s21 = sphi %s3549_s21, %s5953_s21   ;;  %s3493_s20 = sphi %s3547_s20, %s5952_s20   ;;  %s3489_s19 = sphi %s3545_s19, %s5951_s19   ;;  %s3485_s18 = sphi %s3543_s18, %s5950_s18  }
   0x6   : > { %s31_s26 = sadd.s32 1, %s3501_s22  ;;  %s153_s27 = sadd.s32 1, %s3493_s20 }
   0x7   : > { %p33_p0 = scmp.ge.s32.totalorder %s31_s26, 4  ;;  %p163_p1 = scmp.ne.s32.totalorder %s3493_s20, %s3489_s19 }
   0x8   : > { %p164_p2 = scmp.eq.s32.totalorder %s3073_s24, 3  ;;  %p169_p3 = scmp.ne.s32.totalorder %s3489_s19, %s3485_s18 }
   0x9   : > { %s5956_s26 = smov (%p33_p0, %s31_s26), 0  ;;  %p170_p5 = scmp.eq.s32.totalorder %s3074_s25, 3 }
   0xa   : > { %p3583_p4 = por %p164_p2, %p163_p1  ;;  %s150_s29 = ssub.s32 %s3501_s22, %s5956_s26 }
   0xb   : > { %p3075_p6 = scmp.ge.s32.totalorder %s3505_s23, 1  ;;  %p151_p7 = scmp.eq.s32.totalorder %s150_s29, 0 }
   0xc   : > { %p3590_p8 = por %p170_p5, %p169_p3  ;;  %p177_p9 = scmp.lt.s32.totalorder %s3505_s23, 5 }
   0xd   : > { %s3596_s6 = scalar_select %p151_p7, %s3493_s20, %s153_s27  }
   0xe   : > { %p3598_p10 = pnand %p3075_p6, %p177_p9  ;;  %p3602_p11 = scmp.eq.s32.totalorder %s3073_s24, 0 }
   0xf   : > { %s190_s11 = sshll.u32 %s5920_s0, 4  ;;  %s191_s11 = int_to_ptr.vmem [resolvable:$true] %s190_s11 }
  0x10   : > { %p3344_p12 = pneg %p3598_p10  ;;  %s3408_s12 = scalar_lea.vmem %s191_s11, 16 }
  0x11   : > { %p3409_p0 = scmp.ne.s32.totalorder %s191_s11, %s3408_s12  ;;  %p3416_p5 = scmp.lt.s32.totalorder %s191_s11, %s191_s11 }
  0x12   : > { %p3345_p13 = pnand %p3602_p11, %p3344_p12  ;;  %p3417_p6 = scmp.lt.s32.totalorder %s3408_s12, %s3408_s12 }
  0x14   : > { %p3410_p1 = pneg %p3345_p13  ;;  %p3418_p7 = por %p3417_p6, %p3416_p5 }
  0x16   : > { %p3411_p2 = pnand %p3410_p1, %p3409_p0 }
  0x18   : > { %p3412_p3 = pneg %p3411_p2 }
  0x1a   : > { %p3419_p9 = pnand %p3418_p7, %p3412_p3 }
  0x1c   : > { %3422 = shalt.err (!%p3419_p9)
}
  0x1d   : > { %s3507_s13 = smov [#allocation3]   ;;  %225 = sbr.rel (%p3598_p10) target bundleno = 909 (0x38d), region = 40 }
  0x1e   : > { %3347 = dma.vmem_to_smem (!%p3345_p13), %s191_s11, 16, %s3507_s13, [#allocation5]  }
  0x24   : > { %3476 = dma.done.wait (%p3602_p11), [#allocation5], 16  }
  0x25   : > { %3478 = vsyncadd (%p3602_p11), [#allocation5], 4294967280 }
  0x26   : > { %231 = sfence }
  0x27   : > { %v341_v0 = vld [vmem:[%s5924_s4] sm:$0xff]  ;;  %v342_v1 = vld [vmem:[%s5924_s4 + $0x8] sm:$0xff]  ;;  %v343_v2 = vld [vmem:[%s5924_s4 + $0x10] sm:$0xff]  ;;  %s3082_s27 = sshll.u32 %s3497_s21, 2  ;;  %v3508_v3 = vmov 0.0|0.0   ;;  %v373_v9 = vlaneseq }
  0x28   : > { %3170 = vmatprep.subr.bf16.mxu0 %v3508_v3  ;;  %3218 = vmatprep.subr.bf16.mxu1 %v3508_v3  ;;  %v3171_v4 = vpack.c.bf16 %v342_v1, %v341_v0  ;;  %v344_v5 = vld [vmem:[%s5924_s4 + $0x18] sm:$0xff]  ;;  %s3634_s8 = sld [smem:[#allocation3 + %s3082_s27]]  ;;  %s408_s9 = sadd.s32 1, %s3082_s27  ;;  %v345_v7 = vld [vmem:[%s5924_s4 + $0x20] sm:$0xff]  ;;  %v346_v8 = vld [vmem:[%s5924_s4 + $0x28] sm:$0xff] }
  0x29   : > { %s3636_s10 = sld [smem:[#allocation3 + %s408_s9]]  ;;  %s3097_s11 = sadd.s32 2, %s3082_s27  ;;  %v3174_v6 = vpack.c.bf16 %v344_v5, %v343_v2  ;;  %v3177_v10 = vpack.c.bf16 %v346_v8, %v345_v7  ;;  %v347_v11 = vld [vmem:[%s5924_s4 + $0x30] sm:$0xff]  ;;  %v348_v12 = vld [vmem:[%s5924_s4 + $0x38] sm:$0xff]  ;;  %v337_v16 = vld [vmem:[%s5922_s2] sm:$0x3] }
  0x2a   : > { %3172 = vmatpush1.bf16.msra.mxu0 %v3171_v4  ;;  %3220 = vmatpush1.bf16.msra.mxu1 %v3171_v4  ;;  %s3638_s12 = sld [smem:[#allocation3 + %s3097_s11]]  ;;  %s1576_s13 = sadd.s32 1, %s3097_s11  ;;  %v3665_v17 = vshrl.u32 %v373_v9, 7  ;;  %v3180_v19 = vpack.c.bf16 %v348_v12, %v347_v11  ;;  %v349_v20 = vld [vmem:[%s5924_s4 + $0x40] sm:$0xff]  ;;  %v350_v21 = vld [vmem:[%s5924_s4 + $0x48] sm:$0xff]  ;;  %v351_v26 = vld [vmem:[%s5924_s4 + $0x50] sm:$0xff] }
  0x2b   : > { %3173 = vmatprep.subr.bf16.mxu0 %v3508_v3  ;;  %3221 = vmatprep.subr.bf16.mxu1 %v3508_v3  ;;  %s3648_s24 = sld [smem:[#allocation3 + %s1576_s13]]  ;;  %v338_v22 = vld [vmem:[%s5923_s3] sm:$0x3]  ;;  %v352_v27 = vld [vmem:[%s5924_s4 + $0x58] sm:$0xff]  ;;  %v3183_v35 = vpack.c.bf16 %v350_v21, %v349_v20  ;;  %v354_v40 = vld [vmem:[%s5924_s4 + $0x68] sm:$0xff]  ;;  %s254_s27 = sand.u32 1, %s3489_s19  }
  0x2c   : > { %v3186_v38 = vpack.c.bf16 %v352_v27, %v351_v26  ;;  %v353_v39 = vld [vmem:[%s5924_s4 + $0x60] sm:$0xff]  ;;  %v3693_v41 = vsub.s32 0, %v3665_v17  ;;  %v355_v44 = vld [vmem:[%s5924_s4 + $0x70] sm:$0xff]  ;;  %v356_v45 = vld [vmem:[%s5924_s4 + $0x78] sm:$0xff]  ;;  %v3704_v48 = vsub.s32 1, %v3665_v17  ;;  %v3707_v49 = vadd.s32 8, %v3665_v17 }
  0x2d   : > { %v357_v50 = vld [vmem:[%s5924_s4 + $0x80] sm:$0xff]  ;;  %v358_v51 = vld [vmem:[%s5924_s4 + $0x88] sm:$0xff]  ;;  %v3716_v54 = vadd.s32 16, %v3665_v17  ;;  %v3719_v55 = vadd.s32 24, %v3665_v17  ;;  %v3189_v56 = vpack.c.bf16 %v354_v40, %v353_v39  ;;  %v359_v57 = vld [vmem:[%s5924_s4 + $0x90] sm:$0xff]  ;;  %v3731_v62 = vadd.s32 32, %v3665_v17 }
  0x2e   : > { %3175 = vmatpush1.bf16.msra.mxu0 %v3174_v6  ;;  %3223 = vmatpush1.bf16.msra.mxu1 %v3174_v6  ;;  %v410_v13 = vstv %s3634_s8  ;;  %v360_v58 = vld [vmem:[%s5924_s4 + $0x98] sm:$0xff]  ;;  %v361_v59 = vld [vmem:[%s5924_s4 + $0xa0] sm:$0xff]  ;;  %v3733_v63 = vpack.c.bf16 %v356_v45, %v355_v44  ;;  %v362_v0 = vld [vmem:[%s5924_s4 + $0xa8] sm:$0xff]  ;;  %v3745_v6 = vadd.s32 40, %v3665_v17  ;;  %v3749_v7 = vpack.c.bf16 %v358_v51, %v357_v50  ;;  %s3081_s29 = sshll.u32 %s254_s27, 2  ;;  %s5874_s15 = scalar_lea.sflag [#allocation4], %s254_s27 }
  0x2f   : > { %3176 = vmatprep.subr.bf16.mxu0 %v3508_v3  ;;  %3224 = vmatprep.subr.bf16.mxu1 %v3508_v3  ;;  %s415_s9 = ssub.f32 0.0, %s3636_s10  ;;  %v412_v14 = vstv %s3636_s10  ;;  %v411_v23 = vmul.f32 %v410_v13, %v337_v16  ;;  %v418_v29 = vmul.f32 %v410_v13, %v338_v22  ;;  %v363_v1 = vld [vmem:[%s5924_s4 + $0xb0] sm:$0xff]  ;;  %v364_v2 = vld [vmem:[%s5924_s4 + $0xb8] sm:$0xff]  ;;  %v365_v8 = vld [vmem:[%s5924_s4 + $0xc0] sm:$0xff]  ;;  %v3761_v13 = vadd.s32 48, %v3665_v17  ;;  %s256_s7 = scalar_lea.vmem [#allocation6], %s3081_s29 }
  0x30   : > { %v1578_v15 = vstv %s3638_s12  ;;  %v413_v28 = vmul.f32 %v412_v14, %v338_v22  ;;  %v366_v9 = vld [vmem:[%s5924_s4 + $0xc8] sm:$0xff]  ;;  %v3763_v14 = vpack.c.bf16 %v360_v58, %v359_v57  ;;  %v3775_v21 = vadd.s32 56, %v3665_v17 }
  0x31   : > { %v416_v18 = vstv %s415_s9  ;;  %s1583_s14 = ssub.f32 0.0, %s3648_s24  ;;  %v1580_v25 = vstv %s3648_s24  ;;  %v1579_v30 = vmul.f32 %v1578_v15, %v337_v16  ;;  %v1586_v34 = vmul.f32 %v1578_v15, %v338_v22  ;;  %v368_v15 = vld [vmem:[%s5924_s4 + $0xd8] sm:$0xff]  ;;  %s2977_s24 = sshll.u32 %s256_s7, 4  ;;  %s5867_s24 = int_to_ptr.vmem [resolvable:$true] %s2977_s24 }
  0x32   : > { %3178 = vmatpush1.bf16.msra.mxu0 %v3177_v10  ;;  %3226 = vmatpush1.bf16.msra.mxu1 %v3177_v10  ;;  %v417_v24 = vmul.f32 %v416_v18, %v337_v16  ;;  %v1581_v32 = vmul.f32 %v1580_v25, %v338_v22  ;;  %v414_v36 = vadd.f32 %v413_v28, %v411_v23  ;;  %v367_v10 = vld [vmem:[%s5924_s4 + $0xd0] sm:$0xff]  ;;  %v370_v18 = vld [vmem:[%s5924_s4 + $0xe8] sm:$0xff]  ;;  %v372_v25 = vld [vmem:[%s5924_s4 + $0xf8] sm:$0xff]  ;;  %v3801_v39 = vadd.s32 72, %v3665_v17  ;;  %s3098_s9 = sshll.u32 %s3497_s21, 6  ;;  %s3423_s16 = scalar_lea.vmem %s5867_s24, 64 }
  0x33   : > { %3179 = vmatprep.subr.bf16.mxu0 %v3508_v3  ;;  %3227 = vmatprep.subr.bf16.mxu1 %v3508_v3  ;;  %v1584_v31 = vstv %s1583_s14  ;;  %v3777_v22 = vpack.c.bf16 %v362_v0, %v361_v59  ;;  %v3779_v23 = vpack.c.bf16 %v364_v2, %v363_v1  ;;  %v3787_v28 = vpack.c.bf16 %v366_v9, %v365_v8  ;;  %s5872_s14 = scalar_lea.hbm %s5925_s5, %s3098_s9  ;;  %p3424_p10 = scmp.ne.s32.totalorder %s5867_s24, %s3423_s16 }
  0x34   : > { %v1585_v33 = vmul.f32 %v1584_v31, %v337_v16  ;;  %v419_v37 = vadd.f32 %v418_v29, %v417_v24  ;;  %v1582_v42 = vadd.f32 %v1581_v32, %v1579_v30  ;;  %v420_v46 = vadd.f32 1.0, %v414_v36  ;;  %v369_v16 = vld [vmem:[%s5924_s4 + $0xe0] sm:$0xff]  ;;  %v371_v24 = vld [vmem:[%s5924_s4 + $0xf0] sm:$0xff]  ;;  %s3510_s21 = smov [#allocation6]  }
  0x35   : > { %v3790_v31 = vadd.s32 64, %v3665_v17  ;;  %v3794_v32 = vpack.c.bf16 %v368_v15, %v367_v10  ;;  %v3798_v36 = vpack.c.bf16 %v372_v25, %v371_v24  ;;  %p3425_p11 = pnand %p3424_p10, %p3583_p4  ;;  %s3427_s8 = sshll.u32 %s3510_s21, 4  ;;  %s3428_s8 = int_to_ptr.vmem [resolvable:$false] %s3427_s8 }
  0x36   : > { %3181 = vmatpush1.bf16.msra.mxu0 %v3180_v19  ;;  %3229 = vmatpush1.bf16.msra.mxu1 %v3180_v19  ;;  %v1587_v43 = vadd.f32 %v1586_v34, %v1585_v33  ;;  %v424_v47 = vadd.f32 1.0, %v419_v37  ;;  %v1588_v52 = vadd.f32 1.0, %v1582_v42  ;;  %v421_v60 = vmul.f32 16.0, %v420_v46  ;;  %s3429_s17 = scalar_lea.vmem %s3428_s8, 128  ;;  %p3430_p13 = scmp.lt.s32.totalorder %s5867_s24, %s3428_s8 }
  0x37   : > { %3182 = vmatprep.subr.bf16.mxu0 %v3508_v3  ;;  %3230 = vmatprep.subr.bf16.mxu1 %v3508_v3  ;;  %v3796_v33 = vpack.c.bf16 %v370_v18, %v369_v16  ;;  %p3426_p12 = pneg %p3425_p11  ;;  %p3431_p0 = scmp.lt.s32.totalorder %s3429_s17, %s3423_s16 }
  0x38   : > { %v1592_v53 = vadd.f32 1.0, %v1587_v43  ;;  %v425_v61 = vmul.f32 16.0, %v424_v47  ;;  %v1589_v4 = vmul.f32 16.0, %v1588_v52  ;;  %v3083_v11 = vadd.f32 -1.0, %v421_v60 }
  0x39   : > { %p3432_p1 = por %p3431_p0, %p3430_p13 }
  0x3a   : > { %3184 = vmatpush1.bf16.msra.mxu0 %v3183_v35  ;;  %3232 = vmatpush1.bf16.msra.mxu1 %v3183_v35  ;;  %v1593_v5 = vmul.f32 16.0, %v1592_v53  ;;  %v3084_v12 = vadd.f32 -1.0, %v425_v61  ;;  %v3087_v19 = vadd.f32 -1.0, %v1589_v4  ;;  %v423_v26 = vmul.f32 0.5, %v3083_v11 }
  0x3b   : > { %3185 = vmatprep.subr.bf16.mxu0 %v3508_v3  ;;  %3233 = vmatprep.subr.bf16.mxu1 %v3508_v3  ;;  %p3433_p2 = pnand %p3432_p1, %p3426_p12 }
  0x3c   : > { %v3088_v20 = vadd.f32 -1.0, %v1593_v5  ;;  %v427_v27 = vmul.f32 0.5, %v3084_v12  ;;  %v1591_v29 = vmul.f32 0.5, %v3087_v19  ;;  %v428_v34 = vfloor.f32 %v423_v26 }
  0x3e   : > { %3187 = vmatpush1.bf16.msra.mxu0 %v3186_v38  ;;  %3235 = vmatpush1.bf16.msra.mxu1 %v3186_v38  ;;  %v1595_v30 = vmul.f32 0.5, %v3088_v20  ;;  %v429_v35 = vfloor.f32 %v427_v27  ;;  %v1596_v37 = vfloor.f32 %v1591_v29  ;;  %v430_v40 = vsub.f32 %v423_v26, %v428_v34 }
  0x3f   : > { %3188 = vmatprep.subr.bf16.mxu0 %v3508_v3  ;;  %3236 = vmatprep.subr.bf16.mxu1 %v3508_v3  ;;  %v3330_v43 = vtrunc.f32 %v428_v34 }
  0x40   : > { %v1597_v38 = vfloor.f32 %v1595_v30  ;;  %v431_v42 = vsub.f32 %v427_v27, %v429_v35  ;;  %v3332_v44 = vtrunc.f32 %v429_v35  ;;  %v3803_v45 = vsub.f32 %v1591_v29, %v1596_v37 }
  0x41   : > { %v3334_v47 = vtrunc.f32 %v1596_v37  ;;  %v3331_v51 = vcvt.f32.s32 %v3330_v43  ;;  %v435_v57 = vsub.f32 1.0, %v430_v40 }
  0x42   : > { %3190 = vmatpush1.bf16.msra.mxu0 %v3189_v56  ;;  %3238 = vmatpush1.bf16.msra.mxu1 %v3189_v56  ;;  %v3805_v46 = vsub.f32 %v1595_v30, %v1597_v38  ;;  %v3336_v50 = vtrunc.f32 %v1597_v38  ;;  %v3333_v52 = vcvt.f32.s32 %v3332_v44  ;;  %v434_v53 = vsub.f32 1.0, %v431_v42 }
  0x43   : > { %3191 = vmatprep.subr.bf16.mxu0 %v3508_v3  ;;  %3239 = vmatprep.subr.bf16.mxu1 %v3508_v3  ;;  %v3809_v58 = vmul.f32 %v431_v42, %v430_v40  ;;  %v3811_v59 = vcvt.f32.s32 %v3334_v47  ;;  %vm439_vm2 = vcmp.ge.s32.totalorder %v3331_v51, 0  ;;  %vm441_vm3 = vcmp.lt.s32.totalorder %v3331_v51, 16 }
  0x44   : > { %v3813_v60 = vcvt.f32.s32 %v3336_v50  ;;  %v1602_v56 = vsub.f32 1.0, %v3805_v46  ;;  %vm436_vm0 = vcmp.ge.s32.totalorder %v3333_v52, 0  ;;  %vm437_vm1 = vcmp.lt.s32.totalorder %v3333_v52, 16 }
  0x45   : > { %vm3818_vm4 = vmand %vm436_vm0, %vm437_vm1  ;;  %v443_v0 = vmul.f32 %v435_v57, %v434_v53  ;;  %v445_v1 = vmul.u32 16, %v3333_v52  ;;  %v594_v2 = vadd.s32 1, %v3331_v51  ;;  %v599_v4 = vmul.f32 %v434_v53, %v430_v40 }
  0x46   : > { %3193 = vmatpush1.bf16.msra.mxu0 %v3733_v63  ;;  %3241 = vmatpush1.bf16.msra.mxu1 %v3733_v63  ;;  %vm440_vm5 = vmand %vm3818_vm4, %vm439_vm2  ;;  %v813_v5 = vadd.s32 1, %v3333_v52  ;;  %v819_v8 = vmul.f32 %v435_v57, %v431_v42  ;;  %v1603_v63 = vsub.f32 1.0, %v3803_v45  ;;  %vm1604_vm6 = vcmp.ge.s32.totalorder %v3813_v60, 0 }
  0x47   : > { %3194 = vmatprep.subr.bf16.mxu0 %v3508_v3  ;;  %3242 = vmatprep.subr.bf16.mxu1 %v3508_v3  ;;  %vm442_vm7 = vmand %vm440_vm5, %vm441_vm3  ;;  %v3830_v9 = vadd.s32 %v3331_v51, %v445_v1  ;;  %vm595_vm8 = vcmp.ge.s32.totalorder %v594_v2, 0  ;;  %vm597_vm9 = vcmp.lt.s32.totalorder %v594_v2, 16  ;;  %v3832_v10 = vadd.s32 %v594_v2, %v445_v1 }
  0x48   : > { %v444_v11 = vsel %vm442_vm7, %v443_v0, 0.0  ;;  %vm596_vm10 = vmand %vm3818_vm4, %vm595_vm8  ;;  %vm814_vm11 = vcmp.ge.s32.totalorder %v813_v5, 0  ;;  %vm815_vm12 = vcmp.lt.s32.totalorder %v813_v5, 16  ;;  %v821_v12 = vmul.u32 16, %v813_v5 }
  0x49   : > { %v3841_v15 = vrot.slane %v3830_v9, %v3704_v48  ;;  %v3844_v16 = vrot.slane %v444_v11, %v3693_v41  ;;  %v3847_v18 = vrot.slane %v444_v11, %v3704_v48  ;;  %vm598_vm13 = vmand %vm596_vm10, %vm597_vm9  ;;  %vm1605_vm14 = vcmp.lt.s32.totalorder %v3813_v60, 16 }
  0x4a   : > { %3196 = vmatpush1.bf16.msra.mxu0 %v3749_v7  ;;  %3244 = vmatpush1.bf16.msra.mxu1 %v3749_v7  ;;  %v600_v19 = vsel %vm598_vm13, %v599_v4, 0.0  ;;  %v3855_v7 = vrot.slane %v3832_v10, %v3704_v48  ;;  %vm3857_vm15 = vmand %vm814_vm11, %vm815_vm12  ;;  %v3861_v24 = vadd.s32 %v3331_v51, %v821_v12  ;;  %v3863_v25 = vadd.s32 %v821_v12, %v594_v2 }
  0x4b   : > { %3197 = vmatprep.subr.bf16.mxu0 %v3508_v3  ;;  %3245 = vmatprep.subr.bf16.mxu1 %v3508_v3  ;;  %vm456_vm0 = vcmp.eq.s32.totalorder %v3665_v17, %v3841_v15  ;;  %v3868_v26 = vrot.slane %v600_v19, %v3693_v41  ;;  %v3871_v27 = vrot.slane %v600_v19, %v3704_v48  ;;  %vm817_vm1 = vmand %vm3857_vm15, %vm439_vm2  ;;  %vm1607_vm4 = vcmp.ge.s32.totalorder %v3811_v59, 0 }
  0x4c   : > { %v531_v29 = vsel %vm456_vm0, %v3847_v18, 0.0  ;;  %vm611_vm5 = vcmp.eq.s32.totalorder %v3665_v17, %v3855_v7  ;;  %vm818_vm7 = vmand %vm817_vm1, %vm441_vm3  ;;  %v3883_v30 = vrot.slane %v3861_v24, %v3704_v48  ;;  %v3887_v34 = vrot.slane %v3863_v25, %v3704_v48 }
  0x4d   : > { %v686_v35 = vsel %vm611_vm5, %v3871_v27, 0.0  ;;  %v820_v37 = vsel %vm818_vm7, %v819_v8, 0.0  ;;  %vm1034_vm2 = vmand %vm3857_vm15, %vm595_vm8  ;;  %vm1609_vm3 = vcmp.lt.s32.totalorder %v3811_v59, 16  ;;  %v1611_v38 = vmul.f32 %v1603_v63, %v1602_v56 }
  0x4e   : > { %3199 = vmatpush1.bf16.msra.mxu0 %v3763_v14  ;;  %3247 = vmatpush1.bf16.msra.mxu1 %v3763_v14  ;;  %v750_v40 = vadd.f32 %v686_v35, %v531_v29  ;;  %vm832_vm10 = vcmp.eq.s32.totalorder %v3665_v17, %v3883_v30  ;;  %v3905_v14 = vrot.slane %v820_v37, %v3693_v41  ;;  %vm1035_vm8 = vmand %vm1034_vm2, %vm597_vm9  ;;  %v1613_v42 = vmul.u32 16, %v3813_v60 }
  0x4f   : > { %3200 = vmatprep.subr.bf16.mxu0 %v3508_v3  ;;  %3248 = vmatprep.subr.bf16.mxu1 %v3508_v3  ;;  %v3910_v43 = vrot.slane %v820_v37, %v3704_v48  ;;  %v1037_v44 = vsel %vm1035_vm8, %v3809_v58, 0.0  ;;  %vm1048_vm11 = vcmp.eq.s32.totalorder %v3665_v17, %v3887_v34  ;;  %vm3919_vm12 = vmand %vm1604_vm6, %vm1605_vm14  ;;  %v3924_v50 = vadd.s32 1, %v3811_v59 }
  0x50   : > { %v3927_v51 = vrot.slane %v1037_v44, %v3693_v41  ;;  %v3930_v52 = vrot.slane %v1037_v44, %v3704_v48  ;;  %vm1608_vm9 = vmand %vm3919_vm12, %vm1607_vm4  ;;  %v3937_v53 = vadd.s32 %v3811_v59, %v1613_v42  ;;  %v1767_v57 = vmul.f32 %v1602_v56, %v3803_v45 }
  0x51   : > { %v907_v58 = vsel %vm832_vm10, %v3910_v43, 0.0  ;;  %vm1610_vm6 = vmand %vm1608_vm9, %vm1609_vm3  ;;  %vm1763_vm13 = vcmp.ge.s32.totalorder %v3924_v50, 0  ;;  %vm1765_vm14 = vcmp.lt.s32.totalorder %v3924_v50, 16  ;;  %v3953_v61 = vadd.s32 %v3924_v50, %v1613_v42 }
  0x52   : > { %3202 = vmatpush1.bf16.msra.mxu0 %v3777_v22  ;;  %3250 = vmatpush1.bf16.msra.mxu1 %v3777_v22  ;;  %v971_v22 = vadd.f32 %v907_v58, %v750_v40  ;;  %v1123_v56 = vsel %vm1048_vm11, %v3930_v52, 0.0  ;;  %v1612_v0 = vsel %vm1610_vm6, %v1611_v38, 0.0  ;;  %v3963_v1 = vrot.slane %v3937_v53, %v3704_v48  ;;  %vm1764_vm15 = vmand %vm3919_vm12, %vm1763_vm13 }
  0x53   : > { %3203 = vmatprep.subr.bf16.mxu0 %v3508_v3  ;;  %3251 = vmatprep.subr.bf16.mxu1 %v3508_v3  ;;  %v3970_v2 = vrot.slane %v1612_v0, %v3693_v41  ;;  %v3973_v4 = vrot.slane %v1612_v0, %v3704_v48  ;;  %vm1766_vm0 = vmand %vm1764_vm15, %vm1765_vm14  ;;  %v3979_v5 = vrot.slane %v3953_v61, %v3704_v48  ;;  %v1981_v8 = vadd.s32 1, %v3813_v60 }
  0x54   : > { %v1187_v11 = vadd.f32 %v1123_v56, %v971_v22  ;;  %vm1624_vm1 = vcmp.eq.s32.totalorder %v3665_v17, %v3963_v1  ;;  %v1768_v12 = vsel %vm1766_vm0, %v1767_v57, 0.0  ;;  %v1987_v19 = vmul.f32 %v1603_v63, %v3805_v46 }
  0x55   : > { %v1699_v20 = vsel %vm1624_vm1, %v3973_v4, 0.0  ;;  %vm1779_vm5 = vcmp.eq.s32.totalorder %v3665_v17, %v3979_v5  ;;  %v3993_v60 = vrot.slane %v1768_v12, %v3693_v41  ;;  %v3996_v29 = vrot.slane %v1768_v12, %v3704_v48 }
  0x56   : > { %3205 = vmatpush1.bf16.msra.mxu0 %v3779_v23  ;;  %3253 = vmatpush1.bf16.msra.mxu1 %v3779_v23  ;;  %vm1982_vm7 = vcmp.ge.s32.totalorder %v1981_v8, 0  ;;  %vm1983_vm2 = vcmp.lt.s32.totalorder %v1981_v8, 16  ;;  %v1989_v63 = vmul.u32 16, %v1981_v8  ;;  %v2204_v23 = vmul.f32 %v3805_v46, %v3803_v45 }
  0x57   : > { %3206 = vmatprep.subr.bf16.mxu0 %v3508_v3  ;;  %3254 = vmatprep.subr.bf16.mxu1 %v3508_v3  ;;  %v1854_v35 = vsel %vm1779_vm5, %v3996_v29, 0.0  ;;  %vm4003_vm10 = vmand %vm1982_vm7, %vm1983_vm2  ;;  %v4009_v38 = vrot.slane %v3830_v9, %v3693_v41  ;;  %v4013_v40 = vrot.slane %v3832_v10, %v3693_v41  ;;  %v4017_v42 = vrot.slane %v3861_v24, %v3693_v41 }
  0x58   : > { %1346 = vmatprep.mubr.f32.mxu0 %v1187_v11  ;;  %v1918_v45 = vadd.f32 %v1854_v35, %v1699_v20  ;;  %vm1985_vm8 = vmand %vm4003_vm10, %vm1607_vm4  ;;  %v1990_v46 = vadd.s32 %v3811_v59, %v1989_v63  ;;  %v2206_v44 = vadd.s32 %v1989_v63, %v3924_v50  ;;  %v4027_v9 = vrot.slane %v3863_v25, %v3693_v41 }
  0x59   : > { %vm1986_vm11 = vmand %vm1985_vm8, %vm1609_vm3  ;;  %vm455_vm12 = vcmp.eq.s32.totalorder %v3665_v17, %v4009_v38  ;;  %vm610_vm4 = vcmp.eq.s32.totalorder %v3665_v17, %v4013_v40  ;;  %vm831_vm9 = vcmp.eq.s32.totalorder %v3665_v17, %v4017_v42  ;;  %v4040_v10 = vadd.s32 80, %v3665_v17 }
  0x5a   : > { %3208 = vmatpush1.bf16.msra.mxu0 %v3787_v28  ;;  %3256 = vmatpush1.bf16.msra.mxu1 %v3787_v28  ;;  %v1988_v28 = vsel %vm1986_vm11, %v1987_v19, 0.0  ;;  %v4045_v59 = vrot.slane %v1990_v46, %v3704_v48  ;;  %vm2202_vm3 = vmand %vm4003_vm10, %vm1763_vm13  ;;  %v4052_v24 = vrot.slane %v2206_v44, %v3704_v48  ;;  %v530_v25 = vsel %vm455_vm12, %v3844_v16, 0.0 }
  0x5b   : > { %3209 = vmatprep.subr.bf16.mxu0 %v3508_v3  ;;  %3257 = vmatprep.subr.bf16.mxu1 %v3508_v3  ;;  %v4056_v47 = vrot.slane %v1988_v28, %v3693_v41  ;;  %v4059_v57 = vrot.slane %v1988_v28, %v3704_v48  ;;  %vm2203_vm6 = vmand %vm2202_vm3, %vm1765_vm14  ;;  %v685_v58 = vsel %vm610_vm4, %v3868_v26, 0.0  ;;  %v906_v22 = vsel %vm831_vm9, %v3905_v14, 0.0 }
  0x5c   : > { %vm2000_vm13 = vcmp.eq.s32.totalorder %v3665_v17, %v4045_v59  ;;  %v2205_v56 = vsel %vm2203_vm6, %v2204_v23, 0.0  ;;  %vm2216_vm15 = vcmp.eq.s32.totalorder %v3665_v17, %v4052_v24  ;;  %v749_v0 = vadd.f32 %v685_v58, %v530_v25 }
  0x5d   : > { %v2075_v8 = vsel %vm2000_vm13, %v4059_v57, 0.0  ;;  %v4073_v50 = vrot.slane %v2205_v56, %v3693_v41  ;;  %v4076_v11 = vrot.slane %v2205_v56, %v3704_v48  ;;  %vm1047_vm14 = vcmp.eq.s32.totalorder %v3665_v17, %v4027_v9 }
  0x5e   : > { %3211 = vmatpush1.bf16.msra.mxu0 %v3794_v32  ;;  %3259 = vmatpush1.bf16.msra.mxu1 %v3794_v32  ;;  %v2139_v12 = vadd.f32 %v2075_v8, %v1918_v45  ;;  %v970_v19 = vadd.f32 %v906_v22, %v749_v0  ;;  %v1122_v20 = vsel %vm1047_vm14, %v3927_v51, 0.0  ;;  %v4085_v32 = vrot.slane %v3937_v53, %v3693_v41 }
  0x5f   : > { %3212 = vmatprep.subr.bf16.mxu0 %v3508_v3  ;;  %3260 = vmatprep.subr.bf16.mxu1 %v3508_v3  ;;  %v2291_v63 = vsel %vm2216_vm15, %v4076_v11, 0.0  ;;  %v4090_v48 = vrot.slane %v3953_v61, %v3693_v41  ;;  %v4093_v23 = vrot.slane %v1990_v46, %v3693_v41  ;;  %v4096_v35 = vrot.slane %v2206_v44, %v3693_v41 }
  0x60   : > { %v2355_v37 = vadd.f32 %v2291_v63, %v2139_v12  ;;  %v1186_v45 = vadd.f32 %v1122_v20, %v970_v19  ;;  %vm1623_vm0 = vcmp.eq.s32.totalorder %v3665_v17, %v4085_v32  ;;  %vm458_vm1 = vcmp.eq.s32.totalorder %v3707_v49, %v3841_v15 }
  0x61   : > { %v1698_v53 = vsel %vm1623_vm0, %v3970_v2, 0.0  ;;  %vm1778_vm5 = vcmp.eq.s32.totalorder %v3665_v17, %v4090_v48  ;;  %vm1999_vm7 = vcmp.eq.s32.totalorder %v3665_v17, %v4093_v23  ;;  %vm2215_vm2 = vcmp.eq.s32.totalorder %v3665_v17, %v4096_v35 }
  0x62   : > { %3214 = vmatpush1.bf16.msra.mxu0 %v3796_v33  ;;  %3262 = vmatpush1.bf16.msra.mxu1 %v3796_v33  ;;  %v1853_v41 = vsel %vm1778_vm5, %v3993_v60, 0.0  ;;  %v2074_v61 = vsel %vm1999_vm7, %v4056_v47, 0.0  ;;  %v2290_v33 = vsel %vm2215_vm2, %v4073_v50, 0.0  ;;  %v533_v46 = vsel %vm458_vm1, %v3847_v18, 0.0 }
  0x63   : > { %3215 = vmatprep.subr.bf16.mxu0 %v3508_v3  ;;  %3263 = vmatprep.subr.bf16.mxu1 %v3508_v3  ;;  %v1917_v44 = vadd.f32 %v1853_v41, %v1698_v53  ;;  %vm613_vm10 = vcmp.eq.s32.totalorder %v3707_v49, %v3855_v7  ;;  %vm834_vm8 = vcmp.eq.s32.totalorder %v3707_v49, %v3883_v30 }
  0x64   : > { %2515 = vmatprep.mubr.f32.mxu1 %v2355_v37  ;;  %vm1050_vm11 = vcmp.eq.s32.totalorder %v3707_v49, %v3887_v34  ;;  %v688_v3 = vsel %vm613_vm10, %v3871_v27, 0.0  ;;  %v909_v28 = vsel %vm834_vm8, %v3910_v43, 0.0  ;;  %vm1626_vm12 = vcmp.eq.s32.totalorder %v3707_v49, %v3963_v1 }
  0x65   : > { %v1125_v25 = vsel %vm1050_vm11, %v3930_v52, 0.0  ;;  %v2138_v58 = vadd.f32 %v2074_v61, %v1917_v44  ;;  %v752_v22 = vadd.f32 %v688_v3, %v533_v46  ;;  %v1701_v56 = vsel %vm1626_vm12, %v3973_v4, 0.0 }
  0x66   : > { %3217 = vmatpush1.bf16.msra.mxu0 %v3798_v36  ;;  %3265 = vmatpush1.bf16.msra.mxu1 %v3798_v36  ;;  %vm1781_vm4 = vcmp.eq.s32.totalorder %v3707_v49, %v3979_v5  ;;  %vm2002_vm9 = vcmp.eq.s32.totalorder %v3707_v49, %v4045_v59  ;;  %vm2218_vm3 = vcmp.eq.s32.totalorder %v3707_v49, %v4052_v24 }
  0x67   : > { %v1856_v0 = vsel %vm1781_vm4, %v3996_v29, 0.0  ;;  %vm457_vm6 = vcmp.eq.s32.totalorder %v3707_v49, %v4009_v38  ;;  %v2354_v8 = vadd.f32 %v2290_v33, %v2138_v58  ;;  %v973_v36 = vadd.f32 %v909_v28, %v752_v22 }
  0x68   : > { %v1920_v12 = vadd.f32 %v1856_v0, %v1701_v56  ;;  %v2077_v19 = vsel %vm2002_vm9, %v4059_v57, 0.0  ;;  %v2293_v20 = vsel %vm2218_vm3, %v4076_v11, 0.0  ;;  %v532_v63 = vsel %vm457_vm6, %v3844_v16, 0.0 }
  0x69   : > { %1347 = vmatmul.mubr.f32.vlgmr.msra.gmra.mrb[0].mxu0 %v1186_v45  ;;  %vm612_vm13 = vcmp.eq.s32.totalorder %v3707_v49, %v4013_v40  ;;  %vm833_vm15 = vcmp.eq.s32.totalorder %v3707_v49, %v4017_v42  ;;  %2516 = vmatmul.mubr.f32.vlgmr.msra.gmra.mrb[0].mxu1 %v2354_v8  ;;  %v1189_v37 = vadd.f32 %v1125_v25, %v973_v36 }
  0x6a   : > { %v2141_v53 = vadd.f32 %v2077_v19, %v1920_v12  ;;  %v687_v41 = vsel %vm612_vm13, %v3868_v26, 0.0  ;;  %v908_v61 = vsel %vm833_vm15, %v3905_v14, 0.0  ;;  %vm1049_vm14 = vcmp.eq.s32.totalorder %v3707_v49, %v4027_v9 }
  0x6b   : > { %v751_v33 = vadd.f32 %v687_v41, %v532_v63  ;;  %vm1625_vm0 = vcmp.eq.s32.totalorder %v3707_v49, %v4085_v32  ;;  %vm1780_vm1 = vcmp.eq.s32.totalorder %v3707_v49, %v4090_v48  ;;  %1351 = vmatprep.mubr.f32.mxu0 %v1189_v37  ;;  %v1124_v46 = vsel %vm1049_vm14, %v3927_v51, 0.0 }
  0x6c   : > { %v2357_v45 = vadd.f32 %v2293_v20, %v2141_v53  ;;  %v1700_v44 = vsel %vm1625_vm0, %v3970_v2, 0.0  ;;  %v1855_v3 = vsel %vm1780_vm1, %v3993_v60, 0.0  ;;  %vm2001_vm5 = vcmp.eq.s32.totalorder %v3707_v49, %v4093_v23 }
  0x6d   : > { %v972_v28 = vadd.f32 %v908_v61, %v751_v33  ;;  %v1919_v25 = vadd.f32 %v1855_v3, %v1700_v44  ;;  %vm2217_vm7 = vcmp.eq.s32.totalorder %v3707_v49, %v4096_v35  ;;  %v2076_v58 = vsel %vm2001_vm5, %v4056_v47, 0.0 }
  0x6e   : > { %2520 = vmatprep.mubr.f32.mxu1 %v2357_v45  ;;  %v2292_v22 = vsel %vm2217_vm7, %v4073_v50, 0.0  ;;  %vm460_vm2 = vcmp.eq.s32.totalorder %v3716_v54, %v3841_v15  ;;  %vm615_vm10 = vcmp.eq.s32.totalorder %v3716_v54, %v3855_v7  ;;  %vm836_vm8 = vcmp.eq.s32.totalorder %v3716_v54, %v3883_v30 }
  0x6f   : > { %v1188_v56 = vadd.f32 %v1124_v46, %v972_v28  ;;  %v2140_v0 = vadd.f32 %v2076_v58, %v1919_v25  ;;  %v535_v8 = vsel %vm460_vm2, %v3847_v18, 0.0  ;;  %v690_v36 = vsel %vm615_vm10, %v3871_v27, 0.0 }
  0x70   : > { %v754_v12 = vadd.f32 %v690_v36, %v535_v8  ;;  %vm1052_vm11 = vcmp.eq.s32.totalorder %v3716_v54, %v3887_v34  ;;  %vm1628_vm12 = vcmp.eq.s32.totalorder %v3716_v54, %v3963_v1  ;;  %v911_v19 = vsel %vm836_vm8, %v3910_v43, 0.0 }
  0x71   : > { %1352 = vmatmul.mubr.f32.gmra.mrb[2].mxu0 %v1188_v56  ;;  %v2356_v49 = vadd.f32 %v2292_v22, %v2140_v0  ;;  %v1127_v20 = vsel %vm1052_vm11, %v3930_v52, 0.0  ;;  %v1703_v63 = vsel %vm1628_vm12, %v3973_v4, 0.0  ;;  %vm1783_vm4 = vcmp.eq.s32.totalorder %v3716_v54, %v3979_v5 }
  0x72   : > { %v975_v37 = vadd.f32 %v911_v19, %v754_v12  ;;  %vm2004_vm9 = vcmp.eq.s32.totalorder %v3716_v54, %v4045_v59  ;;  %vm2220_vm3 = vcmp.eq.s32.totalorder %v3716_v54, %v4052_v24  ;;  %v1858_v53 = vsel %vm1783_vm4, %v3996_v29, 0.0 }
  0x73   : > { %2521 = vmatmul.mubr.f32.gmra.mrb[2].mxu1 %v2356_v49  ;;  %v2079_v41 = vsel %vm2004_vm9, %v4059_v57, 0.0  ;;  %v2295_v61 = vsel %vm2220_vm3, %v4076_v11, 0.0  ;;  %vm459_vm6 = vcmp.eq.s32.totalorder %v3716_v54, %v4009_v38  ;;  %v1922_v45 = vadd.f32 %v1858_v53, %v1703_v63 }
  0x74   : > { %v1191_v33 = vadd.f32 %v1127_v20, %v975_v37  ;;  %v534_v46 = vsel %vm459_vm6, %v3844_v16, 0.0  ;;  %vm614_vm13 = vcmp.eq.s32.totalorder %v3716_v54, %v4013_v40  ;;  %vm835_vm15 = vcmp.eq.s32.totalorder %v3716_v54, %v4017_v42 }
  0x75   : > { %v689_v44 = vsel %vm614_vm13, %v3868_v26, 0.0  ;;  %vm1051_vm14 = vcmp.eq.s32.totalorder %v3716_v54, %v4027_v9  ;;  %vm1627_vm0 = vcmp.eq.s32.totalorder %v3716_v54, %v4085_v32  ;;  %v2143_v3 = vadd.f32 %v2079_v41, %v1922_v45 }
  0x76   : > { %1356 = vmatprep.mubr.f32.mxu0 %v1191_v33  ;;  %v753_v28 = vadd.f32 %v689_v44, %v534_v46  ;;  %v910_v25 = vsel %vm835_vm15, %v3905_v14, 0.0  ;;  %v1126_v58 = vsel %vm1051_vm14, %v3927_v51, 0.0  ;;  %v1702_v22 = vsel %vm1627_vm0, %v3970_v2, 0.0 }
  0x77   : > { %vm1782_vm1 = vcmp.eq.s32.totalorder %v3716_v54, %v4090_v48  ;;  %vm2003_vm5 = vcmp.eq.s32.totalorder %v3716_v54, %v4093_v23  ;;  %vm2219_vm7 = vcmp.eq.s32.totalorder %v3716_v54, %v4096_v35  ;;  %v2359_v56 = vadd.f32 %v2295_v61, %v2143_v3 }
  0x78   : > { %v974_v0 = vadd.f32 %v910_v25, %v753_v28  ;;  %v1857_v8 = vsel %vm1782_vm1, %v3993_v60, 0.0  ;;  %v2078_v36 = vsel %vm2003_vm5, %v4056_v47, 0.0  ;;  %v2294_v49 = vsel %vm2219_vm7, %v4073_v50, 0.0 }
  0x79   : > { %v1921_v12 = vadd.f32 %v1857_v8, %v1702_v22  ;;  %vm462_vm2 = vcmp.eq.s32.totalorder %v3719_v55, %v3841_v15  ;;  %vm617_vm10 = vcmp.eq.s32.totalorder %v3719_v55, %v3855_v7  ;;  %2525 = vmatprep.mubr.f32.mxu1 %v2359_v56  ;;  %vm838_vm8 = vcmp.eq.s32.totalorder %v3719_v55, %v3883_v30 }
  0x7a   : > { %v1190_v19 = vadd.f32 %v1126_v58, %v974_v0  ;;  %v537_v20 = vsel %vm462_vm2, %v3847_v18, 0.0  ;;  %v692_v54 = vsel %vm617_vm10, %v3871_v27, 0.0  ;;  %v913_v53 = vsel %vm838_vm8, %v3910_v43, 0.0 }
  0x7b   : > { %v2142_v63 = vadd.f32 %v2078_v36, %v1921_v12  ;;  %v756_v37 = vadd.f32 %v692_v54, %v537_v20  ;;  %vm1054_vm11 = vcmp.eq.s32.totalorder %v3719_v55, %v3887_v34  ;;  %vm1630_vm12 = vcmp.eq.s32.totalorder %v3719_v55, %v3963_v1 }
  0x7c   : > { %1357 = vmatmul.mubr.f32.gmra.mrb[4].mxu0 %v1190_v19  ;;  %v1129_v41 = vsel %vm1054_vm11, %v3930_v52, 0.0  ;;  %vm1785_vm4 = vcmp.eq.s32.totalorder %v3719_v55, %v3979_v5  ;;  %vm2006_vm9 = vcmp.eq.s32.totalorder %v3719_v55, %v4045_v59  ;;  %v1705_v45 = vsel %vm1630_vm12, %v3973_v4, 0.0 }
  0x7d   : > { %v2358_v61 = vadd.f32 %v2294_v49, %v2142_v63  ;;  %v977_v33 = vadd.f32 %v913_v53, %v756_v37  ;;  %v1860_v46 = vsel %vm1785_vm4, %v3996_v29, 0.0  ;;  %v2081_v3 = vsel %vm2006_vm9, %v4059_v57, 0.0 }
  0x7e   : > { %v1924_v44 = vadd.f32 %v1860_v46, %v1705_v45  ;;  %vm2222_vm3 = vcmp.eq.s32.totalorder %v3719_v55, %v4052_v24  ;;  %vm461_vm6 = vcmp.eq.s32.totalorder %v3719_v55, %v4009_v38  ;;  %vm616_vm13 = vcmp.eq.s32.totalorder %v3719_v55, %v4013_v40 }
  0x7f   : > { %2526 = vmatmul.mubr.f32.gmra.mrb[4].mxu1 %v2358_v61  ;;  %v1193_v28 = vadd.f32 %v1129_v41, %v977_v33  ;;  %v2297_v25 = vsel %vm2222_vm3, %v4076_v11, 0.0  ;;  %v536_v58 = vsel %vm461_vm6, %v3844_v16, 0.0  ;;  %v691_v56 = vsel %vm616_vm13, %v3868_v26, 0.0 }
  0x80   : > { %v2145_v22 = vadd.f32 %v2081_v3, %v1924_v44  ;;  %vm837_vm15 = vcmp.eq.s32.totalorder %v3719_v55, %v4017_v42  ;;  %vm1053_vm14 = vcmp.eq.s32.totalorder %v3719_v55, %v4027_v9  ;;  %v755_v0 = vadd.f32 %v691_v56, %v536_v58 }
  0x81   : > { %1361 = vmatprep.mubr.f32.mxu0 %v1193_v28  ;;  %v912_v8 = vsel %vm837_vm15, %v3905_v14, 0.0  ;;  %v1128_v36 = vsel %vm1053_vm14, %v3927_v51, 0.0  ;;  %vm1629_vm0 = vcmp.eq.s32.totalorder %v3719_v55, %v4085_v32  ;;  %vm1784_vm1 = vcmp.eq.s32.totalorder %v3719_v55, %v4090_v48 }
  0x82   : > { %v2361_v12 = vadd.f32 %v2297_v25, %v2145_v22  ;;  %v1704_v49 = vsel %vm1629_vm0, %v3970_v2, 0.0  ;;  %vm2005_vm5 = vcmp.eq.s32.totalorder %v3719_v55, %v4093_v23  ;;  %v976_v19 = vadd.f32 %v912_v8, %v755_v0 }
  0x83   : > { %v1859_v20 = vsel %vm1784_vm1, %v3993_v60, 0.0  ;;  %v2080_v54 = vsel %vm2005_vm5, %v4056_v47, 0.0  ;;  %vm2221_vm7 = vcmp.eq.s32.totalorder %v3719_v55, %v4096_v35  ;;  %vm464_vm2 = vcmp.eq.s32.totalorder %v3731_v62, %v3841_v15 }
  0x84   : > { %2530 = vmatprep.mubr.f32.mxu1 %v2361_v12  ;;  %v1923_v63 = vadd.f32 %v1859_v20, %v1704_v49  ;;  %v2296_v37 = vsel %vm2221_vm7, %v4073_v50, 0.0  ;;  %vm619_vm10 = vcmp.eq.s32.totalorder %v3731_v62, %v3855_v7  ;;  %v1192_v53 = vadd.f32 %v1128_v36, %v976_v19 }
  0x85   : > { %v539_v41 = vsel %vm464_vm2, %v3847_v18, 0.0  ;;  %v694_v61 = vsel %vm619_vm10, %v3871_v27, 0.0  ;;  %vm840_vm8 = vcmp.eq.s32.totalorder %v3731_v62, %v3883_v30  ;;  %vm1056_vm11 = vcmp.eq.s32.totalorder %v3731_v62, %v3887_v34 }
  0x86   : > { %v2144_v33 = vadd.f32 %v2080_v54, %v1923_v63  ;;  %v758_v55 = vadd.f32 %v694_v61, %v539_v41  ;;  %v915_v45 = vsel %vm840_vm8, %v3910_v43, 0.0  ;;  %1362 = vmatmul.mubr.f32.gmra.mrb[6].mxu0 %v1192_v53  ;;  %v1131_v46 = vsel %vm1056_vm11, %v3930_v52, 0.0 }
  0x87   : > { %vm1632_vm12 = vcmp.eq.s32.totalorder %v3731_v62, %v3963_v1  ;;  %vm1787_vm4 = vcmp.eq.s32.totalorder %v3731_v62, %v3979_v5  ;;  %vm2008_vm9 = vcmp.eq.s32.totalorder %v3731_v62, %v4045_v59  ;;  %vm2224_vm3 = vcmp.eq.s32.totalorder %v3731_v62, %v4052_v24 }
  0x88   : > { %v2360_v44 = vadd.f32 %v2296_v37, %v2144_v33  ;;  %v979_v3 = vadd.f32 %v915_v45, %v758_v55  ;;  %v1707_v28 = vsel %vm1632_vm12, %v3973_v4, 0.0  ;;  %v1862_v25 = vsel %vm1787_vm4, %v3996_v29, 0.0 }
  0x89   : > { %v1926_v58 = vadd.f32 %v1862_v25, %v1707_v28  ;;  %v2083_v22 = vsel %vm2008_vm9, %v4059_v57, 0.0  ;;  %vm463_vm6 = vcmp.eq.s32.totalorder %v3731_v62, %v4009_v38  ;;  %v2299_v0 = vsel %vm2224_vm3, %v4076_v11, 0.0 }
  0x8a   : > { %2531 = vmatmul.mubr.f32.gmra.mrb[6].mxu1 %v2360_v44  ;;  %v1195_v56 = vadd.f32 %v1131_v46, %v979_v3  ;;  %v538_v8 = vsel %vm463_vm6, %v3844_v16, 0.0  ;;  %vm618_vm13 = vcmp.eq.s32.totalorder %v3731_v62, %v4013_v40  ;;  %vm839_vm15 = vcmp.eq.s32.totalorder %v3731_v62, %v4017_v42 }
  0x8b   : > { %v2147_v36 = vadd.f32 %v2083_v22, %v1926_v58  ;;  %v693_v12 = vsel %vm618_vm13, %v3868_v26, 0.0  ;;  %vm1055_vm14 = vcmp.eq.s32.totalorder %v3731_v62, %v4027_v9  ;;  %v914_v19 = vsel %vm839_vm15, %v3905_v14, 0.0 }
  0x8c   : > { %1366 = vmatprep.mubr.f32.mxu0 %v1195_v56  ;;  %v757_v49 = vadd.f32 %v693_v12, %v538_v8  ;;  %v1130_v20 = vsel %vm1055_vm14, %v3927_v51, 0.0  ;;  %vm1631_vm0 = vcmp.eq.s32.totalorder %v3731_v62, %v4085_v32  ;;  %vm1786_vm1 = vcmp.eq.s32.totalorder %v3731_v62, %v4090_v48 }
  0x8d   : > { %v2363_v54 = vadd.f32 %v2299_v0, %v2147_v36  ;;  %v1706_v63 = vsel %vm1631_vm0, %v3970_v2, 0.0  ;;  %vm2007_vm5 = vcmp.eq.s32.totalorder %v3731_v62, %v4093_v23  ;;  %v1861_v53 = vsel %vm1786_vm1, %v3993_v60, 0.0 }
  0x8e   : > { %v978_v37 = vadd.f32 %v914_v19, %v757_v49  ;;  %v2082_v41 = vsel %vm2007_vm5, %v4056_v47, 0.0  ;;  %vm2223_vm7 = vcmp.eq.s32.totalorder %v3731_v62, %v4096_v35  ;;  %v1925_v61 = vadd.f32 %v1861_v53, %v1706_v63 }
  0x8f   : > { %2535 = vmatprep.mubr.f32.mxu1 %v2363_v54  ;;  %v2298_v33 = vsel %vm2223_vm7, %v4073_v50, 0.0  ;;  %vm466_vm2 = vcmp.eq.s32.totalorder %v3745_v6, %v3841_v15  ;;  %vm621_vm10 = vcmp.eq.s32.totalorder %v3745_v6, %v3855_v7  ;;  %vm842_vm8 = vcmp.eq.s32.totalorder %v3745_v6, %v3883_v30 }
  0x90   : > { %v1194_v55 = vadd.f32 %v1130_v20, %v978_v37  ;;  %v541_v45 = vsel %vm466_vm2, %v3847_v18, 0.0  ;;  %v696_v46 = vsel %vm621_vm10, %v3871_v27, 0.0  ;;  %v2146_v44 = vadd.f32 %v2082_v41, %v1925_v61 }
  0x91   : > { %v760_v62 = vadd.f32 %v696_v46, %v541_v45  ;;  %v917_v3 = vsel %vm842_vm8, %v3910_v43, 0.0  ;;  %vm1058_vm11 = vcmp.eq.s32.totalorder %v3745_v6, %v3887_v34  ;;  %vm1634_vm12 = vcmp.eq.s32.totalorder %v3745_v6, %v3963_v1 }
  0x92   : > { %1367 = vmatmul.mubr.f32.gmra.mrb[8].mxu0 %v1194_v55  ;;  %v1133_v28 = vsel %vm1058_vm11, %v3930_v52, 0.0  ;;  %vm1789_vm4 = vcmp.eq.s32.totalorder %v3745_v6, %v3979_v5  ;;  %vm2010_vm9 = vcmp.eq.s32.totalorder %v3745_v6, %v4045_v59  ;;  %v2362_v25 = vadd.f32 %v2298_v33, %v2146_v44 }
  0x93   : > { %v981_v58 = vadd.f32 %v917_v3, %v760_v62  ;;  %v1709_v22 = vsel %vm1634_vm12, %v3973_v4, 0.0  ;;  %v1864_v56 = vsel %vm1789_vm4, %v3996_v29, 0.0  ;;  %v2085_v8 = vsel %vm2010_vm9, %v4059_v57, 0.0 }
  0x94   : > { %v1928_v0 = vadd.f32 %v1864_v56, %v1709_v22  ;;  %vm2226_vm3 = vcmp.eq.s32.totalorder %v3745_v6, %v4052_v24  ;;  %vm465_vm6 = vcmp.eq.s32.totalorder %v3745_v6, %v4009_v38  ;;  %2536 = vmatmul.mubr.f32.gmra.mrb[8].mxu1 %v2362_v25  ;;  %vm620_vm13 = vcmp.eq.s32.totalorder %v3745_v6, %v4013_v40 }
  0x95   : > { %v1197_v36 = vadd.f32 %v1133_v28, %v981_v58  ;;  %v2301_v12 = vsel %vm2226_vm3, %v4076_v11, 0.0  ;;  %v540_v49 = vsel %vm465_vm6, %v3844_v16, 0.0  ;;  %v695_v20 = vsel %vm620_vm13, %v3868_v26, 0.0 }
  0x96   : > { %v2149_v19 = vadd.f32 %v2085_v8, %v1928_v0  ;;  %vm841_vm15 = vcmp.eq.s32.totalorder %v3745_v6, %v4017_v42  ;;  %vm1057_vm14 = vcmp.eq.s32.totalorder %v3745_v6, %v4027_v9  ;;  %v759_v54 = vadd.f32 %v695_v20, %v540_v49 }
  0x97   : > { %1371 = vmatprep.mubr.f32.mxu0 %v1197_v36  ;;  %v916_v63 = vsel %vm841_vm15, %v3905_v14, 0.0  ;;  %v1132_v37 = vsel %vm1057_vm14, %v3927_v51, 0.0  ;;  %vm1633_vm0 = vcmp.eq.s32.totalorder %v3745_v6, %v4085_v32  ;;  %vm1788_vm1 = vcmp.eq.s32.totalorder %v3745_v6, %v4090_v48 }
  0x98   : > { %v2365_v53 = vadd.f32 %v2301_v12, %v2149_v19  ;;  %v1708_v41 = vsel %vm1633_vm0, %v3970_v2, 0.0  ;;  %vm2009_vm5 = vcmp.eq.s32.totalorder %v3745_v6, %v4093_v23  ;;  %v980_v61 = vadd.f32 %v916_v63, %v759_v54 }
  0x99   : > { %v1863_v33 = vsel %vm1788_vm1, %v3993_v60, 0.0  ;;  %v2084_v55 = vsel %vm2009_vm5, %v4056_v47, 0.0  ;;  %vm2225_vm7 = vcmp.eq.s32.totalorder %v3745_v6, %v4096_v35  ;;  %vm468_vm2 = vcmp.eq.s32.totalorder %v3761_v13, %v3841_v15 }
  0x9a   : > { %2540 = vmatprep.mubr.f32.mxu1 %v2365_v53  ;;  %v1927_v45 = vadd.f32 %v1863_v33, %v1708_v41  ;;  %v2300_v46 = vsel %vm2225_vm7, %v4073_v50, 0.0  ;;  %vm623_vm10 = vcmp.eq.s32.totalorder %v3761_v13, %v3855_v7  ;;  %v1196_v44 = vadd.f32 %v1132_v37, %v980_v61 }
  0x9b   : > { %v543_v62 = vsel %vm468_vm2, %v3847_v18, 0.0  ;;  %v698_v3 = vsel %vm623_vm10, %v3871_v27, 0.0  ;;  %vm844_vm8 = vcmp.eq.s32.totalorder %v3761_v13, %v3883_v30  ;;  %vm1060_vm11 = vcmp.eq.s32.totalorder %v3761_v13, %v3887_v34 }
  0x9c   : > { %v2148_v28 = vadd.f32 %v2084_v55, %v1927_v45  ;;  %v762_v6 = vadd.f32 %v698_v3, %v543_v62  ;;  %v919_v25 = vsel %vm844_vm8, %v3910_v43, 0.0  ;;  %1372 = vmatmul.mubr.f32.gmra.mrb[10].mxu0 %v1196_v44  ;;  %v1135_v58 = vsel %vm1060_vm11, %v3930_v52, 0.0 }
  0x9d   : > { %vm1636_vm12 = vcmp.eq.s32.totalorder %v3761_v13, %v3963_v1  ;;  %vm1791_vm4 = vcmp.eq.s32.totalorder %v3761_v13, %v3979_v5  ;;  %vm2012_vm9 = vcmp.eq.s32.totalorder %v3761_v13, %v4045_v59  ;;  %vm2228_vm3 = vcmp.eq.s32.totalorder %v3761_v13, %v4052_v24 }
  0x9e   : > { %v2364_v22 = vadd.f32 %v2300_v46, %v2148_v28  ;;  %v983_v56 = vadd.f32 %v919_v25, %v762_v6  ;;  %v1711_v0 = vsel %vm1636_vm12, %v3973_v4, 0.0  ;;  %v1866_v8 = vsel %vm1791_vm4, %v3996_v29, 0.0 }
  0x9f   : > { %v1930_v36 = vadd.f32 %v1866_v8, %v1711_v0  ;;  %v2087_v12 = vsel %vm2012_vm9, %v4059_v57, 0.0  ;;  %vm467_vm6 = vcmp.eq.s32.totalorder %v3761_v13, %v4009_v38  ;;  %v2303_v19 = vsel %vm2228_vm3, %v4076_v11, 0.0 }
  0xa0   : > { %2541 = vmatmul.mubr.f32.gmra.mrb[10].mxu1 %v2364_v22  ;;  %v1199_v49 = vadd.f32 %v1135_v58, %v983_v56  ;;  %v542_v20 = vsel %vm467_vm6, %v3844_v16, 0.0  ;;  %vm622_vm13 = vcmp.eq.s32.totalorder %v3761_v13, %v4013_v40  ;;  %vm843_vm15 = vcmp.eq.s32.totalorder %v3761_v13, %v4017_v42 }
  0xa1   : > { %v2151_v54 = vadd.f32 %v2087_v12, %v1930_v36  ;;  %v697_v63 = vsel %vm622_vm13, %v3868_v26, 0.0  ;;  %vm1059_vm14 = vcmp.eq.s32.totalorder %v3761_v13, %v4027_v9  ;;  %v918_v53 = vsel %vm843_vm15, %v3905_v14, 0.0 }
  0xa2   : > { %1376 = vmatprep.mubr.f32.mxu0 %v1199_v49  ;;  %v761_v37 = vadd.f32 %v697_v63, %v542_v20  ;;  %v1134_v41 = vsel %vm1059_vm14, %v3927_v51, 0.0  ;;  %vm1635_vm0 = vcmp.eq.s32.totalorder %v3761_v13, %v4085_v32  ;;  %vm1790_vm1 = vcmp.eq.s32.totalorder %v3761_v13, %v4090_v48 }
  0xa3   : > { %v2367_v61 = vadd.f32 %v2303_v19, %v2151_v54  ;;  %v1710_v33 = vsel %vm1635_vm0, %v3970_v2, 0.0  ;;  %vm2011_vm5 = vcmp.eq.s32.totalorder %v3761_v13, %v4093_v23  ;;  %v1865_v45 = vsel %vm1790_vm1, %v3993_v60, 0.0 }
  0xa4   : > { %v982_v55 = vadd.f32 %v918_v53, %v761_v37  ;;  %v2086_v46 = vsel %vm2011_vm5, %v4056_v47, 0.0  ;;  %vm2227_vm7 = vcmp.eq.s32.totalorder %v3761_v13, %v4096_v35  ;;  %v1929_v44 = vadd.f32 %v1865_v45, %v1710_v33 }
  0xa5   : > { %2545 = vmatprep.mubr.f32.mxu1 %v2367_v61  ;;  %v2302_v62 = vsel %vm2227_vm7, %v4073_v50, 0.0  ;;  %vm470_vm2 = vcmp.eq.s32.totalorder %v3775_v21, %v3841_v15  ;;  %vm625_vm10 = vcmp.eq.s32.totalorder %v3775_v21, %v3855_v7  ;;  %vm846_vm8 = vcmp.eq.s32.totalorder %v3775_v21, %v3883_v30 }
  0xa6   : > { %v1198_v3 = vadd.f32 %v1134_v41, %v982_v55  ;;  %v545_v28 = vsel %vm470_vm2, %v3847_v18, 0.0  ;;  %v700_v6 = vsel %vm625_vm10, %v3871_v27, 0.0  ;;  %v2150_v25 = vadd.f32 %v2086_v46, %v1929_v44 }
  0xa7   : > { %v764_v13 = vadd.f32 %v700_v6, %v545_v28  ;;  %v921_v58 = vsel %vm846_vm8, %v3910_v43, 0.0  ;;  %vm1062_vm11 = vcmp.eq.s32.totalorder %v3775_v21, %v3887_v34  ;;  %vm1638_vm12 = vcmp.eq.s32.totalorder %v3775_v21, %v3963_v1 }
  0xa8   : > { %1377 = vmatmul.mubr.f32.gmra.mrb[12].mxu0 %v1198_v3  ;;  %v1137_v22 = vsel %vm1062_vm11, %v3930_v52, 0.0  ;;  %vm1793_vm4 = vcmp.eq.s32.totalorder %v3775_v21, %v3979_v5  ;;  %vm2014_vm9 = vcmp.eq.s32.totalorder %v3775_v21, %v4045_v59  ;;  %v2366_v56 = vadd.f32 %v2302_v62, %v2150_v25 }
  0xa9   : > { %v985_v0 = vadd.f32 %v921_v58, %v764_v13  ;;  %v1713_v8 = vsel %vm1638_vm12, %v3973_v4, 0.0  ;;  %v1868_v36 = vsel %vm1793_vm4, %v3996_v29, 0.0  ;;  %v2089_v49 = vsel %vm2014_vm9, %v4059_v57, 0.0 }
  0xaa   : > { %v1932_v12 = vadd.f32 %v1868_v36, %v1713_v8  ;;  %vm2230_vm3 = vcmp.eq.s32.totalorder %v3775_v21, %v4052_v24  ;;  %vm469_vm6 = vcmp.eq.s32.totalorder %v3775_v21, %v4009_v38  ;;  %2546 = vmatmul.mubr.f32.gmra.mrb[12].mxu1 %v2366_v56  ;;  %vm624_vm13 = vcmp.eq.s32.totalorder %v3775_v21, %v4013_v40 }
  0xab   : > { %v1201_v19 = vadd.f32 %v1137_v22, %v985_v0  ;;  %v2305_v20 = vsel %vm2230_vm3, %v4076_v11, 0.0  ;;  %v544_v54 = vsel %vm469_vm6, %v3844_v16, 0.0  ;;  %v699_v37 = vsel %vm624_vm13, %v3868_v26, 0.0 }
  0xac   : > { %v2153_v63 = vadd.f32 %v2089_v49, %v1932_v12  ;;  %vm845_vm15 = vcmp.eq.s32.totalorder %v3775_v21, %v4017_v42  ;;  %vm1061_vm14 = vcmp.eq.s32.totalorder %v3775_v21, %v4027_v9  ;;  %v763_v53 = vadd.f32 %v699_v37, %v544_v54 }
  0xad   : > { %1381 = vmatprep.mubr.f32.mxu0 %v1201_v19  ;;  %v920_v41 = vsel %vm845_vm15, %v3905_v14, 0.0  ;;  %v1136_v61 = vsel %vm1061_vm14, %v3927_v51, 0.0  ;;  %vm1637_vm0 = vcmp.eq.s32.totalorder %v3775_v21, %v4085_v32  ;;  %vm1792_vm1 = vcmp.eq.s32.totalorder %v3775_v21, %v4090_v48 }
  0xae   : > { %v2369_v33 = vadd.f32 %v2305_v20, %v2153_v63  ;;  %v1712_v55 = vsel %vm1637_vm0, %v3970_v2, 0.0  ;;  %vm2013_vm5 = vcmp.eq.s32.totalorder %v3775_v21, %v4093_v23  ;;  %v984_v45 = vadd.f32 %v920_v41, %v763_v53 }
  0xaf   : > { %v1867_v46 = vsel %vm1792_vm1, %v3993_v60, 0.0  ;;  %v2088_v44 = vsel %vm2013_vm5, %v4056_v47, 0.0  ;;  %vm2229_vm7 = vcmp.eq.s32.totalorder %v3775_v21, %v4096_v35  ;;  %vm472_vm2 = vcmp.eq.s32.totalorder %v3790_v31, %v3841_v15 }
  0xb0   : > { %2550 = vmatprep.mubr.f32.mxu1 %v2369_v33  ;;  %v1931_v62 = vadd.f32 %v1867_v46, %v1712_v55  ;;  %v2304_v3 = vsel %vm2229_vm7, %v4073_v50, 0.0  ;;  %vm627_vm10 = vcmp.eq.s32.totalorder %v3790_v31, %v3855_v7  ;;  %v1200_v28 = vadd.f32 %v1136_v61, %v984_v45 }
  0xb1   : > { %v547_v6 = vsel %vm472_vm2, %v3847_v18, 0.0  ;;  %v702_v25 = vsel %vm627_vm10, %v3871_v27, 0.0  ;;  %vm848_vm8 = vcmp.eq.s32.totalorder %v3790_v31, %v3883_v30  ;;  %vm1064_vm11 = vcmp.eq.s32.totalorder %v3790_v31, %v3887_v34 }
  0xb2   : > { %v2152_v13 = vadd.f32 %v2088_v44, %v1931_v62  ;;  %v766_v21 = vadd.f32 %v702_v25, %v547_v6  ;;  %v923_v58 = vsel %vm848_vm8, %v3910_v43, 0.0  ;;  %1382 = vmatmul.mubr.f32.gmra.mrb[14].mxu0 %v1200_v28  ;;  %v1139_v22 = vsel %vm1064_vm11, %v3930_v52, 0.0 }
  0xb3   : > { %vm1640_vm12 = vcmp.eq.s32.totalorder %v3790_v31, %v3963_v1  ;;  %vm1795_vm4 = vcmp.eq.s32.totalorder %v3790_v31, %v3979_v5  ;;  %vm2016_vm9 = vcmp.eq.s32.totalorder %v3790_v31, %v4045_v59  ;;  %vm2232_vm3 = vcmp.eq.s32.totalorder %v3790_v31, %v4052_v24 }
  0xb4   : > { %v2368_v56 = vadd.f32 %v2304_v3, %v2152_v13  ;;  %v987_v0 = vadd.f32 %v923_v58, %v766_v21  ;;  %v1715_v8 = vsel %vm1640_vm12, %v3973_v4, 0.0  ;;  %v1870_v36 = vsel %vm1795_vm4, %v3996_v29, 0.0 }
  0xb5   : > { %v1934_v12 = vadd.f32 %v1870_v36, %v1715_v8  ;;  %v2091_v49 = vsel %vm2016_vm9, %v4059_v57, 0.0  ;;  %vm471_vm6 = vcmp.eq.s32.totalorder %v3790_v31, %v4009_v38  ;;  %v2307_v20 = vsel %vm2232_vm3, %v4076_v11, 0.0 }
  0xb6   : > { %2551 = vmatmul.mubr.f32.gmra.mrb[14].mxu1 %v2368_v56  ;;  %v1203_v19 = vadd.f32 %v1139_v22, %v987_v0  ;;  %v546_v54 = vsel %vm471_vm6, %v3844_v16, 0.0  ;;  %vm626_vm13 = vcmp.eq.s32.totalorder %v3790_v31, %v4013_v40  ;;  %vm847_vm15 = vcmp.eq.s32.totalorder %v3790_v31, %v4017_v42 }
  0xb7   : > { %v2155_v63 = vadd.f32 %v2091_v49, %v1934_v12  ;;  %v701_v37 = vsel %vm626_vm13, %v3868_v26, 0.0  ;;  %vm1063_vm14 = vcmp.eq.s32.totalorder %v3790_v31, %v4027_v9  ;;  %v922_v41 = vsel %vm847_vm15, %v3905_v14, 0.0 }
  0xb8   : > { %1386 = vmatprep.mubr.f32.mxu0 %v1203_v19  ;;  %v765_v53 = vadd.f32 %v701_v37, %v546_v54  ;;  %v1138_v61 = vsel %vm1063_vm14, %v3927_v51, 0.0  ;;  %vm1639_vm0 = vcmp.eq.s32.totalorder %v3790_v31, %v4085_v32  ;;  %vm1794_vm1 = vcmp.eq.s32.totalorder %v3790_v31, %v4090_v48 }
  0xb9   : > { %v2371_v33 = vadd.f32 %v2307_v20, %v2155_v63  ;;  %v1714_v55 = vsel %vm1639_vm0, %v3970_v2, 0.0  ;;  %vm2015_vm5 = vcmp.eq.s32.totalorder %v3790_v31, %v4093_v23  ;;  %v1869_v46 = vsel %vm1794_vm1, %v3993_v60, 0.0 }
  0xba   : > { %v986_v45 = vadd.f32 %v922_v41, %v765_v53  ;;  %v2090_v44 = vsel %vm2015_vm5, %v4056_v47, 0.0  ;;  %vm2231_vm7 = vcmp.eq.s32.totalorder %v3790_v31, %v4096_v35  ;;  %v1933_v62 = vadd.f32 %v1869_v46, %v1714_v55 }
  0xbb   : > { %2555 = vmatprep.mubr.f32.mxu1 %v2371_v33  ;;  %v2306_v3 = vsel %vm2231_vm7, %v4073_v50, 0.0  ;;  %vm474_vm2 = vcmp.eq.s32.totalorder %v3801_v39, %v3841_v15  ;;  %vm629_vm10 = vcmp.eq.s32.totalorder %v3801_v39, %v3855_v7  ;;  %vm850_vm8 = vcmp.eq.s32.totalorder %v3801_v39, %v3883_v30 }
  0xbc   : > { %v1202_v28 = vadd.f32 %v1138_v61, %v986_v45  ;;  %v549_v6 = vsel %vm474_vm2, %v3847_v18, 0.0  ;;  %v704_v25 = vsel %vm629_vm10, %v3871_v27, 0.0  ;;  %v2154_v13 = vadd.f32 %v2090_v44, %v1933_v62 }
  0xbd   : > { %v768_v31 = vadd.f32 %v704_v25, %v549_v6  ;;  %v925_v21 = vsel %vm850_vm8, %v3910_v43, 0.0  ;;  %vm1066_vm11 = vcmp.eq.s32.totalorder %v3801_v39, %v3887_v34  ;;  %vm1642_vm12 = vcmp.eq.s32.totalorder %v3801_v39, %v3963_v1 }
  0xbe   : > { %1387 = vmatmul.mubr.f32.gmra.mrb[16].mxu0 %v1202_v28  ;;  %v1141_v58 = vsel %vm1066_vm11, %v3930_v52, 0.0  ;;  %vm1797_vm4 = vcmp.eq.s32.totalorder %v3801_v39, %v3979_v5  ;;  %vm2018_vm9 = vcmp.eq.s32.totalorder %v3801_v39, %v4045_v59  ;;  %v2370_v22 = vadd.f32 %v2306_v3, %v2154_v13 }
  0xbf   : > { %v989_v56 = vadd.f32 %v925_v21, %v768_v31  ;;  %v1717_v0 = vsel %vm1642_vm12, %v3973_v4, 0.0  ;;  %v1872_v8 = vsel %vm1797_vm4, %v3996_v29, 0.0  ;;  %v2093_v12 = vsel %vm2018_vm9, %v4059_v57, 0.0 }
  0xc0   : > { %v1936_v36 = vadd.f32 %v1872_v8, %v1717_v0  ;;  %vm2234_vm3 = vcmp.eq.s32.totalorder %v3801_v39, %v4052_v24  ;;  %vm473_vm6 = vcmp.eq.s32.totalorder %v3801_v39, %v4009_v38  ;;  %2556 = vmatmul.mubr.f32.gmra.mrb[16].mxu1 %v2370_v22  ;;  %vm628_vm13 = vcmp.eq.s32.totalorder %v3801_v39, %v4013_v40 }
  0xc1   : > { %v1205_v49 = vadd.f32 %v1141_v58, %v989_v56  ;;  %v2309_v19 = vsel %vm2234_vm3, %v4076_v11, 0.0  ;;  %v548_v20 = vsel %vm473_vm6, %v3844_v16, 0.0  ;;  %v703_v63 = vsel %vm628_vm13, %v3868_v26, 0.0 }
  0xc2   : > { %v2157_v54 = vadd.f32 %v2093_v12, %v1936_v36  ;;  %vm849_vm15 = vcmp.eq.s32.totalorder %v3801_v39, %v4017_v42  ;;  %vm1065_vm14 = vcmp.eq.s32.totalorder %v3801_v39, %v4027_v9  ;;  %v767_v37 = vadd.f32 %v703_v63, %v548_v20 }
  0xc3   : > { %1391 = vmatprep.mubr.f32.mxu0 %v1205_v49  ;;  %v924_v53 = vsel %vm849_vm15, %v3905_v14, 0.0  ;;  %v1140_v41 = vsel %vm1065_vm14, %v3927_v51, 0.0  ;;  %vm1641_vm0 = vcmp.eq.s32.totalorder %v3801_v39, %v4085_v32  ;;  %vm1796_vm1 = vcmp.eq.s32.totalorder %v3801_v39, %v4090_v48 }
  0xc4   : > { %v2373_v61 = vadd.f32 %v2309_v19, %v2157_v54  ;;  %v1716_v33 = vsel %vm1641_vm0, %v3970_v2, 0.0  ;;  %vm2017_vm5 = vcmp.eq.s32.totalorder %v3801_v39, %v4093_v23  ;;  %v988_v55 = vadd.f32 %v924_v53, %v767_v37 }
  0xc5   : > { %v1871_v45 = vsel %vm1796_vm1, %v3993_v60, 0.0  ;;  %v2092_v46 = vsel %vm2017_vm5, %v4056_v47, 0.0  ;;  %vm2233_vm7 = vcmp.eq.s32.totalorder %v3801_v39, %v4096_v35  ;;  %vm476_vm2 = vcmp.eq.s32.totalorder %v4040_v10, %v3841_v15 }
  0xc6   : > { %2560 = vmatprep.mubr.f32.mxu1 %v2373_v61  ;;  %v1935_v44 = vadd.f32 %v1871_v45, %v1716_v33  ;;  %v2308_v62 = vsel %vm2233_vm7, %v4073_v50, 0.0  ;;  %vm631_vm10 = vcmp.eq.s32.totalorder %v4040_v10, %v3855_v7  ;;  %v1204_v3 = vadd.f32 %v1140_v41, %v988_v55 }
  0xc7   : > { %v551_v28 = vsel %vm476_vm2, %v3847_v18, 0.0  ;;  %v706_v6 = vsel %vm631_vm10, %v3871_v27, 0.0  ;;  %vm852_vm8 = vcmp.eq.s32.totalorder %v4040_v10, %v3883_v30  ;;  %vm1068_vm11 = vcmp.eq.s32.totalorder %v4040_v10, %v3887_v34 }
  0xc8   : > { %v2156_v25 = vadd.f32 %v2092_v46, %v1935_v44  ;;  %v770_v39 = vadd.f32 %v706_v6, %v551_v28  ;;  %v927_v13 = vsel %vm852_vm8, %v3910_v43, 0.0  ;;  %1392 = vmatmul.mubr.f32.gmra.mrb[18].mxu0 %v1204_v3  ;;  %v1143_v31 = vsel %vm1068_vm11, %v3930_v52, 0.0 }
  0xc9   : > { %vm1644_vm12 = vcmp.eq.s32.totalorder %v4040_v10, %v3963_v1  ;;  %vm1799_vm4 = vcmp.eq.s32.totalorder %v4040_v10, %v3979_v5  ;;  %vm2020_vm9 = vcmp.eq.s32.totalorder %v4040_v10, %v4045_v59  ;;  %vm2236_vm3 = vcmp.eq.s32.totalorder %v4040_v10, %v4052_v24 }
  0xca   : > { %v2372_v21 = vadd.f32 %v2308_v62, %v2156_v25  ;;  %v991_v58 = vadd.f32 %v927_v13, %v770_v39  ;;  %v1719_v22 = vsel %vm1644_vm12, %v3973_v4, 0.0  ;;  %v1874_v56 = vsel %vm1799_vm4, %v3996_v29, 0.0 }
  0xcb   : > { %v1938_v0 = vadd.f32 %v1874_v56, %v1719_v22  ;;  %v2095_v8 = vsel %vm2020_vm9, %v4059_v57, 0.0  ;;  %vm475_vm6 = vcmp.eq.s32.totalorder %v4040_v10, %v4009_v38  ;;  %v2311_v12 = vsel %vm2236_vm3, %v4076_v11, 0.0 }
  0xcc   : > { %2561 = vmatmul.mubr.f32.gmra.mrb[18].mxu1 %v2372_v21  ;;  %v1207_v36 = vadd.f32 %v1143_v31, %v991_v58  ;;  %v550_v49 = vsel %vm475_vm6, %v3844_v16, 0.0  ;;  %vm630_vm13 = vcmp.eq.s32.totalorder %v4040_v10, %v4013_v40  ;;  %vm851_vm15 = vcmp.eq.s32.totalorder %v4040_v10, %v4017_v42 }
  0xcd   : > { %v2159_v19 = vadd.f32 %v2095_v8, %v1938_v0  ;;  %v705_v20 = vsel %vm630_vm13, %v3868_v26, 0.0  ;;  %vm1067_vm14 = vcmp.eq.s32.totalorder %v4040_v10, %v4027_v9  ;;  %v926_v63 = vsel %vm851_vm15, %v3905_v14, 0.0 }
  0xce   : > { %1396 = vmatprep.mubr.f32.mxu0 %v1207_v36  ;;  %v769_v54 = vadd.f32 %v705_v20, %v550_v49  ;;  %v1142_v37 = vsel %vm1067_vm14, %v3927_v51, 0.0  ;;  %vm1643_vm0 = vcmp.eq.s32.totalorder %v4040_v10, %v4085_v32  ;;  %vm1798_vm1 = vcmp.eq.s32.totalorder %v4040_v10, %v4090_v48 }
  0xcf   : > { %v2375_v53 = vadd.f32 %v2311_v12, %v2159_v19  ;;  %v1718_v41 = vsel %vm1643_vm0, %v3970_v2, 0.0  ;;  %vm2019_vm5 = vcmp.eq.s32.totalorder %v4040_v10, %v4093_v23  ;;  %v1873_v33 = vsel %vm1798_vm1, %v3993_v60, 0.0 }
  0xd0   : > { %v990_v61 = vadd.f32 %v926_v63, %v769_v54  ;;  %v2094_v55 = vsel %vm2019_vm5, %v4056_v47, 0.0  ;;  %vm2235_vm7 = vcmp.eq.s32.totalorder %v4040_v10, %v4096_v35  ;;  %v1937_v45 = vadd.f32 %v1873_v33, %v1718_v41 }
  0xd1   : > { %2565 = vmatprep.mubr.f32.mxu1 %v2375_v53  ;;  %v2310_v46 = vsel %vm2235_vm7, %v4073_v50, 0.0  ;;  %v385_v44 = vadd.s32 88, %v3665_v17  ;;  %v4598_v62 = vadd.s32 96, %v3665_v17  ;;  %v4601_v28 = vadd.s32 104, %v3665_v17 }
  0xd2   : > { %v1206_v3 = vadd.f32 %v1142_v37, %v990_v61  ;;  %v4604_v6 = vadd.s32 112, %v3665_v17  ;;  %v4607_v25 = vadd.s32 120, %v3665_v17  ;;  %v2158_v10 = vadd.f32 %v2094_v55, %v1937_v45 }
  0xd3   : > { %vm478_vm2 = vcmp.eq.s32.totalorder %v385_v44, %v3841_v15  ;;  %vm633_vm10 = vcmp.eq.s32.totalorder %v385_v44, %v3855_v7  ;;  %vm854_vm8 = vcmp.eq.s32.totalorder %v385_v44, %v3883_v30  ;;  %vm1070_vm11 = vcmp.eq.s32.totalorder %v385_v44, %v3887_v34 }
  0xd4   : > { %1397 = vmatmul.mubr.f32.gmra.mrb[20].mxu0 %v1206_v3  ;;  %v553_v39 = vsel %vm478_vm2, %v3847_v18, 0.0  ;;  %v708_v13 = vsel %vm633_vm10, %v3871_v27, 0.0  ;;  %v929_v31 = vsel %vm854_vm8, %v3910_v43, 0.0  ;;  %v2374_v21 = vadd.f32 %v2310_v46, %v2158_v10 }
  0xd5   : > { %v772_v58 = vadd.f32 %v708_v13, %v553_v39  ;;  %v1145_v22 = vsel %vm1070_vm11, %v3930_v52, 0.0  ;;  %vm1646_vm12 = vcmp.eq.s32.totalorder %v385_v44, %v3963_v1  ;;  %vm1801_vm4 = vcmp.eq.s32.totalorder %v385_v44, %v3979_v5 }
  0xd6   : > { %v1721_v56 = vsel %vm1646_vm12, %v3973_v4, 0.0  ;;  %vm2022_vm9 = vcmp.eq.s32.totalorder %v385_v44, %v4045_v59  ;;  %vm2238_vm3 = vcmp.eq.s32.totalorder %v385_v44, %v4052_v24  ;;  %2566 = vmatmul.mubr.f32.gmra.mrb[20].mxu1 %v2374_v21  ;;  %v1876_v8 = vsel %vm1801_vm4, %v3996_v29, 0.0 }
  0xd7   : > { %v993_v0 = vadd.f32 %v929_v31, %v772_v58  ;;  %v2097_v36 = vsel %vm2022_vm9, %v4059_v57, 0.0  ;;  %v2313_v12 = vsel %vm2238_vm3, %v4076_v11, 0.0  ;;  %v1940_v49 = vadd.f32 %v1876_v8, %v1721_v56 }
  0xd8   : > { %vm477_vm6 = vcmp.eq.s32.totalorder %v385_v44, %v4009_v38  ;;  %vm632_vm13 = vcmp.eq.s32.totalorder %v385_v44, %v4013_v40  ;;  %vm853_vm15 = vcmp.eq.s32.totalorder %v385_v44, %v4017_v42  ;;  %vm1069_vm14 = vcmp.eq.s32.totalorder %v385_v44, %v4027_v9 }
  0xd9   : > { %v1209_v19 = vadd.f32 %v1145_v22, %v993_v0  ;;  %v552_v20 = vsel %vm477_vm6, %v3844_v16, 0.0  ;;  %v707_v54 = vsel %vm632_vm13, %v3868_v26, 0.0  ;;  %v928_v63 = vsel %vm853_vm15, %v3905_v14, 0.0 }
  0xda   : > { %v2161_v37 = vadd.f32 %v2097_v36, %v1940_v49  ;;  %v771_v53 = vadd.f32 %v707_v54, %v552_v20  ;;  %vm1645_vm0 = vcmp.eq.s32.totalorder %v385_v44, %v4085_v32  ;;  %v1144_v41 = vsel %vm1069_vm14, %v3927_v51, 0.0 }
  0xdb   : > { %1401 = vmatprep.mubr.f32.mxu0 %v1209_v19  ;;  %v1720_v61 = vsel %vm1645_vm0, %v3970_v2, 0.0  ;;  %vm1800_vm1 = vcmp.eq.s32.totalorder %v385_v44, %v4090_v48  ;;  %vm2021_vm5 = vcmp.eq.s32.totalorder %v385_v44, %v4093_v23  ;;  %vm2237_vm7 = vcmp.eq.s32.totalorder %v385_v44, %v4096_v35 }
  0xdc   : > { %v2377_v33 = vadd.f32 %v2313_v12, %v2161_v37  ;;  %v992_v55 = vadd.f32 %v928_v63, %v771_v53  ;;  %v1875_v45 = vsel %vm1800_vm1, %v3993_v60, 0.0  ;;  %v2096_v46 = vsel %vm2021_vm5, %v4056_v47, 0.0 }
  0xdd   : > { %v1939_v3 = vadd.f32 %v1875_v45, %v1720_v61  ;;  %vm480_vm2 = vcmp.eq.s32.totalorder %v4598_v62, %v3841_v15  ;;  %vm635_vm10 = vcmp.eq.s32.totalorder %v4598_v62, %v3855_v7  ;;  %v2312_v39 = vsel %vm2237_vm7, %v4073_v50, 0.0 }
  0xde   : > { %2570 = vmatprep.mubr.f32.mxu1 %v2377_v33  ;;  %v1208_v10 = vadd.f32 %v1144_v41, %v992_v55  ;;  %v555_v13 = vsel %vm480_vm2, %v3847_v18, 0.0  ;;  %v710_v31 = vsel %vm635_vm10, %v3871_v27, 0.0  ;;  %vm856_vm8 = vcmp.eq.s32.totalorder %v4598_v62, %v3883_v30 }
  0xdf   : > { %v2160_v21 = vadd.f32 %v2096_v46, %v1939_v3  ;;  %v774_v58 = vadd.f32 %v710_v31, %v555_v13  ;;  %vm1072_vm11 = vcmp.eq.s32.totalorder %v4598_v62, %v3887_v34  ;;  %v931_v44 = vsel %vm856_vm8, %v3910_v43, 0.0 }
  0xe0   : > { %1402 = vmatmul.mubr.f32.gmra.mrb[22].mxu0 %v1208_v10  ;;  %v1147_v22 = vsel %vm1072_vm11, %v3930_v52, 0.0  ;;  %vm1648_vm12 = vcmp.eq.s32.totalorder %v4598_v62, %v3963_v1  ;;  %vm1803_vm4 = vcmp.eq.s32.totalorder %v4598_v62, %v3979_v5  ;;  %vm2024_vm9 = vcmp.eq.s32.totalorder %v4598_v62, %v4045_v59 }
  0xe1   : > { %v2376_v56 = vadd.f32 %v2312_v39, %v2160_v21  ;;  %v995_v0 = vadd.f32 %v931_v44, %v774_v58  ;;  %v1723_v8 = vsel %vm1648_vm12, %v3973_v4, 0.0  ;;  %v1878_v36 = vsel %vm1803_vm4, %v3996_v29, 0.0 }
  0xe2   : > { %v1942_v12 = vadd.f32 %v1878_v36, %v1723_v8  ;;  %vm2240_vm3 = vcmp.eq.s32.totalorder %v4598_v62, %v4052_v24  ;;  %vm479_vm6 = vcmp.eq.s32.totalorder %v4598_v62, %v4009_v38  ;;  %v2099_v19 = vsel %vm2024_vm9, %v4059_v57, 0.0 }
  0xe3   : > { %2571 = vmatmul.mubr.f32.gmra.mrb[22].mxu1 %v2376_v56  ;;  %v1211_v49 = vadd.f32 %v1147_v22, %v995_v0  ;;  %v2315_v20 = vsel %vm2240_vm3, %v4076_v11, 0.0  ;;  %v554_v54 = vsel %vm479_vm6, %v3844_v16, 0.0  ;;  %vm634_vm13 = vcmp.eq.s32.totalorder %v4598_v62, %v4013_v40 }
  0xe4   : > { %v2163_v63 = vadd.f32 %v2099_v19, %v1942_v12  ;;  %vm855_vm15 = vcmp.eq.s32.totalorder %v4598_v62, %v4017_v42  ;;  %vm1071_vm14 = vcmp.eq.s32.totalorder %v4598_v62, %v4027_v9  ;;  %v709_v37 = vsel %vm634_vm13, %v3868_v26, 0.0 }
  0xe5   : > { %1406 = vmatprep.mubr.f32.mxu0 %v1211_v49  ;;  %v930_v53 = vsel %vm855_vm15, %v3905_v14, 0.0  ;;  %v1146_v41 = vsel %vm1071_vm14, %v3927_v51, 0.0  ;;  %vm1647_vm0 = vcmp.eq.s32.totalorder %v4598_v62, %v4085_v32  ;;  %v773_v33 = vadd.f32 %v709_v37, %v554_v54 }
  0xe6   : > { %v2379_v61 = vadd.f32 %v2315_v20, %v2163_v63  ;;  %v1722_v55 = vsel %vm1647_vm0, %v3970_v2, 0.0  ;;  %vm1802_vm1 = vcmp.eq.s32.totalorder %v4598_v62, %v4090_v48  ;;  %vm2023_vm5 = vcmp.eq.s32.totalorder %v4598_v62, %v4093_v23 }
  0xe7   : > { %v1877_v45 = vsel %vm1802_vm1, %v3993_v60, 0.0  ;;  %vm2239_vm7 = vcmp.eq.s32.totalorder %v4598_v62, %v4096_v35  ;;  %vm482_vm2 = vcmp.eq.s32.totalorder %v4601_v28, %v3841_v15  ;;  %v994_v46 = vadd.f32 %v930_v53, %v773_v33 }
  0xe8   : > { %2575 = vmatprep.mubr.f32.mxu1 %v2379_v61  ;;  %v1941_v3 = vadd.f32 %v1877_v45, %v1722_v55  ;;  %v2098_v10 = vsel %vm2023_vm5, %v4056_v47, 0.0  ;;  %v2314_v39 = vsel %vm2239_vm7, %v4073_v50, 0.0  ;;  %v557_v13 = vsel %vm482_vm2, %v3847_v18, 0.0 }
  0xe9   : > { %vm637_vm10 = vcmp.eq.s32.totalorder %v4601_v28, %v3855_v7  ;;  %vm858_vm8 = vcmp.eq.s32.totalorder %v4601_v28, %v3883_v30  ;;  %vm1074_vm11 = vcmp.eq.s32.totalorder %v4601_v28, %v3887_v34  ;;  %v1210_v62 = vadd.f32 %v1146_v41, %v994_v46 }
  0xea   : > { %v2162_v31 = vadd.f32 %v2098_v10, %v1941_v3  ;;  %v712_v21 = vsel %vm637_vm10, %v3871_v27, 0.0  ;;  %v933_v58 = vsel %vm858_vm8, %v3910_v43, 0.0  ;;  %v1149_v22 = vsel %vm1074_vm11, %v3930_v52, 0.0 }
  0xeb   : > { %v776_v44 = vadd.f32 %v712_v21, %v557_v13  ;;  %vm1650_vm12 = vcmp.eq.s32.totalorder %v4601_v28, %v3963_v1  ;;  %vm1805_vm4 = vcmp.eq.s32.totalorder %v4601_v28, %v3979_v5  ;;  %1407 = vmatmul.mubr.f32.gmra.mrb[24].mxu0 %v1210_v62  ;;  %vm2026_vm9 = vcmp.eq.s32.totalorder %v4601_v28, %v4045_v59 }
  0xec   : > { %v2378_v56 = vadd.f32 %v2314_v39, %v2162_v31  ;;  %v1725_v0 = vsel %vm1650_vm12, %v3973_v4, 0.0  ;;  %v1880_v8 = vsel %vm1805_vm4, %v3996_v29, 0.0  ;;  %v2101_v49 = vsel %vm2026_vm9, %v4059_v57, 0.0 }
  0xed   : > { %v997_v36 = vadd.f32 %v933_v58, %v776_v44  ;;  %v1944_v12 = vadd.f32 %v1880_v8, %v1725_v0  ;;  %vm2242_vm3 = vcmp.eq.s32.totalorder %v4601_v28, %v4052_v24  ;;  %vm481_vm6 = vcmp.eq.s32.totalorder %v4601_v28, %v4009_v38 }
  0xee   : > { %2576 = vmatmul.mubr.f32.gmra.mrb[24].mxu1 %v2378_v56  ;;  %v2317_v19 = vsel %vm2242_vm3, %v4076_v11, 0.0  ;;  %vm636_vm13 = vcmp.eq.s32.totalorder %v4601_v28, %v4013_v40  ;;  %vm857_vm15 = vcmp.eq.s32.totalorder %v4601_v28, %v4017_v42  ;;  %v556_v63 = vsel %vm481_vm6, %v3844_v16, 0.0 }
  0xef   : > { %v1213_v20 = vadd.f32 %v1149_v22, %v997_v36  ;;  %v2165_v54 = vadd.f32 %v2101_v49, %v1944_v12  ;;  %v711_v37 = vsel %vm636_vm13, %v3868_v26, 0.0  ;;  %v932_v41 = vsel %vm857_vm15, %v3905_v14, 0.0 }
  0xf0   : > { %v775_v53 = vadd.f32 %v711_v37, %v556_v63  ;;  %vm1073_vm14 = vcmp.eq.s32.totalorder %v4601_v28, %v4027_v9  ;;  %vm1649_vm0 = vcmp.eq.s32.totalorder %v4601_v28, %v4085_v32  ;;  %vm1804_vm1 = vcmp.eq.s32.totalorder %v4601_v28, %v4090_v48 }
  0xf1   : > { %1411 = vmatprep.mubr.f32.mxu0 %v1213_v20  ;;  %v2381_v61 = vadd.f32 %v2317_v19, %v2165_v54  ;;  %v1148_v33 = vsel %vm1073_vm14, %v3927_v51, 0.0  ;;  %v1724_v55 = vsel %vm1649_vm0, %v3970_v2, 0.0  ;;  %v1879_v46 = vsel %vm1804_vm1, %v3993_v60, 0.0 }
  0xf2   : > { %v996_v45 = vadd.f32 %v932_v41, %v775_v53  ;;  %vm2025_vm5 = vcmp.eq.s32.totalorder %v4601_v28, %v4093_v23  ;;  %vm2241_vm7 = vcmp.eq.s32.totalorder %v4601_v28, %v4096_v35  ;;  %v1943_v3 = vadd.f32 %v1879_v46, %v1724_v55 }
  0xf3   : > { %2580 = vmatprep.mubr.f32.mxu1 %v2381_v61  ;;  %v2100_v10 = vsel %vm2025_vm5, %v4056_v47, 0.0  ;;  %v2316_v39 = vsel %vm2241_vm7, %v4073_v50, 0.0  ;;  %vm484_vm2 = vcmp.eq.s32.totalorder %v4604_v6, %v3841_v15  ;;  %vm639_vm10 = vcmp.eq.s32.totalorder %v4604_v6, %v3855_v7 }
  0xf4   : > { %v1212_v13 = vadd.f32 %v1148_v33, %v996_v45  ;;  %v559_v62 = vsel %vm484_vm2, %v3847_v18, 0.0  ;;  %vm860_vm8 = vcmp.eq.s32.totalorder %v4604_v6, %v3883_v30  ;;  %v2164_v31 = vadd.f32 %v2100_v10, %v1943_v3 }
  0xf5   : > { %v714_v28 = vsel %vm639_vm10, %v3871_v27, 0.0  ;;  %v935_v21 = vsel %vm860_vm8, %v3910_v43, 0.0  ;;  %vm1076_vm11 = vcmp.eq.s32.totalorder %v4604_v6, %v3887_v34  ;;  %vm1652_vm12 = vcmp.eq.s32.totalorder %v4604_v6, %v3963_v1 }
  0xf6   : > { %1412 = vmatmul.mubr.f32.gmra.mrb[26].mxu0 %v1212_v13  ;;  %v778_v58 = vadd.f32 %v714_v28, %v559_v62  ;;  %v1151_v44 = vsel %vm1076_vm11, %v3930_v52, 0.0  ;;  %vm1807_vm4 = vcmp.eq.s32.totalorder %v4604_v6, %v3979_v5  ;;  %v2380_v22 = vadd.f32 %v2316_v39, %v2164_v31 }
  0xf7   : > { %v1727_v56 = vsel %vm1652_vm12, %v3973_v4, 0.0  ;;  %v1882_v0 = vsel %vm1807_vm4, %v3996_v29, 0.0  ;;  %vm2028_vm9 = vcmp.eq.s32.totalorder %v4604_v6, %v4045_v59  ;;  %vm2244_vm3 = vcmp.eq.s32.totalorder %v4604_v6, %v4052_v24 }
  0xf8   : > { %v999_v8 = vadd.f32 %v935_v21, %v778_v58  ;;  %v1946_v36 = vadd.f32 %v1882_v0, %v1727_v56  ;;  %v2103_v12 = vsel %vm2028_vm9, %v4059_v57, 0.0  ;;  %2581 = vmatmul.mubr.f32.gmra.mrb[26].mxu1 %v2380_v22  ;;  %v2319_v49 = vsel %vm2244_vm3, %v4076_v11, 0.0 }
  0xf9   : > { %vm483_vm6 = vcmp.eq.s32.totalorder %v4604_v6, %v4009_v38  ;;  %vm638_vm13 = vcmp.eq.s32.totalorder %v4604_v6, %v4013_v40  ;;  %vm859_vm15 = vcmp.eq.s32.totalorder %v4604_v6, %v4017_v42  ;;  %vm1075_vm14 = vcmp.eq.s32.totalorder %v4604_v6, %v4027_v9 }
  0xfa   : > { %v1215_v19 = vadd.f32 %v1151_v44, %v999_v8  ;;  %v2167_v20 = vadd.f32 %v2103_v12, %v1946_v36  ;;  %v558_v54 = vsel %vm483_vm6, %v3844_v16, 0.0  ;;  %v713_v63 = vsel %vm638_vm13, %v3868_v26, 0.0 }
  0xfb   : > { %v777_v37 = vadd.f32 %v713_v63, %v558_v54  ;;  %v934_v53 = vsel %vm859_vm15, %v3905_v14, 0.0  ;;  %vm1651_vm0 = vcmp.eq.s32.totalorder %v4604_v6, %v4085_v32  ;;  %v1150_v61 = vsel %vm1075_vm14, %v3927_v51, 0.0 }
  0xfc   : > { %1416 = vmatprep.mubr.f32.mxu0 %v1215_v19  ;;  %v2383_v41 = vadd.f32 %v2319_v49, %v2167_v20  ;;  %v1726_v33 = vsel %vm1651_vm0, %v3970_v2, 0.0  ;;  %vm1806_vm1 = vcmp.eq.s32.totalorder %v4604_v6, %v4090_v48  ;;  %vm2027_vm5 = vcmp.eq.s32.totalorder %v4604_v6, %v4093_v23 }
  0xfd   : > { %v998_v55 = vadd.f32 %v934_v53, %v777_v37  ;;  %v1881_v45 = vsel %vm1806_vm1, %v3993_v60, 0.0  ;;  %vm2243_vm7 = vcmp.eq.s32.totalorder %v4604_v6, %v4096_v35  ;;  %v2102_v3 = vsel %vm2027_vm5, %v4056_v47, 0.0 }
  0xfe   : > { %2585 = vmatprep.mubr.f32.mxu1 %v2383_v41  ;;  %v1945_v46 = vadd.f32 %v1881_v45, %v1726_v33  ;;  %v2318_v10 = vsel %vm2243_vm7, %v4073_v50, 0.0  ;;  %vm486_vm2 = vcmp.eq.s32.totalorder %v4607_v25, %v3841_v15  ;;  %vm641_vm10 = vcmp.eq.s32.totalorder %v4607_v25, %v3855_v7 }
  0xff   : > { %v1214_v39 = vadd.f32 %v1150_v61, %v998_v55  ;;  %v561_v13 = vsel %vm486_vm2, %v3847_v18, 0.0  ;;  %vm862_vm8 = vcmp.eq.s32.totalorder %v4607_v25, %v3883_v30  ;;  %v716_v6 = vsel %vm641_vm10, %v3871_v27, 0.0 }
 0x100   : > { %v2166_v62 = vadd.f32 %v2102_v3, %v1945_v46  ;;  %v937_v31 = vsel %vm862_vm8, %v3910_v43, 0.0  ;;  %vm1078_vm11 = vcmp.eq.s32.totalorder %v4607_v25, %v3887_v34  ;;  %v780_v28 = vadd.f32 %v716_v6, %v561_v13 }
 0x101   : > { %1417 = vmatmul.mubr.f32.gmra.mrb[28].mxu0 %v1214_v39  ;;  %v1153_v21 = vsel %vm1078_vm11, %v3930_v52, 0.0  ;;  %vm1654_vm12 = vcmp.eq.s32.totalorder %v4607_v25, %v3963_v1  ;;  %vm1809_vm4 = vcmp.eq.s32.totalorder %v4607_v25, %v3979_v5  ;;  %vm2030_vm9 = vcmp.eq.s32.totalorder %v4607_v25, %v4045_v59 }
 0x102   : > { %v2382_v58 = vadd.f32 %v2318_v10, %v2166_v62  ;;  %v1729_v44 = vsel %vm1654_vm12, %v3973_v4, 0.0  ;;  %v1884_v22 = vsel %vm1809_vm4, %v3996_v29, 0.0  ;;  %v1001_v56 = vadd.f32 %v937_v31, %v780_v28 }
 0x103   : > { %v1948_v0 = vadd.f32 %v1884_v22, %v1729_v44  ;;  %v2105_v8 = vsel %vm2030_vm9, %v4059_v57, 0.0  ;;  %vm2246_vm3 = vcmp.eq.s32.totalorder %v4607_v25, %v4052_v24  ;;  %vm485_vm6 = vcmp.eq.s32.totalorder %v4607_v25, %v4009_v38 }
 0x104   : > { %2586 = vmatmul.mubr.f32.gmra.mrb[28].mxu1 %v2382_v58  ;;  %v2321_v36 = vsel %vm2246_vm3, %v4076_v11, 0.0  ;;  %vm640_vm13 = vcmp.eq.s32.totalorder %v4607_v25, %v4013_v40  ;;  %vm861_vm15 = vcmp.eq.s32.totalorder %v4607_v25, %v4017_v42  ;;  %v1217_v12 = vadd.f32 %v1153_v21, %v1001_v56 }
 0x105   : > { %v2169_v49 = vadd.f32 %v2105_v8, %v1948_v0  ;;  %v560_v19 = vsel %vm485_vm6, %v3844_v16, 0.0  ;;  %v715_v20 = vsel %vm640_vm13, %v3868_v26, 0.0  ;;  %v936_v63 = vsel %vm861_vm15, %v3905_v14, 0.0 }
 0x106   : > { %v779_v54 = vadd.f32 %v715_v20, %v560_v19  ;;  %vm1077_vm14 = vcmp.eq.s32.totalorder %v4607_v25, %v4027_v9  ;;  %vm1653_vm0 = vcmp.eq.s32.totalorder %v4607_v25, %v4085_v32  ;;  %1421 = vmatprep.mubr.f32.mxu0 %v1217_v12  ;;  %vm1808_vm1 = vcmp.eq.s32.totalorder %v4607_v25, %v4090_v48 }
 0x107   : > { %v2385_v37 = vadd.f32 %v2321_v36, %v2169_v49  ;;  %v1152_v53 = vsel %vm1077_vm14, %v3927_v51, 0.0  ;;  %v1728_v41 = vsel %vm1653_vm0, %v3970_v2, 0.0  ;;  %v1883_v33 = vsel %vm1808_vm1, %v3993_v60, 0.0 }
 0x108   : > { %v1000_v61 = vadd.f32 %v936_v63, %v779_v54  ;;  %vm2029_vm5 = vcmp.eq.s32.totalorder %v4607_v25, %v4093_v23  ;;  %vm2245_vm7 = vcmp.eq.s32.totalorder %v4607_v25, %v4096_v35  ;;  %v1947_v55 = vadd.f32 %v1883_v33, %v1728_v41 }
 0x109   : > { %2590 = vmatprep.mubr.f32.mxu1 %v2385_v37  ;;  %v2104_v45 = vsel %vm2029_vm5, %v4056_v47, 0.0  ;;  %v2320_v46 = vsel %vm2245_vm7, %v4073_v50, 0.0  ;;  %v390_v3 = vadd.s32 128, %v3665_v17  ;;  %v4835_v39 = vadd.s32 136, %v3665_v17 }
 0x10a   : > { %v1216_v10 = vadd.f32 %v1152_v53, %v1000_v61  ;;  %v4838_v13 = vadd.s32 144, %v3665_v17  ;;  %v4841_v62 = vadd.s32 152, %v3665_v17  ;;  %v2168_v6 = vadd.f32 %v2104_v45, %v1947_v55 }
 0x10b   : > { %vm488_vm2 = vcmp.eq.s32.totalorder %v390_v3, %v3841_v15  ;;  %vm643_vm10 = vcmp.eq.s32.totalorder %v390_v3, %v3855_v7  ;;  %vm864_vm8 = vcmp.eq.s32.totalorder %v390_v3, %v3883_v30  ;;  %vm1080_vm11 = vcmp.eq.s32.totalorder %v390_v3, %v3887_v34 }
 0x10c   : > { %1422 = vmatmul.mubr.f32.gmra.mrb[30].mxu0 %v1216_v10  ;;  %v563_v25 = vsel %vm488_vm2, %v3847_v18, 0.0  ;;  %v718_v31 = vsel %vm643_vm10, %v3871_v27, 0.0  ;;  %v939_v28 = vsel %vm864_vm8, %v3910_v43, 0.0  ;;  %v2384_v21 = vadd.f32 %v2320_v46, %v2168_v6 }
 0x10d   : > { %v782_v58 = vadd.f32 %v718_v31, %v563_v25  ;;  %v1155_v44 = vsel %vm1080_vm11, %v3930_v52, 0.0  ;;  %vm1656_vm12 = vcmp.eq.s32.totalorder %v390_v3, %v3963_v1  ;;  %vm1811_vm4 = vcmp.eq.s32.totalorder %v390_v3, %v3979_v5 }
 0x10e   : > { %v1731_v22 = vsel %vm1656_vm12, %v3973_v4, 0.0  ;;  %vm2032_vm9 = vcmp.eq.s32.totalorder %v390_v3, %v4045_v59  ;;  %vm2248_vm3 = vcmp.eq.s32.totalorder %v390_v3, %v4052_v24  ;;  %2591 = vmatmul.mubr.f32.gmra.mrb[30].mxu1 %v2384_v21  ;;  %v1886_v0 = vsel %vm1811_vm4, %v3996_v29, 0.0 }
 0x10f   : > { %v1003_v56 = vadd.f32 %v939_v28, %v782_v58  ;;  %v2107_v8 = vsel %vm2032_vm9, %v4059_v57, 0.0  ;;  %v2323_v36 = vsel %vm2248_vm3, %v4076_v11, 0.0  ;;  %v1950_v12 = vadd.f32 %v1886_v0, %v1731_v22 }
 0x110   : > { %vm487_vm6 = vcmp.eq.s32.totalorder %v390_v3, %v4009_v38  ;;  %vm642_vm13 = vcmp.eq.s32.totalorder %v390_v3, %v4013_v40  ;;  %vm863_vm15 = vcmp.eq.s32.totalorder %v390_v3, %v4017_v42  ;;  %vm1079_vm14 = vcmp.eq.s32.totalorder %v390_v3, %v4027_v9 }
 0x111   : > { %v1219_v49 = vadd.f32 %v1155_v44, %v1003_v56  ;;  %v562_v19 = vsel %vm487_vm6, %v3844_v16, 0.0  ;;  %v717_v20 = vsel %vm642_vm13, %v3868_v26, 0.0  ;;  %v938_v54 = vsel %vm863_vm15, %v3905_v14, 0.0 }
 0x112   : > { %v2171_v63 = vadd.f32 %v2107_v8, %v1950_v12  ;;  %v781_v37 = vadd.f32 %v717_v20, %v562_v19  ;;  %vm1655_vm0 = vcmp.eq.s32.totalorder %v390_v3, %v4085_v32  ;;  %v1154_v53 = vsel %vm1079_vm14, %v3927_v51, 0.0 }
 0x113   : > { %1426 = vmatprep.mubr.f32.mxu0 %v1219_v49  ;;  %v1730_v41 = vsel %vm1655_vm0, %v3970_v2, 0.0  ;;  %vm1810_vm1 = vcmp.eq.s32.totalorder %v390_v3, %v4090_v48  ;;  %vm2031_vm5 = vcmp.eq.s32.totalorder %v390_v3, %v4093_v23  ;;  %vm2247_vm7 = vcmp.eq.s32.totalorder %v390_v3, %v4096_v35 }
 0x114   : > { %v2387_v61 = vadd.f32 %v2323_v36, %v2171_v63  ;;  %v1002_v33 = vadd.f32 %v938_v54, %v781_v37  ;;  %v1885_v55 = vsel %vm1810_vm1, %v3993_v60, 0.0  ;;  %v2106_v45 = vsel %vm2031_vm5, %v4056_v47, 0.0 }
 0x115   : > { %v1949_v46 = vadd.f32 %v1885_v55, %v1730_v41  ;;  %vm490_vm2 = vcmp.eq.s32.totalorder %v4835_v39, %v3841_v15  ;;  %vm645_vm10 = vcmp.eq.s32.totalorder %v4835_v39, %v3855_v7  ;;  %v2322_v6 = vsel %vm2247_vm7, %v4073_v50, 0.0 }
 0x116   : > { %2595 = vmatprep.mubr.f32.mxu1 %v2387_v61  ;;  %v1218_v10 = vadd.f32 %v1154_v53, %v1002_v33  ;;  %v565_v25 = vsel %vm490_vm2, %v3847_v18, 0.0  ;;  %v720_v31 = vsel %vm645_vm10, %v3871_v27, 0.0  ;;  %vm866_vm8 = vcmp.eq.s32.totalorder %v4835_v39, %v3883_v30 }
 0x117   : > { %v2170_v28 = vadd.f32 %v2106_v45, %v1949_v46  ;;  %v784_v21 = vadd.f32 %v720_v31, %v565_v25  ;;  %vm1082_vm11 = vcmp.eq.s32.totalorder %v4835_v39, %v3887_v34  ;;  %v941_v3 = vsel %vm866_vm8, %v3910_v43, 0.0 }
 0x118   : > { %1427 = vmatmul.mubr.f32.gmra.mrb[32].mxu0 %v1218_v10  ;;  %v1157_v58 = vsel %vm1082_vm11, %v3930_v52, 0.0  ;;  %vm1658_vm12 = vcmp.eq.s32.totalorder %v4835_v39, %v3963_v1  ;;  %vm1813_vm4 = vcmp.eq.s32.totalorder %v4835_v39, %v3979_v5  ;;  %vm2034_vm9 = vcmp.eq.s32.totalorder %v4835_v39, %v4045_v59 }
 0x119   : > { %v2386_v44 = vadd.f32 %v2322_v6, %v2170_v28  ;;  %v1005_v22 = vadd.f32 %v941_v3, %v784_v21  ;;  %v1733_v56 = vsel %vm1658_vm12, %v3973_v4, 0.0  ;;  %v1888_v0 = vsel %vm1813_vm4, %v3996_v29, 0.0 }
 0x11a   : > { %v1952_v8 = vadd.f32 %v1888_v0, %v1733_v56  ;;  %vm2250_vm3 = vcmp.eq.s32.totalorder %v4835_v39, %v4052_v24  ;;  %vm489_vm6 = vcmp.eq.s32.totalorder %v4835_v39, %v4009_v38  ;;  %v2109_v12 = vsel %vm2034_vm9, %v4059_v57, 0.0 }
 0x11b   : > { %2596 = vmatmul.mubr.f32.gmra.mrb[32].mxu1 %v2386_v44  ;;  %v1221_v36 = vadd.f32 %v1157_v58, %v1005_v22  ;;  %v2325_v49 = vsel %vm2250_vm3, %v4076_v11, 0.0  ;;  %v564_v19 = vsel %vm489_vm6, %v3844_v16, 0.0  ;;  %vm644_vm13 = vcmp.eq.s32.totalorder %v4835_v39, %v4013_v40 }
 0x11c   : > { %v2173_v20 = vadd.f32 %v2109_v12, %v1952_v8  ;;  %vm865_vm15 = vcmp.eq.s32.totalorder %v4835_v39, %v4017_v42  ;;  %vm1081_vm14 = vcmp.eq.s32.totalorder %v4835_v39, %v4027_v9  ;;  %v719_v54 = vsel %vm644_vm13, %v3868_v26, 0.0 }
 0x11d   : > { %1431 = vmatprep.mubr.f32.mxu0 %v1221_v36  ;;  %v940_v63 = vsel %vm865_vm15, %v3905_v14, 0.0  ;;  %v1156_v37 = vsel %vm1081_vm14, %v3927_v51, 0.0  ;;  %vm1657_vm0 = vcmp.eq.s32.totalorder %v4835_v39, %v4085_v32  ;;  %v783_v41 = vadd.f32 %v719_v54, %v564_v19 }
 0x11e   : > { %v2389_v53 = vadd.f32 %v2325_v49, %v2173_v20  ;;  %v1732_v61 = vsel %vm1657_vm0, %v3970_v2, 0.0  ;;  %vm1812_vm1 = vcmp.eq.s32.totalorder %v4835_v39, %v4090_v48  ;;  %vm2033_vm5 = vcmp.eq.s32.totalorder %v4835_v39, %v4093_v23 }
 0x11f   : > { %v1887_v33 = vsel %vm1812_vm1, %v3993_v60, 0.0  ;;  %vm2249_vm7 = vcmp.eq.s32.totalorder %v4835_v39, %v4096_v35  ;;  %vm492_vm2 = vcmp.eq.s32.totalorder %v4838_v13, %v3841_v15  ;;  %v1004_v55 = vadd.f32 %v940_v63, %v783_v41 }
 0x120   : > { %2600 = vmatprep.mubr.f32.mxu1 %v2389_v53  ;;  %v1951_v45 = vadd.f32 %v1887_v33, %v1732_v61  ;;  %v2108_v46 = vsel %vm2033_vm5, %v4056_v47, 0.0  ;;  %v2324_v10 = vsel %vm2249_vm7, %v4073_v50, 0.0  ;;  %v567_v6 = vsel %vm492_vm2, %v3847_v18, 0.0 }
 0x121   : > { %vm647_vm10 = vcmp.eq.s32.totalorder %v4838_v13, %v3855_v7  ;;  %vm868_vm8 = vcmp.eq.s32.totalorder %v4838_v13, %v3883_v30  ;;  %vm1084_vm11 = vcmp.eq.s32.totalorder %v4838_v13, %v3887_v34  ;;  %v1220_v39 = vadd.f32 %v1156_v37, %v1004_v55 }
 0x122   : > { %v2172_v25 = vadd.f32 %v2108_v46, %v1951_v45  ;;  %v722_v31 = vsel %vm647_vm10, %v3871_v27, 0.0  ;;  %v943_v28 = vsel %vm868_vm8, %v3910_v43, 0.0  ;;  %v1159_v3 = vsel %vm1084_vm11, %v3930_v52, 0.0 }
 0x123   : > { %v786_v21 = vadd.f32 %v722_v31, %v567_v6  ;;  %vm1660_vm12 = vcmp.eq.s32.totalorder %v4838_v13, %v3963_v1  ;;  %vm1815_vm4 = vcmp.eq.s32.totalorder %v4838_v13, %v3979_v5  ;;  %1432 = vmatmul.mubr.f32.gmra.mrb[34].mxu0 %v1220_v39  ;;  %vm2036_vm9 = vcmp.eq.s32.totalorder %v4838_v13, %v4045_v59 }
 0x124   : > { %v2388_v58 = vadd.f32 %v2324_v10, %v2172_v25  ;;  %v1735_v44 = vsel %vm1660_vm12, %v3973_v4, 0.0  ;;  %v1890_v22 = vsel %vm1815_vm4, %v3996_v29, 0.0  ;;  %v2111_v8 = vsel %vm2036_vm9, %v4059_v57, 0.0 }
 0x125   : > { %v1007_v56 = vadd.f32 %v943_v28, %v786_v21  ;;  %v1954_v0 = vadd.f32 %v1890_v22, %v1735_v44  ;;  %vm2252_vm3 = vcmp.eq.s32.totalorder %v4838_v13, %v4052_v24  ;;  %vm491_vm6 = vcmp.eq.s32.totalorder %v4838_v13, %v4009_v38 }
 0x126   : > { %2601 = vmatmul.mubr.f32.gmra.mrb[34].mxu1 %v2388_v58  ;;  %v2327_v36 = vsel %vm2252_vm3, %v4076_v11, 0.0  ;;  %vm646_vm13 = vcmp.eq.s32.totalorder %v4838_v13, %v4013_v40  ;;  %vm867_vm15 = vcmp.eq.s32.totalorder %v4838_v13, %v4017_v42  ;;  %v566_v19 = vsel %vm491_vm6, %v3844_v16, 0.0 }
 0x127   : > { %v1223_v12 = vadd.f32 %v1159_v3, %v1007_v56  ;;  %v2175_v49 = vadd.f32 %v2111_v8, %v1954_v0  ;;  %v721_v20 = vsel %vm646_vm13, %v3868_v26, 0.0  ;;  %v942_v63 = vsel %vm867_vm15, %v3905_v14, 0.0 }
 0x128   : > { %v785_v54 = vadd.f32 %v721_v20, %v566_v19  ;;  %vm1083_vm14 = vcmp.eq.s32.totalorder %v4838_v13, %v4027_v9  ;;  %vm1659_vm0 = vcmp.eq.s32.totalorder %v4838_v13, %v4085_v32  ;;  %vm1814_vm1 = vcmp.eq.s32.totalorder %v4838_v13, %v4090_v48 }
 0x129   : > { %1436 = vmatprep.mubr.f32.mxu0 %v1223_v12  ;;  %v2391_v37 = vadd.f32 %v2327_v36, %v2175_v49  ;;  %v1158_v53 = vsel %vm1083_vm14, %v3927_v51, 0.0  ;;  %v1734_v41 = vsel %vm1659_vm0, %v3970_v2, 0.0  ;;  %v1889_v33 = vsel %vm1814_vm1, %v3993_v60, 0.0 }
 0x12a   : > { %v1006_v61 = vadd.f32 %v942_v63, %v785_v54  ;;  %vm2035_vm5 = vcmp.eq.s32.totalorder %v4838_v13, %v4093_v23  ;;  %vm2251_vm7 = vcmp.eq.s32.totalorder %v4838_v13, %v4096_v35  ;;  %v1953_v55 = vadd.f32 %v1889_v33, %v1734_v41 }
 0x12b   : > { %2605 = vmatprep.mubr.f32.mxu1 %v2391_v37  ;;  %v2110_v45 = vsel %vm2035_vm5, %v4056_v47, 0.0  ;;  %v2326_v46 = vsel %vm2251_vm7, %v4073_v50, 0.0  ;;  %vm494_vm2 = vcmp.eq.s32.totalorder %v4841_v62, %v3841_v15  ;;  %vm649_vm10 = vcmp.eq.s32.totalorder %v4841_v62, %v3855_v7 }
 0x12c   : > { %v1222_v10 = vadd.f32 %v1158_v53, %v1006_v61  ;;  %v569_v6 = vsel %vm494_vm2, %v3847_v18, 0.0  ;;  %vm870_vm8 = vcmp.eq.s32.totalorder %v4841_v62, %v3883_v30  ;;  %v2174_v39 = vadd.f32 %v2110_v45, %v1953_v55 }
 0x12d   : > { %v724_v13 = vsel %vm649_vm10, %v3871_v27, 0.0  ;;  %v945_v25 = vsel %vm870_vm8, %v3910_v43, 0.0  ;;  %vm1086_vm11 = vcmp.eq.s32.totalorder %v4841_v62, %v3887_v34  ;;  %vm1662_vm12 = vcmp.eq.s32.totalorder %v4841_v62, %v3963_v1 }
 0x12e   : > { %1437 = vmatmul.mubr.f32.gmra.mrb[36].mxu0 %v1222_v10  ;;  %v788_v31 = vadd.f32 %v724_v13, %v569_v6  ;;  %v1161_v28 = vsel %vm1086_vm11, %v3930_v52, 0.0  ;;  %vm1817_vm4 = vcmp.eq.s32.totalorder %v4841_v62, %v3979_v5  ;;  %v2390_v21 = vadd.f32 %v2326_v46, %v2174_v39 }
 0x12f   : > { %v1737_v3 = vsel %vm1662_vm12, %v3973_v4, 0.0  ;;  %v1892_v58 = vsel %vm1817_vm4, %v3996_v29, 0.0  ;;  %vm2038_vm9 = vcmp.eq.s32.totalorder %v4841_v62, %v4045_v59  ;;  %vm2254_vm3 = vcmp.eq.s32.totalorder %v4841_v62, %v4052_v24 }
 0x130   : > { %v1009_v44 = vadd.f32 %v945_v25, %v788_v31  ;;  %v1956_v22 = vadd.f32 %v1892_v58, %v1737_v3  ;;  %v2113_v56 = vsel %vm2038_vm9, %v4059_v57, 0.0  ;;  %2606 = vmatmul.mubr.f32.gmra.mrb[36].mxu1 %v2390_v21  ;;  %v2329_v0 = vsel %vm2254_vm3, %v4076_v11, 0.0 }
 0x131   : > { %vm493_vm6 = vcmp.eq.s32.totalorder %v4841_v62, %v4009_v38  ;;  %vm648_vm13 = vcmp.eq.s32.totalorder %v4841_v62, %v4013_v40  ;;  %vm869_vm15 = vcmp.eq.s32.totalorder %v4841_v62, %v4017_v42  ;;  %vm1085_vm14 = vcmp.eq.s32.totalorder %v4841_v62, %v4027_v9 }
 0x132   : > { %v1225_v8 = vadd.f32 %v1161_v28, %v1009_v44  ;;  %v2177_v36 = vadd.f32 %v2113_v56, %v1956_v22  ;;  %v568_v12 = vsel %vm493_vm6, %v3844_v16, 0.0  ;;  %v723_v49 = vsel %vm648_vm13, %v3868_v26, 0.0 }
 0x133   : > { %v787_v19 = vadd.f32 %v723_v49, %v568_v12  ;;  %v944_v20 = vsel %vm869_vm15, %v3905_v14, 0.0  ;;  %vm1661_vm0 = vcmp.eq.s32.totalorder %v4841_v62, %v4085_v32  ;;  %v1160_v63 = vsel %vm1085_vm14, %v3927_v51, 0.0 }
 0x134   : > { %1441 = vmatprep.mubr.f32.mxu0 %v1225_v8  ;;  %v2393_v54 = vadd.f32 %v2329_v0, %v2177_v36  ;;  %v1736_v37 = vsel %vm1661_vm0, %v3970_v2, 0.0  ;;  %vm1816_vm1 = vcmp.eq.s32.totalorder %v4841_v62, %v4090_v48  ;;  %vm2037_vm5 = vcmp.eq.s32.totalorder %v4841_v62, %v4093_v23 }
 0x135   : > { %v1008_v53 = vadd.f32 %v944_v20, %v787_v19  ;;  %v1891_v41 = vsel %vm1816_vm1, %v3993_v60, 0.0  ;;  %vm2253_vm7 = vcmp.eq.s32.totalorder %v4841_v62, %v4096_v35  ;;  %v2112_v33 = vsel %vm2037_vm5, %v4056_v47, 0.0 }
 0x136   : > { %2610 = vmatprep.mubr.f32.mxu1 %v2393_v54  ;;  %v1955_v61 = vadd.f32 %v1891_v41, %v1736_v37  ;;  %v2328_v55 = vsel %vm2253_vm7, %v4073_v50, 0.0  ;;  %v394_v45 = vadd.s32 160, %v3665_v17  ;;  %v5021_v10 = vadd.s32 168, %v3665_v17 }
 0x137   : > { %v1224_v46 = vadd.f32 %v1160_v63, %v1008_v53  ;;  %v5024_v6 = vadd.s32 176, %v3665_v17  ;;  %v5027_v39 = vadd.s32 184, %v3665_v17 }
 0x138   : > { %v2176_v13 = vadd.f32 %v2112_v33, %v1955_v61  ;;  %vm496_vm2 = vcmp.eq.s32.totalorder %v394_v45, %v3841_v15  ;;  %vm651_vm10 = vcmp.eq.s32.totalorder %v394_v45, %v3855_v7  ;;  %vm872_vm8 = vcmp.eq.s32.totalorder %v394_v45, %v3883_v30 }
 0x139   : > { %1442 = vmatmul.mubr.f32.gmra.mrb[38].mxu0 %v1224_v46  ;;  %v571_v62 = vsel %vm496_vm2, %v3847_v18, 0.0  ;;  %v726_v25 = vsel %vm651_vm10, %v3871_v27, 0.0  ;;  %v947_v31 = vsel %vm872_vm8, %v3910_v43, 0.0  ;;  %vm1088_vm11 = vcmp.eq.s32.totalorder %v394_v45, %v3887_v34 }
 0x13a   : > { %v2392_v28 = vadd.f32 %v2328_v55, %v2176_v13  ;;  %v790_v21 = vadd.f32 %v726_v25, %v571_v62  ;;  %v1163_v3 = vsel %vm1088_vm11, %v3930_v52, 0.0  ;;  %vm1664_vm12 = vcmp.eq.s32.totalorder %v394_v45, %v3963_v1 }
 0x13b   : > { %v1739_v58 = vsel %vm1664_vm12, %v3973_v4, 0.0  ;;  %vm1819_vm4 = vcmp.eq.s32.totalorder %v394_v45, %v3979_v5  ;;  %vm2040_vm9 = vcmp.eq.s32.totalorder %v394_v45, %v4045_v59  ;;  %vm2256_vm3 = vcmp.eq.s32.totalorder %v394_v45, %v4052_v24 }
 0x13c   : > { %2611 = vmatmul.mubr.f32.gmra.mrb[38].mxu1 %v2392_v28  ;;  %v1011_v44 = vadd.f32 %v947_v31, %v790_v21  ;;  %v1894_v22 = vsel %vm1819_vm4, %v3996_v29, 0.0  ;;  %v2115_v56 = vsel %vm2040_vm9, %v4059_v57, 0.0  ;;  %v2331_v0 = vsel %vm2256_vm3, %v4076_v11, 0.0 }
 0x13d   : > { %v1958_v8 = vadd.f32 %v1894_v22, %v1739_v58  ;;  %vm495_vm6 = vcmp.eq.s32.totalorder %v394_v45, %v4009_v38  ;;  %vm650_vm13 = vcmp.eq.s32.totalorder %v394_v45, %v4013_v40  ;;  %vm871_vm15 = vcmp.eq.s32.totalorder %v394_v45, %v4017_v42 }
 0x13e   : > { %v1227_v36 = vadd.f32 %v1163_v3, %v1011_v44  ;;  %v570_v12 = vsel %vm495_vm6, %v3844_v16, 0.0  ;;  %v725_v49 = vsel %vm650_vm13, %v3868_v26, 0.0  ;;  %v946_v19 = vsel %vm871_vm15, %v3905_v14, 0.0 }
 0x13f   : > { %v2179_v20 = vadd.f32 %v2115_v56, %v1958_v8  ;;  %v789_v54 = vadd.f32 %v725_v49, %v570_v12  ;;  %vm1087_vm14 = vcmp.eq.s32.totalorder %v394_v45, %v4027_v9  ;;  %vm1663_vm0 = vcmp.eq.s32.totalorder %v394_v45, %v4085_v32  ;;  %v5079_v56 = vpop.f32.mrb[0].mxu0 }
 0x140   : > { %1446 = vmatprep.mubr.f32.mxu0 %v1227_v36  ;;  %v1162_v63 = vsel %vm1087_vm14, %v3927_v51, 0.0  ;;  %v1738_v37 = vsel %vm1663_vm0, %v3970_v2, 0.0  ;;  %vm1818_vm1 = vcmp.eq.s32.totalorder %v394_v45, %v4090_v48  ;;  %vm2039_vm5 = vcmp.eq.s32.totalorder %v394_v45, %v4093_v23  ;;  %v1350_v8 = vpop.f32.mrb[1].mxu0 }
 0x141   : > { %v2395_v53 = vadd.f32 %v2331_v0, %v2179_v20  ;;  %v1010_v41 = vadd.f32 %v946_v19, %v789_v54  ;;  %v1893_v61 = vsel %vm1818_vm1, %v3993_v60, 0.0  ;;  %v2114_v33 = vsel %vm2039_vm5, %v4056_v47, 0.0  ;;  %v5096_v54 = vpop.f32.mrb[0].mxu1 }
 0x142   : > { %v1957_v55 = vadd.f32 %v1893_v61, %v1738_v37  ;;  %vm2255_vm7 = vcmp.eq.s32.totalorder %v394_v45, %v4096_v35  ;;  %vm498_vm2 = vcmp.eq.s32.totalorder %v5021_v10, %v3841_v15  ;;  %vm653_vm10 = vcmp.eq.s32.totalorder %v5021_v10, %v3855_v7  ;;  %v2519_v61 = vpop.f32.mrb[1].mxu1 }
 0x143   : > { %2615 = vmatprep.mubr.f32.mxu1 %v2395_v53  ;;  %v1226_v46 = vadd.f32 %v1162_v63, %v1010_v41  ;;  %v2330_v13 = vsel %vm2255_vm7, %v4073_v50, 0.0  ;;  %v573_v62 = vsel %vm498_vm2, %v3847_v18, 0.0  ;;  %v728_v25 = vsel %vm653_vm10, %v3871_v27, 0.0 }
 0x144   : > { %v2178_v31 = vadd.f32 %v2114_v33, %v1957_v55  ;;  %v792_v28 = vadd.f32 %v728_v25, %v573_v62  ;;  %vm874_vm8 = vcmp.eq.s32.totalorder %v5021_v10, %v3883_v30  ;;  %vm1090_vm11 = vcmp.eq.s32.totalorder %v5021_v10, %v3887_v34  ;;  %v5098_v63 = vpop.f32.mrb[2].mxu0 }
 0x145   : > { %1447 = vmatmul.mubr.f32.gmra.mrb[40].mxu0 %v1226_v46  ;;  %v949_v45 = vsel %vm874_vm8, %v3910_v43, 0.0  ;;  %v1165_v21 = vsel %vm1090_vm11, %v3930_v52, 0.0  ;;  %vm1666_vm12 = vcmp.eq.s32.totalorder %v5021_v10, %v3963_v1  ;;  %vm1821_vm4 = vcmp.eq.s32.totalorder %v5021_v10, %v3979_v5  ;;  %v1355_v33 = vpop.f32.mrb[3].mxu0 }
 0x146   : > { %v2394_v3 = vadd.f32 %v2330_v13, %v2178_v31  ;;  %v1013_v58 = vadd.f32 %v949_v45, %v792_v28  ;;  %v1741_v44 = vsel %vm1666_vm12, %v3973_v4, 0.0  ;;  %v1896_v22 = vsel %vm1821_vm4, %v3996_v29, 0.0  ;;  %v5108_v62 = vpop.f32.mrb[2].mxu1 }
 0x147   : > { %v1960_v0 = vadd.f32 %v1896_v22, %v1741_v44  ;;  %vm2042_vm9 = vcmp.eq.s32.totalorder %v5021_v10, %v4045_v59  ;;  %vm2258_vm3 = vcmp.eq.s32.totalorder %v5021_v10, %v4052_v24  ;;  %vm497_vm6 = vcmp.eq.s32.totalorder %v5021_v10, %v4009_v38  ;;  %v2524_v31 = vpop.f32.mrb[3].mxu1 }
 0x148   : > { %2616 = vmatmul.mubr.f32.gmra.mrb[40].mxu1 %v2394_v3  ;;  %v1229_v36 = vadd.f32 %v1165_v21, %v1013_v58  ;;  %v2117_v12 = vsel %vm2042_vm9, %v4059_v57, 0.0  ;;  %v2333_v49 = vsel %vm2258_vm3, %v4076_v11, 0.0  ;;  %v572_v19 = vsel %vm497_vm6, %v3844_v16, 0.0 }
 0x149   : > { %v2181_v20 = vadd.f32 %v2117_v12, %v1960_v0  ;;  %vm652_vm13 = vcmp.eq.s32.totalorder %v5021_v10, %v4013_v40  ;;  %vm873_vm15 = vcmp.eq.s32.totalorder %v5021_v10, %v4017_v42  ;;  %vm1089_vm14 = vcmp.eq.s32.totalorder %v5021_v10, %v4027_v9 }
 0x14a   : > { %1451 = vmatprep.mubr.f32.mxu0 %v1229_v36  ;;  %v727_v37 = vsel %vm652_vm13, %v3868_v26, 0.0  ;;  %v948_v53 = vsel %vm873_vm15, %v3905_v14, 0.0  ;;  %v1164_v41 = vsel %vm1089_vm14, %v3927_v51, 0.0  ;;  %vm1665_vm0 = vcmp.eq.s32.totalorder %v5021_v10, %v4085_v32 }
 0x14b   : > { %v2397_v55 = vadd.f32 %v2333_v49, %v2181_v20  ;;  %v791_v46 = vadd.f32 %v727_v37, %v572_v19  ;;  %v1740_v13 = vsel %vm1665_vm0, %v3970_v2, 0.0  ;;  %vm1820_vm1 = vcmp.eq.s32.totalorder %v5021_v10, %v4090_v48 }
 0x14c   : > { %v1895_v25 = vsel %vm1820_vm1, %v3993_v60, 0.0  ;;  %vm2041_vm5 = vcmp.eq.s32.totalorder %v5021_v10, %v4093_v23  ;;  %vm2257_vm7 = vcmp.eq.s32.totalorder %v5021_v10, %v4096_v35  ;;  %vm500_vm2 = vcmp.eq.s32.totalorder %v5024_v6, %v3841_v15 }
 0x14d   : > { %2620 = vmatprep.mubr.f32.mxu1 %v2397_v55  ;;  %v1012_v28 = vadd.f32 %v948_v53, %v791_v46  ;;  %v1959_v45 = vadd.f32 %v1895_v25, %v1740_v13  ;;  %v2116_v21 = vsel %vm2041_vm5, %v4056_v47, 0.0  ;;  %v2332_v3 = vsel %vm2257_vm7, %v4073_v50, 0.0 }
 0x14e   : > { %v575_v58 = vsel %vm500_vm2, %v3847_v18, 0.0  ;;  %vm655_vm10 = vcmp.eq.s32.totalorder %v5024_v6, %v3855_v7  ;;  %vm876_vm8 = vcmp.eq.s32.totalorder %v5024_v6, %v3883_v30  ;;  %vm1092_vm11 = vcmp.eq.s32.totalorder %v5024_v6, %v3887_v34 }
 0x14f   : > { %v1228_v10 = vadd.f32 %v1164_v41, %v1012_v28  ;;  %v2180_v44 = vadd.f32 %v2116_v21, %v1959_v45  ;;  %v730_v22 = vsel %vm655_vm10, %v3871_v27, 0.0  ;;  %v951_v0 = vsel %vm876_vm8, %v3910_v43, 0.0  ;;  %v5128_v8 = vpop.f32.mrb[4].mxu0 }
 0x150   : > { %v794_v36 = vadd.f32 %v730_v22, %v575_v58  ;;  %v1167_v12 = vsel %vm1092_vm11, %v3930_v52, 0.0  ;;  %vm1668_vm12 = vcmp.eq.s32.totalorder %v5024_v6, %v3963_v1  ;;  %vm1823_vm4 = vcmp.eq.s32.totalorder %v5024_v6, %v3979_v5  ;;  %v1360_v49 = vpop.f32.mrb[5].mxu0 }
 0x151   : > { %1452 = vmatmul.mubr.f32.gmra.mrb[42].mxu0 %v1228_v10  ;;  %v2396_v19 = vadd.f32 %v2332_v3, %v2180_v44  ;;  %v1743_v20 = vsel %vm1668_vm12, %v3973_v4, 0.0  ;;  %v1898_v37 = vsel %vm1823_vm4, %v3996_v29, 0.0  ;;  %vm2044_vm9 = vcmp.eq.s32.totalorder %v5024_v6, %v4045_v59 }
 0x152   : > { %v1015_v53 = vadd.f32 %v951_v0, %v794_v36  ;;  %v1962_v41 = vadd.f32 %v1898_v37, %v1743_v20  ;;  %v2119_v61 = vsel %vm2044_vm9, %v4059_v57, 0.0  ;;  %vm2260_vm3 = vcmp.eq.s32.totalorder %v5024_v6, %v4052_v24  ;;  %v5142_v33 = vpop.f32.mrb[4].mxu1 }
 0x153   : > { %2621 = vmatmul.mubr.f32.gmra.mrb[42].mxu1 %v2396_v19  ;;  %v2335_v55 = vsel %vm2260_vm3, %v4076_v11, 0.0  ;;  %vm499_vm6 = vcmp.eq.s32.totalorder %v5024_v6, %v4009_v38  ;;  %vm654_vm13 = vcmp.eq.s32.totalorder %v5024_v6, %v4013_v40  ;;  %vm875_vm15 = vcmp.eq.s32.totalorder %v5024_v6, %v4017_v42  ;;  %v2529_v46 = vpop.f32.mrb[5].mxu1 }
 0x154   : > { %v1231_v13 = vadd.f32 %v1167_v12, %v1015_v53  ;;  %v2183_v25 = vadd.f32 %v2119_v61, %v1962_v41  ;;  %v574_v31 = vsel %vm499_vm6, %v3844_v16, 0.0  ;;  %v729_v28 = vsel %vm654_vm13, %v3868_v26, 0.0 }
 0x155   : > { %v793_v45 = vadd.f32 %v729_v28, %v574_v31  ;;  %v950_v21 = vsel %vm875_vm15, %v3905_v14, 0.0  ;;  %vm1091_vm14 = vcmp.eq.s32.totalorder %v5024_v6, %v4027_v9  ;;  %vm1667_vm0 = vcmp.eq.s32.totalorder %v5024_v6, %v4085_v32 }
 0x156   : > { %1456 = vmatprep.mubr.f32.mxu0 %v1231_v13  ;;  %v2399_v3 = vadd.f32 %v2335_v55, %v2183_v25  ;;  %v1166_v58 = vsel %vm1091_vm14, %v3927_v51, 0.0  ;;  %v1742_v10 = vsel %vm1667_vm0, %v3970_v2, 0.0  ;;  %vm1822_vm1 = vcmp.eq.s32.totalorder %v5024_v6, %v4090_v48 }
 0x157   : > { %v1014_v44 = vadd.f32 %v950_v21, %v793_v45  ;;  %v1897_v22 = vsel %vm1822_vm1, %v3993_v60, 0.0  ;;  %vm2043_vm5 = vcmp.eq.s32.totalorder %v5024_v6, %v4093_v23  ;;  %vm2259_vm7 = vcmp.eq.s32.totalorder %v5024_v6, %v4096_v35 }
 0x158   : > { %2625 = vmatprep.mubr.f32.mxu1 %v2399_v3  ;;  %v1961_v0 = vadd.f32 %v1897_v22, %v1742_v10  ;;  %v2118_v36 = vsel %vm2043_vm5, %v4056_v47, 0.0  ;;  %v2334_v12 = vsel %vm2259_vm7, %v4073_v50, 0.0  ;;  %vm502_vm2 = vcmp.eq.s32.totalorder %v5027_v39, %v3841_v15 }
 0x159   : > { %v1230_v49 = vadd.f32 %v1166_v58, %v1014_v44  ;;  %v577_v19 = vsel %vm502_vm2, %v3847_v18, 0.0  ;;  %vm657_vm10 = vcmp.eq.s32.totalorder %v5027_v39, %v3855_v7  ;;  %vm878_vm8 = vcmp.eq.s32.totalorder %v5027_v39, %v3883_v30  ;;  %v5180_v53 = vpop.f32.mrb[6].mxu0 }
 0x15a   : > { %v2182_v20 = vadd.f32 %v2118_v36, %v1961_v0  ;;  %v732_v6 = vsel %vm657_vm10, %v3871_v27, 0.0  ;;  %v953_v37 = vsel %vm878_vm8, %v3910_v43, 0.0  ;;  %vm1094_vm11 = vcmp.eq.s32.totalorder %v5027_v39, %v3887_v34  ;;  %v1365_v55 = vpop.f32.mrb[7].mxu0 }
 0x15b   : > { %1457 = vmatmul.mubr.f32.gmra.mrb[44].mxu0 %v1230_v49  ;;  %v796_v41 = vadd.f32 %v732_v6, %v577_v19  ;;  %v1169_v61 = vsel %vm1094_vm11, %v3930_v52, 0.0  ;;  %vm1670_vm12 = vcmp.eq.s32.totalorder %v5027_v39, %v3963_v1  ;;  %vm1825_vm4 = vcmp.eq.s32.totalorder %v5027_v39, %v3979_v5 }
 0x15c   : > { %v2398_v46 = vadd.f32 %v2334_v12, %v2182_v20  ;;  %v1745_v13 = vsel %vm1670_vm12, %v3973_v4, 0.0  ;;  %v1900_v25 = vsel %vm1825_vm4, %v3996_v29, 0.0  ;;  %vm2046_vm9 = vcmp.eq.s32.totalorder %v5027_v39, %v4045_v59 }
 0x15d   : > { %v1017_v31 = vadd.f32 %v953_v37, %v796_v41  ;;  %v1964_v28 = vadd.f32 %v1900_v25, %v1745_v13  ;;  %v2121_v45 = vsel %vm2046_vm9, %v4059_v57, 0.0  ;;  %vm2262_vm3 = vcmp.eq.s32.totalorder %v5027_v39, %v4052_v24  ;;  %v5194_v21 = vpop.f32.mrb[6].mxu1 }
 0x15e   : > { %2626 = vmatmul.mubr.f32.gmra.mrb[44].mxu1 %v2398_v46  ;;  %v2337_v3 = vsel %vm2262_vm3, %v4076_v11, 0.0  ;;  %vm501_vm6 = vcmp.eq.s32.totalorder %v5027_v39, %v4009_v38  ;;  %vm656_vm13 = vcmp.eq.s32.totalorder %v5027_v39, %v4013_v40  ;;  %vm877_vm15 = vcmp.eq.s32.totalorder %v5027_v39, %v4017_v42  ;;  %v2534_v58 = vpop.f32.mrb[7].mxu1 }
 0x15f   : > { %v1233_v10 = vadd.f32 %v1169_v61, %v1017_v31  ;;  %v2185_v44 = vadd.f32 %v2121_v45, %v1964_v28  ;;  %v576_v22 = vsel %vm501_vm6, %v3844_v16, 0.0  ;;  %v731_v0 = vsel %vm656_vm13, %v3868_v26, 0.0 }
 0x160   : > { %v795_v36 = vadd.f32 %v731_v0, %v576_v22  ;;  %v952_v12 = vsel %vm877_vm15, %v3905_v14, 0.0  ;;  %vm1093_vm14 = vcmp.eq.s32.totalorder %v5027_v39, %v4027_v9  ;;  %vm1669_vm0 = vcmp.eq.s32.totalorder %v5027_v39, %v4085_v32 }
 0x161   : > { %1461 = vmatprep.mubr.f32.mxu0 %v1233_v10  ;;  %v2401_v49 = vadd.f32 %v2337_v3, %v2185_v44  ;;  %v1168_v19 = vsel %vm1093_vm14, %v3927_v51, 0.0  ;;  %v1744_v20 = vsel %vm1669_vm0, %v3970_v2, 0.0  ;;  %vm1824_vm1 = vcmp.eq.s32.totalorder %v5027_v39, %v4090_v48 }
 0x162   : > { %v1016_v6 = vadd.f32 %v952_v12, %v795_v36  ;;  %v1899_v37 = vsel %vm1824_vm1, %v3993_v60, 0.0  ;;  %vm2045_vm5 = vcmp.eq.s32.totalorder %v5027_v39, %v4093_v23  ;;  %vm2261_vm7 = vcmp.eq.s32.totalorder %v5027_v39, %v4096_v35 }
 0x163   : > { %2630 = vmatprep.mubr.f32.mxu1 %v2401_v49  ;;  %v1963_v41 = vadd.f32 %v1899_v37, %v1744_v20  ;;  %v2120_v61 = vsel %vm2045_vm5, %v4056_v47, 0.0  ;;  %v2336_v55 = vsel %vm2261_vm7, %v4073_v50, 0.0  ;;  %v398_v46 = vadd.s32 192, %v3665_v17 }
 0x164   : > { %v1232_v13 = vadd.f32 %v1168_v19, %v1016_v6  ;;  %v5223_v25 = vadd.s32 200, %v3665_v17  ;;  %v5226_v31 = vadd.s32 208, %v3665_v17  ;;  %v5229_v28 = vadd.s32 216, %v3665_v17 }
 0x165   : > { %v2184_v45 = vadd.f32 %v2120_v61, %v1963_v41  ;;  %vm504_vm2 = vcmp.eq.s32.totalorder %v398_v46, %v3841_v15  ;;  %vm659_vm10 = vcmp.eq.s32.totalorder %v398_v46, %v3855_v7  ;;  %vm880_vm8 = vcmp.eq.s32.totalorder %v398_v46, %v3883_v30  ;;  %v5234_v39 = vpop.f32.mrb[8].mxu0 }
 0x166   : > { %1462 = vmatmul.mubr.f32.gmra.mrb[46].mxu0 %v1232_v13  ;;  %v579_v3 = vsel %vm504_vm2, %v3847_v18, 0.0  ;;  %v734_v58 = vsel %vm659_vm10, %v3871_v27, 0.0  ;;  %v955_v10 = vsel %vm880_vm8, %v3910_v43, 0.0  ;;  %vm1096_vm11 = vcmp.eq.s32.totalorder %v398_v46, %v3887_v34  ;;  %v1370_v44 = vpop.f32.mrb[9].mxu0 }
 0x167   : > { %v2400_v22 = vadd.f32 %v2336_v55, %v2184_v45  ;;  %v798_v0 = vadd.f32 %v734_v58, %v579_v3  ;;  %v1171_v36 = vsel %vm1096_vm11, %v3930_v52, 0.0  ;;  %vm1672_vm12 = vcmp.eq.s32.totalorder %v398_v46, %v3963_v1  ;;  %v5246_v49 = vpop.f32.mrb[8].mxu1 }
 0x168   : > { %v1747_v12 = vsel %vm1672_vm12, %v3973_v4, 0.0  ;;  %vm1827_vm4 = vcmp.eq.s32.totalorder %v398_v46, %v3979_v5  ;;  %vm2048_vm9 = vcmp.eq.s32.totalorder %v398_v46, %v4045_v59  ;;  %vm2264_vm3 = vcmp.eq.s32.totalorder %v398_v46, %v4052_v24  ;;  %v2539_v41 = vpop.f32.mrb[9].mxu1 }
 0x169   : > { %2631 = vmatmul.mubr.f32.gmra.mrb[46].mxu1 %v2400_v22  ;;  %v1019_v19 = vadd.f32 %v955_v10, %v798_v0  ;;  %v1902_v20 = vsel %vm1827_vm4, %v3996_v29, 0.0  ;;  %v2123_v6 = vsel %vm2048_vm9, %v4059_v57, 0.0  ;;  %v2339_v37 = vsel %vm2264_vm3, %v4076_v11, 0.0 }
 0x16a   : > { %v1966_v61 = vadd.f32 %v1902_v20, %v1747_v12  ;;  %vm503_vm6 = vcmp.eq.s32.totalorder %v398_v46, %v4009_v38  ;;  %vm658_vm13 = vcmp.eq.s32.totalorder %v398_v46, %v4013_v40  ;;  %vm879_vm15 = vcmp.eq.s32.totalorder %v398_v46, %v4017_v42 }
 0x16b   : > { %v1235_v55 = vadd.f32 %v1171_v36, %v1019_v19  ;;  %v578_v13 = vsel %vm503_vm6, %v3844_v16, 0.0  ;;  %v733_v45 = vsel %vm658_vm13, %v3868_v26, 0.0  ;;  %v954_v3 = vsel %vm879_vm15, %v3905_v14, 0.0 }
 0x16c   : > { %v2187_v58 = vadd.f32 %v2123_v6, %v1966_v61  ;;  %v797_v10 = vadd.f32 %v733_v45, %v578_v13  ;;  %vm1095_vm14 = vcmp.eq.s32.totalorder %v398_v46, %v4027_v9  ;;  %vm1671_vm0 = vcmp.eq.s32.totalorder %v398_v46, %v4085_v32 }
 0x16d   : > { %1466 = vmatprep.mubr.f32.mxu0 %v1235_v55  ;;  %v1170_v44 = vsel %vm1095_vm14, %v3927_v51, 0.0  ;;  %v1746_v22 = vsel %vm1671_vm0, %v3970_v2, 0.0  ;;  %vm1826_vm1 = vcmp.eq.s32.totalorder %v398_v46, %v4090_v48  ;;  %vm2047_vm5 = vcmp.eq.s32.totalorder %v398_v46, %v4093_v23 }
 0x16e   : > { %v2403_v0 = vadd.f32 %v2339_v37, %v2187_v58  ;;  %v1018_v36 = vadd.f32 %v954_v3, %v797_v10  ;;  %v1901_v12 = vsel %vm1826_vm1, %v3993_v60, 0.0  ;;  %v2122_v19 = vsel %vm2047_vm5, %v4056_v47, 0.0 }
 0x16f   : > { %v1965_v20 = vadd.f32 %v1901_v12, %v1746_v22  ;;  %vm2263_vm7 = vcmp.eq.s32.totalorder %v398_v46, %v4096_v35  ;;  %vm506_vm2 = vcmp.eq.s32.totalorder %v5223_v25, %v3841_v15  ;;  %vm661_vm10 = vcmp.eq.s32.totalorder %v5223_v25, %v3855_v7  ;;  %v5273_v55 = vpop.f32.mrb[10].mxu0 }
 0x170   : > { %2635 = vmatprep.mubr.f32.mxu1 %v2403_v0  ;;  %v1234_v6 = vadd.f32 %v1170_v44, %v1018_v36  ;;  %v2338_v41 = vsel %vm2263_vm7, %v4073_v50, 0.0  ;;  %v581_v37 = vsel %vm506_vm2, %v3847_v18, 0.0  ;;  %v736_v61 = vsel %vm661_vm10, %v3871_v27, 0.0  ;;  %v1375_v46 = vpop.f32.mrb[11].mxu0 }
 0x171   : > { %v2186_v13 = vadd.f32 %v2122_v19, %v1965_v20  ;;  %v800_v45 = vadd.f32 %v736_v61, %v581_v37  ;;  %vm882_vm8 = vcmp.eq.s32.totalorder %v5223_v25, %v3883_v30  ;;  %vm1098_vm11 = vcmp.eq.s32.totalorder %v5223_v25, %v3887_v34 }
 0x172   : > { %1467 = vmatmul.mubr.f32.gmra.mrb[48].mxu0 %v1234_v6  ;;  %v957_v3 = vsel %vm882_vm8, %v3910_v43, 0.0  ;;  %v1173_v58 = vsel %vm1098_vm11, %v3930_v52, 0.0  ;;  %vm1674_vm12 = vcmp.eq.s32.totalorder %v5223_v25, %v3963_v1  ;;  %vm1829_vm4 = vcmp.eq.s32.totalorder %v5223_v25, %v3979_v5 }
 0x173   : > { %v2402_v10 = vadd.f32 %v2338_v41, %v2186_v13  ;;  %v1021_v44 = vadd.f32 %v957_v3, %v800_v45  ;;  %v1749_v22 = vsel %vm1674_vm12, %v3973_v4, 0.0  ;;  %v1904_v0 = vsel %vm1829_vm4, %v3996_v29, 0.0  ;;  %v5287_v36 = vpop.f32.mrb[10].mxu1 }
 0x174   : > { %v1968_v12 = vadd.f32 %v1904_v0, %v1749_v22  ;;  %vm2050_vm9 = vcmp.eq.s32.totalorder %v5223_v25, %v4045_v59  ;;  %vm2266_vm3 = vcmp.eq.s32.totalorder %v5223_v25, %v4052_v24  ;;  %vm505_vm6 = vcmp.eq.s32.totalorder %v5223_v25, %v4009_v38  ;;  %v2544_v19 = vpop.f32.mrb[11].mxu1 }
 0x175   : > { %2636 = vmatmul.mubr.f32.gmra.mrb[48].mxu1 %v2402_v10  ;;  %v1237_v20 = vadd.f32 %v1173_v58, %v1021_v44  ;;  %v2125_v6 = vsel %vm2050_vm9, %v4059_v57, 0.0  ;;  %v2341_v41 = vsel %vm2266_vm3, %v4076_v11, 0.0  ;;  %v580_v37 = vsel %vm505_vm6, %v3844_v16, 0.0 }
 0x176   : > { %v2189_v61 = vadd.f32 %v2125_v6, %v1968_v12  ;;  %vm660_vm13 = vcmp.eq.s32.totalorder %v5223_v25, %v4013_v40  ;;  %vm881_vm15 = vcmp.eq.s32.totalorder %v5223_v25, %v4017_v42  ;;  %vm1097_vm14 = vcmp.eq.s32.totalorder %v5223_v25, %v4027_v9 }
 0x177   : > { %1471 = vmatprep.mubr.f32.mxu0 %v1237_v20  ;;  %v735_v13 = vsel %vm660_vm13, %v3868_v26, 0.0  ;;  %v956_v45 = vsel %vm881_vm15, %v3905_v14, 0.0  ;;  %v1172_v46 = vsel %vm1097_vm14, %v3927_v51, 0.0  ;;  %vm1673_vm0 = vcmp.eq.s32.totalorder %v5223_v25, %v4085_v32 }
 0x178   : > { %v2405_v3 = vadd.f32 %v2341_v41, %v2189_v61  ;;  %v799_v58 = vadd.f32 %v735_v13, %v580_v37  ;;  %v1748_v10 = vsel %vm1673_vm0, %v3970_v2, 0.0  ;;  %vm1828_vm1 = vcmp.eq.s32.totalorder %v5223_v25, %v4090_v48 }
 0x179   : > { %v1903_v44 = vsel %vm1828_vm1, %v3993_v60, 0.0  ;;  %vm2049_vm5 = vcmp.eq.s32.totalorder %v5223_v25, %v4093_v23  ;;  %vm2265_vm7 = vcmp.eq.s32.totalorder %v5223_v25, %v4096_v35  ;;  %vm508_vm2 = vcmp.eq.s32.totalorder %v5226_v31, %v3841_v15 }
 0x17a   : > { %2640 = vmatprep.mubr.f32.mxu1 %v2405_v3  ;;  %v1020_v22 = vadd.f32 %v956_v45, %v799_v58  ;;  %v1967_v0 = vadd.f32 %v1903_v44, %v1748_v10  ;;  %v2124_v12 = vsel %vm2049_vm5, %v4056_v47, 0.0  ;;  %v2340_v19 = vsel %vm2265_vm7, %v4073_v50, 0.0 }
 0x17b   : > { %v583_v20 = vsel %vm508_vm2, %v3847_v18, 0.0  ;;  %vm663_vm10 = vcmp.eq.s32.totalorder %v5226_v31, %v3855_v7  ;;  %vm884_vm8 = vcmp.eq.s32.totalorder %v5226_v31, %v3883_v30  ;;  %vm1100_vm11 = vcmp.eq.s32.totalorder %v5226_v31, %v3887_v34  ;;  %v5328_v25 = vpop.f32.mrb[12].mxu0 }
 0x17c   : > { %v1236_v6 = vadd.f32 %v1172_v46, %v1020_v22  ;;  %v2188_v41 = vadd.f32 %v2124_v12, %v1967_v0  ;;  %v738_v37 = vsel %vm663_vm10, %v3871_v27, 0.0  ;;  %v959_v61 = vsel %vm884_vm8, %v3910_v43, 0.0  ;;  %v1380_v13 = vpop.f32.mrb[13].mxu0 }
 0x17d   : > { %v802_v45 = vadd.f32 %v738_v37, %v583_v20  ;;  %v1175_v3 = vsel %vm1100_vm11, %v3930_v52, 0.0  ;;  %vm1676_vm12 = vcmp.eq.s32.totalorder %v5226_v31, %v3963_v1  ;;  %vm1831_vm4 = vcmp.eq.s32.totalorder %v5226_v31, %v3979_v5  ;;  %v5341_v44 = vpop.f32.mrb[12].mxu1 }
 0x17e   : > { %1472 = vmatmul.mubr.f32.gmra.mrb[50].mxu0 %v1236_v6  ;;  %v2404_v58 = vadd.f32 %v2340_v19, %v2188_v41  ;;  %v1751_v10 = vsel %vm1676_vm12, %v3973_v4, 0.0  ;;  %v1906_v46 = vsel %vm1831_vm4, %v3996_v29, 0.0  ;;  %vm2052_vm9 = vcmp.eq.s32.totalorder %v5226_v31, %v4045_v59  ;;  %v2549_v20 = vpop.f32.mrb[13].mxu1 }
 0x17f   : > { %v1023_v22 = vadd.f32 %v959_v61, %v802_v45  ;;  %v1970_v0 = vadd.f32 %v1906_v46, %v1751_v10  ;;  %v2127_v12 = vsel %vm2052_vm9, %v4059_v57, 0.0  ;;  %vm2268_vm3 = vcmp.eq.s32.totalorder %v5226_v31, %v4052_v24 }
 0x180   : > { %2641 = vmatmul.mubr.f32.gmra.mrb[50].mxu1 %v2404_v58  ;;  %v2343_v19 = vsel %vm2268_vm3, %v4076_v11, 0.0  ;;  %vm507_vm6 = vcmp.eq.s32.totalorder %v5226_v31, %v4009_v38  ;;  %vm662_vm13 = vcmp.eq.s32.totalorder %v5226_v31, %v4013_v40  ;;  %vm883_vm15 = vcmp.eq.s32.totalorder %v5226_v31, %v4017_v42 }
 0x181   : > { %v1239_v6 = vadd.f32 %v1175_v3, %v1023_v22  ;;  %v2191_v41 = vadd.f32 %v2127_v12, %v1970_v0  ;;  %v582_v37 = vsel %vm507_vm6, %v3844_v16, 0.0  ;;  %v737_v61 = vsel %vm662_vm13, %v3868_v26, 0.0 }
 0x182   : > { %v801_v13 = vadd.f32 %v737_v61, %v582_v37  ;;  %v958_v45 = vsel %vm883_vm15, %v3905_v14, 0.0  ;;  %vm1099_vm14 = vcmp.eq.s32.totalorder %v5226_v31, %v4027_v9  ;;  %vm1675_vm0 = vcmp.eq.s32.totalorder %v5226_v31, %v4085_v32 }
 0x183   : > { %1476 = vmatprep.mubr.f32.mxu0 %v1239_v6  ;;  %v2407_v58 = vadd.f32 %v2343_v19, %v2191_v41  ;;  %v1174_v10 = vsel %vm1099_vm14, %v3927_v51, 0.0  ;;  %v1750_v3 = vsel %vm1675_vm0, %v3970_v2, 0.0  ;;  %vm1830_vm1 = vcmp.eq.s32.totalorder %v5226_v31, %v4090_v48 }
 0x184   : > { %v1022_v46 = vadd.f32 %v958_v45, %v801_v13  ;;  %v1905_v22 = vsel %vm1830_vm1, %v3993_v60, 0.0  ;;  %vm2051_vm5 = vcmp.eq.s32.totalorder %v5226_v31, %v4093_v23  ;;  %vm2267_vm7 = vcmp.eq.s32.totalorder %v5226_v31, %v4096_v35 }
 0x185   : > { %2645 = vmatprep.mubr.f32.mxu1 %v2407_v58  ;;  %v1969_v0 = vadd.f32 %v1905_v22, %v1750_v3  ;;  %v2126_v12 = vsel %vm2051_vm5, %v4056_v47, 0.0  ;;  %v2342_v20 = vsel %vm2267_vm7, %v4073_v50, 0.0  ;;  %vm510_vm2 = vcmp.eq.s32.totalorder %v5229_v28, %v3841_v15  ;;  %v5378_v41 = vpop.f32.mrb[14].mxu0 }
 0x186   : > { %v1238_v19 = vadd.f32 %v1174_v10, %v1022_v46  ;;  %v585_v6 = vsel %vm510_vm2, %v3847_v18, 0.0  ;;  %vm665_vm10 = vcmp.eq.s32.totalorder %v5229_v28, %v3855_v7  ;;  %vm886_vm8 = vcmp.eq.s32.totalorder %v5229_v28, %v3883_v30  ;;  %5938 = vst [vmem:[#allocation9_spill] sm:$0xff] %v5378_v41  ;;  %v1385_v13 = vpop.f32.mrb[15].mxu0 }
 0x187   : > { %v2190_v31 = vadd.f32 %v2126_v12, %v1969_v0  ;;  %v740_v37 = vsel %vm665_vm10, %v3871_v27, 0.0  ;;  %v961_v61 = vsel %vm886_vm8, %v3910_v43, 0.0  ;;  %vm1102_vm11 = vcmp.eq.s32.totalorder %v5229_v28, %v3887_v34 }
 0x188   : > { %1477 = vmatmul.mubr.f32.gmra.mrb[52].mxu0 %v1238_v19  ;;  %v804_v45 = vadd.f32 %v740_v37, %v585_v6  ;;  %v1177_v58 = vsel %vm1102_vm11, %v3930_v52, 0.0  ;;  %vm1678_vm12 = vcmp.eq.s32.totalorder %v5229_v28, %v3963_v1  ;;  %vm1833_vm4 = vcmp.eq.s32.totalorder %v5229_v28, %v3979_v5 }
 0x189   : > { %v2406_v10 = vadd.f32 %v2342_v20, %v2190_v31  ;;  %v1753_v3 = vsel %vm1678_vm12, %v3973_v4, 0.0  ;;  %v1908_v46 = vsel %vm1833_vm4, %v3996_v29, 0.0  ;;  %vm2054_vm9 = vcmp.eq.s32.totalorder %v5229_v28, %v4045_v59  ;;  %v5393_v22 = vpop.f32.mrb[14].mxu1 }
 0x18a   : > { %5939 = vst [vmem:[#allocation10_spill] sm:$0xff] %v5393_v22  ;;  %v1025_v0 = vadd.f32 %v961_v61, %v804_v45  ;;  %v1972_v12 = vadd.f32 %v1908_v46, %v1753_v3  ;;  %v2129_v19 = vsel %vm2054_vm9, %v4059_v57, 0.0  ;;  %vm2270_vm3 = vcmp.eq.s32.totalorder %v5229_v28, %v4052_v24  ;;  %v2554_v6 = vpop.f32.mrb[15].mxu1 }
 0x18b   : > { %2646 = vmatmul.mubr.f32.gmra.mrb[52].mxu1 %v2406_v10  ;;  %v2345_v20 = vsel %vm2270_vm3, %v4076_v11, 0.0  ;;  %vm509_vm6 = vcmp.eq.s32.totalorder %v5229_v28, %v4009_v38  ;;  %vm664_vm13 = vcmp.eq.s32.totalorder %v5229_v28, %v4013_v40  ;;  %vm885_vm15 = vcmp.eq.s32.totalorder %v5229_v28, %v4017_v42 }
 0x18c   : > { %v1241_v31 = vadd.f32 %v1177_v58, %v1025_v0  ;;  %v2193_v37 = vadd.f32 %v2129_v19, %v1972_v12  ;;  %v584_v61 = vsel %vm509_vm6, %v3844_v16, 0.0  ;;  %v739_v13 = vsel %vm664_vm13, %v3868_v26, 0.0 }
 0x18d   : > { %v803_v45 = vadd.f32 %v739_v13, %v584_v61  ;;  %v960_v10 = vsel %vm885_vm15, %v3905_v14, 0.0  ;;  %vm1101_vm14 = vcmp.eq.s32.totalorder %v5229_v28, %v4027_v9  ;;  %vm1677_vm0 = vcmp.eq.s32.totalorder %v5229_v28, %v4085_v32 }
 0x18e   : > { %1481 = vmatprep.mubr.f32.mxu0 %v1241_v31  ;;  %v2409_v3 = vadd.f32 %v2345_v20, %v2193_v37  ;;  %v1176_v46 = vsel %vm1101_vm14, %v3927_v51, 0.0  ;;  %v1752_v58 = vsel %vm1677_vm0, %v3970_v2, 0.0  ;;  %vm1832_vm1 = vcmp.eq.s32.totalorder %v5229_v28, %v4090_v48 }
 0x18f   : > { %v1024_v0 = vadd.f32 %v960_v10, %v803_v45  ;;  %v1907_v12 = vsel %vm1832_vm1, %v3993_v60, 0.0  ;;  %vm2053_vm5 = vcmp.eq.s32.totalorder %v5229_v28, %v4093_v23  ;;  %vm2269_vm7 = vcmp.eq.s32.totalorder %v5229_v28, %v4096_v35 }
 0x190   : > { %2650 = vmatprep.mubr.f32.mxu1 %v2409_v3  ;;  %v1971_v19 = vadd.f32 %v1907_v12, %v1752_v58  ;;  %v2128_v6 = vsel %vm2053_vm5, %v4056_v47, 0.0  ;;  %v2344_v20 = vsel %vm2269_vm7, %v4073_v50, 0.0  ;;  %v402_v31 = vadd.s32 224, %v3665_v17 }
 0x191   : > { %v1240_v37 = vadd.f32 %v1176_v46, %v1024_v0  ;;  %v5425_v61 = vadd.s32 232, %v3665_v17  ;;  %v5428_v13 = vadd.s32 240, %v3665_v17  ;;  %v5431_v45 = vadd.s32 248, %v3665_v17  ;;  %v5433_v10 = vpop.f32.mrb[16].mxu0 }
 0x192   : > { %5940 = vst [vmem:[#allocation11_spill] sm:$0xff] %v5433_v10  ;;  %v2192_v28 = vadd.f32 %v2128_v6, %v1971_v19  ;;  %vm512_vm2 = vcmp.eq.s32.totalorder %v402_v31, %v3841_v15  ;;  %vm667_vm10 = vcmp.eq.s32.totalorder %v402_v31, %v3855_v7  ;;  %vm888_vm8 = vcmp.eq.s32.totalorder %v402_v31, %v3883_v30  ;;  %v1390_v3 = vpop.f32.mrb[17].mxu0 }
 0x193   : > { %1482 = vmatmul.mubr.f32.gmra.mrb[54].mxu0 %v1240_v37  ;;  %v587_v46 = vsel %vm512_vm2, %v3847_v18, 0.0  ;;  %v742_v58 = vsel %vm667_vm10, %v3871_v27, 0.0  ;;  %v963_v0 = vsel %vm888_vm8, %v3910_v43, 0.0  ;;  %vm1104_vm11 = vcmp.eq.s32.totalorder %v402_v31, %v3887_v34  ;;  %v5444_v6 = vpop.f32.mrb[16].mxu1 }
 0x194   : > { %v2408_v17 = vadd.f32 %v2344_v20, %v2192_v28  ;;  %v806_v12 = vadd.f32 %v742_v58, %v587_v46  ;;  %v1179_v19 = vsel %vm1104_vm11, %v3930_v52, 0.0  ;;  %vm1680_vm12 = vcmp.eq.s32.totalorder %v402_v31, %v3963_v1  ;;  %5941 = vst [vmem:[#allocation12_spill] sm:$0xff] %v5444_v6  ;;  %v2559_v37 = vpop.f32.mrb[17].mxu1 }
 0x195   : > { %v1755_v10 = vsel %vm1680_vm12, %v3973_v4, 0.0  ;;  %vm1835_vm4 = vcmp.eq.s32.totalorder %v402_v31, %v3979_v5  ;;  %vm2056_vm9 = vcmp.eq.s32.totalorder %v402_v31, %v4045_v59  ;;  %vm2272_vm3 = vcmp.eq.s32.totalorder %v402_v31, %v4052_v24 }
 0x196   : > { %2651 = vmatmul.mubr.f32.gmra.mrb[54].mxu1 %v2408_v17  ;;  %v1027_v3 = vadd.f32 %v963_v0, %v806_v12  ;;  %v1910_v20 = vsel %vm1835_vm4, %v3996_v29, 0.0  ;;  %v2131_v28 = vsel %vm2056_vm9, %v4059_v57, 0.0  ;;  %v2347_v46 = vsel %vm2272_vm3, %v4076_v11, 0.0 }
 0x197   : > { %v1974_v58 = vadd.f32 %v1910_v20, %v1755_v10  ;;  %vm511_vm6 = vcmp.eq.s32.totalorder %v402_v31, %v4009_v38  ;;  %vm666_vm13 = vcmp.eq.s32.totalorder %v402_v31, %v4013_v40  ;;  %vm887_vm15 = vcmp.eq.s32.totalorder %v402_v31, %v4017_v42 }
 0x198   : > { %v1243_v6 = vadd.f32 %v1179_v19, %v1027_v3  ;;  %v586_v22 = vsel %vm511_vm6, %v3844_v16, 0.0  ;;  %v741_v37 = vsel %vm666_vm13, %v3868_v26, 0.0  ;;  %v962_v0 = vsel %vm887_vm15, %v3905_v14, 0.0 }
 0x199   : > { %v2195_v17 = vadd.f32 %v2131_v28, %v1974_v58  ;;  %v805_v12 = vadd.f32 %v741_v37, %v586_v22  ;;  %vm1103_vm14 = vcmp.eq.s32.totalorder %v402_v31, %v4027_v9  ;;  %vm1679_vm0 = vcmp.eq.s32.totalorder %v402_v31, %v4085_v32 }
 0x19a   : > { %1486 = vmatprep.mubr.f32.mxu0 %v1243_v6  ;;  %v1178_v10 = vsel %vm1103_vm14, %v3927_v51, 0.0  ;;  %v1754_v20 = vsel %vm1679_vm0, %v3970_v2, 0.0  ;;  %vm1834_vm1 = vcmp.eq.s32.totalorder %v402_v31, %v4090_v48  ;;  %vm2055_vm5 = vcmp.eq.s32.totalorder %v402_v31, %v4093_v23 }
 0x19b   : > { %v2411_v19 = vadd.f32 %v2347_v46, %v2195_v17  ;;  %v1026_v3 = vadd.f32 %v962_v0, %v805_v12  ;;  %v1909_v41 = vsel %vm1834_vm1, %v3993_v60, 0.0  ;;  %v2130_v28 = vsel %vm2055_vm5, %v4056_v47, 0.0  ;;  %v5472_v6 = vpop.f32.mrb[18].mxu0 }
 0x19c   : > { %v1973_v22 = vadd.f32 %v1909_v41, %v1754_v20  ;;  %vm2271_vm7 = vcmp.eq.s32.totalorder %v402_v31, %v4096_v35  ;;  %vm514_vm2 = vcmp.eq.s32.totalorder %v5425_v61, %v3841_v15  ;;  %vm669_vm10 = vcmp.eq.s32.totalorder %v5425_v61, %v3855_v7  ;;  %v1395_v17 = vpop.f32.mrb[19].mxu0 }
 0x19d   : > { %2655 = vmatprep.mubr.f32.mxu1 %v2411_v19  ;;  %v1242_v58 = vadd.f32 %v1178_v10, %v1026_v3  ;;  %v2346_v46 = vsel %vm2271_vm7, %v4073_v50, 0.0  ;;  %v589_v37 = vsel %vm514_vm2, %v3847_v18, 0.0  ;;  %v744_v0 = vsel %vm669_vm10, %v3871_v27, 0.0 }
 0x19e   : > { %v2194_v41 = vadd.f32 %v2130_v28, %v1973_v22  ;;  %v808_v12 = vadd.f32 %v744_v0, %v589_v37  ;;  %vm890_vm8 = vcmp.eq.s32.totalorder %v5425_v61, %v3883_v30  ;;  %vm1106_vm11 = vcmp.eq.s32.totalorder %v5425_v61, %v3887_v34 }
 0x19f   : > { %1487 = vmatmul.mubr.f32.gmra.mrb[56].mxu0 %v1242_v58  ;;  %v965_v31 = vsel %vm890_vm8, %v3910_v43, 0.0  ;;  %v1181_v10 = vsel %vm1106_vm11, %v3930_v52, 0.0  ;;  %vm1682_vm12 = vcmp.eq.s32.totalorder %v5425_v61, %v3963_v1  ;;  %vm1837_vm4 = vcmp.eq.s32.totalorder %v5425_v61, %v3979_v5  ;;  %v5487_v20 = vpop.f32.mrb[18].mxu1 }
 0x1a0   : > { %5942 = vst [vmem:[#allocation13_spill] sm:$0xff] %v5487_v20  ;;  %v2410_v19 = vadd.f32 %v2346_v46, %v2194_v41  ;;  %v1029_v3 = vadd.f32 %v965_v31, %v808_v12  ;;  %v1757_v28 = vsel %vm1682_vm12, %v3973_v4, 0.0  ;;  %v1912_v22 = vsel %vm1837_vm4, %v3996_v29, 0.0  ;;  %v2564_v37 = vpop.f32.mrb[19].mxu1 }
 0x1a1   : > { %v1976_v58 = vadd.f32 %v1912_v22, %v1757_v28  ;;  %vm2058_vm9 = vcmp.eq.s32.totalorder %v5425_v61, %v4045_v59  ;;  %vm2274_vm3 = vcmp.eq.s32.totalorder %v5425_v61, %v4052_v24  ;;  %vm513_vm6 = vcmp.eq.s32.totalorder %v5425_v61, %v4009_v38 }
 0x1a2   : > { %2656 = vmatmul.mubr.f32.gmra.mrb[56].mxu1 %v2410_v19  ;;  %v1245_v0 = vadd.f32 %v1181_v10, %v1029_v3  ;;  %v2133_v46 = vsel %vm2058_vm9, %v4059_v57, 0.0  ;;  %v2349_v17 = vsel %vm2274_vm3, %v4076_v11, 0.0  ;;  %v588_v41 = vsel %vm513_vm6, %v3844_v16, 0.0 }
 0x1a3   : > { %v2197_v12 = vadd.f32 %v2133_v46, %v1976_v58  ;;  %vm668_vm13 = vcmp.eq.s32.totalorder %v5425_v61, %v4013_v40  ;;  %vm889_vm15 = vcmp.eq.s32.totalorder %v5425_v61, %v4017_v42  ;;  %vm1105_vm14 = vcmp.eq.s32.totalorder %v5425_v61, %v4027_v9 }
 0x1a4   : > { %1491 = vmatprep.mubr.f32.mxu0 %v1245_v0  ;;  %v743_v31 = vsel %vm668_vm13, %v3868_v26, 0.0  ;;  %v964_v10 = vsel %vm889_vm15, %v3905_v14, 0.0  ;;  %v1180_v19 = vsel %vm1105_vm14, %v3927_v51, 0.0  ;;  %vm1681_vm0 = vcmp.eq.s32.totalorder %v5425_v61, %v4085_v32 }
 0x1a5   : > { %v2413_v3 = vadd.f32 %v2349_v17, %v2197_v12  ;;  %v807_v28 = vadd.f32 %v743_v31, %v588_v41  ;;  %v1756_v22 = vsel %vm1681_vm0, %v3970_v2, 0.0  ;;  %vm1836_vm1 = vcmp.eq.s32.totalorder %v5425_v61, %v4090_v48 }
 0x1a6   : > { %v1911_v37 = vsel %vm1836_vm1, %v3993_v60, 0.0  ;;  %vm2057_vm5 = vcmp.eq.s32.totalorder %v5425_v61, %v4093_v23  ;;  %vm2273_vm7 = vcmp.eq.s32.totalorder %v5425_v61, %v4096_v35  ;;  %vm516_vm2 = vcmp.eq.s32.totalorder %v5428_v13, %v3841_v15 }
 0x1a7   : > { %2660 = vmatprep.mubr.f32.mxu1 %v2413_v3  ;;  %v1028_v58 = vadd.f32 %v964_v10, %v807_v28  ;;  %v1975_v0 = vadd.f32 %v1911_v37, %v1756_v22  ;;  %v2132_v46 = vsel %vm2057_vm5, %v4056_v47, 0.0  ;;  %v2348_v17 = vsel %vm2273_vm7, %v4073_v50, 0.0  ;;  %v5523_v41 = vpop.f32.mrb[20].mxu0 }
 0x1a8   : > { %5943 = vst [vmem:[#allocation14_spill] sm:$0xff] %v5523_v41  ;;  %v591_v12 = vsel %vm516_vm2, %v3847_v18, 0.0  ;;  %vm671_vm10 = vcmp.eq.s32.totalorder %v5428_v13, %v3855_v7  ;;  %vm892_vm8 = vcmp.eq.s32.totalorder %v5428_v13, %v3883_v30  ;;  %vm1108_vm11 = vcmp.eq.s32.totalorder %v5428_v13, %v3887_v34  ;;  %v1400_v61 = vpop.f32.mrb[21].mxu0 }
 0x1a9   : > { %v1244_v31 = vadd.f32 %v1180_v19, %v1028_v58  ;;  %v2196_v10 = vadd.f32 %v2132_v46, %v1975_v0  ;;  %v746_v3 = vsel %vm671_vm10, %v3871_v27, 0.0  ;;  %v967_v28 = vsel %vm892_vm8, %v3910_v43, 0.0  ;;  %v5539_v41 = vpop.f32.mrb[20].mxu1 }
 0x1aa   : > { %v810_v22 = vadd.f32 %v746_v3, %v591_v12  ;;  %v1183_v37 = vsel %vm1108_vm11, %v3930_v52, 0.0  ;;  %vm1684_vm12 = vcmp.eq.s32.totalorder %v5428_v13, %v3963_v1  ;;  %vm1839_vm4 = vcmp.eq.s32.totalorder %v5428_v13, %v3979_v5  ;;  %v2569_v0 = vpop.f32.mrb[21].mxu1 }
 0x1ab   : > { %1492 = vmatmul.mubr.f32.gmra.mrb[58].mxu0 %v1244_v31  ;;  %v2412_v20 = vadd.f32 %v2348_v17, %v2196_v10  ;;  %v1759_v19 = vsel %vm1684_vm12, %v3973_v4, 0.0  ;;  %v1914_v58 = vsel %vm1839_vm4, %v3996_v29, 0.0  ;;  %vm2060_vm9 = vcmp.eq.s32.totalorder %v5428_v13, %v4045_v59 }
 0x1ac   : > { %v1031_v46 = vadd.f32 %v967_v28, %v810_v22  ;;  %v1978_v12 = vadd.f32 %v1914_v58, %v1759_v19  ;;  %v2135_v61 = vsel %vm2060_vm9, %v4059_v57, 0.0  ;;  %vm2276_vm3 = vcmp.eq.s32.totalorder %v5428_v13, %v4052_v24 }
 0x1ad   : > { %2661 = vmatmul.mubr.f32.gmra.mrb[58].mxu1 %v2412_v20  ;;  %v2351_v3 = vsel %vm2276_vm3, %v4076_v11, 0.0  ;;  %vm515_vm6 = vcmp.eq.s32.totalorder %v5428_v13, %v4009_v38  ;;  %vm670_vm13 = vcmp.eq.s32.totalorder %v5428_v13, %v4013_v40  ;;  %vm891_vm15 = vcmp.eq.s32.totalorder %v5428_v13, %v4017_v42 }
 0x1ae   : > { %v1247_v17 = vadd.f32 %v1183_v37, %v1031_v46  ;;  %v2199_v31 = vadd.f32 %v2135_v61, %v1978_v12  ;;  %v590_v10 = vsel %vm515_vm6, %v3844_v16, 0.0  ;;  %v745_v28 = vsel %vm670_vm13, %v3868_v26, 0.0 }
 0x1af   : > { %v809_v22 = vadd.f32 %v745_v28, %v590_v10  ;;  %v966_v20 = vsel %vm891_vm15, %v3905_v14, 0.0  ;;  %vm1107_vm14 = vcmp.eq.s32.totalorder %v5428_v13, %v4027_v9  ;;  %vm1683_vm0 = vcmp.eq.s32.totalorder %v5428_v13, %v4085_v32 }
 0x1b0   : > { %1496 = vmatprep.mubr.f32.mxu0 %v1247_v17  ;;  %v2415_v19 = vadd.f32 %v2351_v3, %v2199_v31  ;;  %v1182_v58 = vsel %vm1107_vm14, %v3927_v51, 0.0  ;;  %v1758_v37 = vsel %vm1683_vm0, %v3970_v2, 0.0  ;;  %vm1838_vm1 = vcmp.eq.s32.totalorder %v5428_v13, %v4090_v48 }
 0x1b1   : > { %v1030_v0 = vadd.f32 %v966_v20, %v809_v22  ;;  %v1913_v46 = vsel %vm1838_vm1, %v3993_v60, 0.0  ;;  %vm2059_vm5 = vcmp.eq.s32.totalorder %v5428_v13, %v4093_v23  ;;  %vm2275_vm7 = vcmp.eq.s32.totalorder %v5428_v13, %v4096_v35 }
 0x1b2   : > { %2665 = vmatprep.mubr.f32.mxu1 %v2415_v19  ;;  %v1977_v12 = vadd.f32 %v1913_v46, %v1758_v37  ;;  %v2134_v61 = vsel %vm2059_vm5, %v4056_v47, 0.0  ;;  %v2350_v3 = vsel %vm2275_vm7, %v4073_v50, 0.0  ;;  %vm518_vm2 = vcmp.eq.s32.totalorder %v5431_v45, %v3841_v15 }
 0x1b3   : > { %v1246_v17 = vadd.f32 %v1182_v58, %v1030_v0  ;;  %v593_v31 = vsel %vm518_vm2, %v3847_v18, 0.0  ;;  %vm673_vm10 = vcmp.eq.s32.totalorder %v5431_v45, %v3855_v7  ;;  %vm894_vm8 = vcmp.eq.s32.totalorder %v5431_v45, %v3883_v30  ;;  %v5580_v10 = vpop.f32.mrb[22].mxu0 }
 0x1b4   : > { %v2198_v13 = vadd.f32 %v2134_v61, %v1977_v12  ;;  %v748_v28 = vsel %vm673_vm10, %v3871_v27, 0.0  ;;  %v969_v22 = vsel %vm894_vm8, %v3910_v43, 0.0  ;;  %vm1110_vm11 = vcmp.eq.s32.totalorder %v5431_v45, %v3887_v34  ;;  %v1405_v15 = vpop.f32.mrb[23].mxu0 }
 0x1b5   : > { %1497 = vmatmul.mubr.f32.gmra.mrb[60].mxu0 %v1246_v17  ;;  %v812_v20 = vadd.f32 %v748_v28, %v593_v31  ;;  %v1185_v18 = vsel %vm1110_vm11, %v3930_v52, 0.0  ;;  %vm1686_vm12 = vcmp.eq.s32.totalorder %v5431_v45, %v3963_v1  ;;  %vm1841_vm4 = vcmp.eq.s32.totalorder %v5431_v45, %v3979_v5 }
 0x1b6   : > { %v2414_v7 = vadd.f32 %v2350_v3, %v2198_v13  ;;  %v1761_v30 = vsel %vm1686_vm12, %v3973_v4, 0.0  ;;  %v1916_v27 = vsel %vm1841_vm4, %v3996_v29, 0.0  ;;  %vm2062_vm9 = vcmp.eq.s32.totalorder %v5431_v45, %v4045_v59  ;;  %v5595_v34 = vpop.f32.mrb[22].mxu1 }
 0x1b7   : > { %v1033_v43 = vadd.f32 %v969_v22, %v812_v20  ;;  %v1980_v19 = vadd.f32 %v1916_v27, %v1761_v30  ;;  %v2137_v52 = vsel %vm2062_vm9, %v4059_v57, 0.0  ;;  %vm2278_vm3 = vcmp.eq.s32.totalorder %v5431_v45, %v4052_v24  ;;  %v2574_v1 = vpop.f32.mrb[23].mxu1 }
 0x1b8   : > { %2666 = vmatmul.mubr.f32.gmra.mrb[60].mxu1 %v2414_v7  ;;  %v2353_v5 = vsel %vm2278_vm3, %v4076_v11, 0.0  ;;  %vm517_vm6 = vcmp.eq.s32.totalorder %v5431_v45, %v4009_v38  ;;  %vm672_vm13 = vcmp.eq.s32.totalorder %v5431_v45, %v4013_v40  ;;  %vm893_vm15 = vcmp.eq.s32.totalorder %v5431_v45, %v4017_v42  ;;  %v5944_v1 = vld [vmem:[#allocation9_spill] sm:$0xff] }
 0x1b9   : > { %v1249_v4 = vadd.f32 %v1185_v18, %v1033_v43  ;;  %v2201_v29 = vadd.f32 %v2137_v52, %v1980_v19  ;;  %v592_v59 = vsel %vm517_vm6, %v3844_v16, 0.0  ;;  %v747_v57 = vsel %vm672_vm13, %v3868_v26, 0.0 }
 0x1ba   : > { %v811_v24 = vadd.f32 %v747_v57, %v592_v59  ;;  %v968_v58 = vsel %vm893_vm15, %v3905_v14, 0.0  ;;  %vm1109_vm14 = vcmp.eq.s32.totalorder %v5431_v45, %v4027_v9  ;;  %vm1685_vm0 = vcmp.eq.s32.totalorder %v5431_v45, %v4085_v32  ;;  %v5946_v59 = vld [vmem:[#allocation11_spill] sm:$0xff] }
 0x1bb   : > { %1501 = vmatprep.mubr.f32.mxu0 %v1249_v4  ;;  %v2417_v38 = vadd.f32 %v2353_v5, %v2201_v29  ;;  %v1184_v40 = vsel %vm1109_vm14, %v3927_v51, 0.0  ;;  %v1760_v42 = vsel %vm1685_vm0, %v3970_v2, 0.0  ;;  %vm1840_vm1 = vcmp.eq.s32.totalorder %v5431_v45, %v4090_v48 }
 0x1bc   : > { %v1032_v16 = vadd.f32 %v968_v58, %v811_v24  ;;  %v1915_v26 = vsel %vm1840_vm1, %v3993_v60, 0.0  ;;  %vm2061_vm5 = vcmp.eq.s32.totalorder %v5431_v45, %v4093_v23  ;;  %vm2277_vm7 = vcmp.eq.s32.totalorder %v5431_v45, %v4096_v35  ;;  %v5947_v24 = vld [vmem:[#allocation12_spill] sm:$0xff] }
 0x1bd   : > { %2670 = vmatprep.mubr.f32.mxu1 %v2417_v38  ;;  %v1979_v14 = vadd.f32 %v1915_v26, %v1760_v42  ;;  %v2136_v9 = vsel %vm2061_vm5, %v4056_v47, 0.0  ;;  %vm272_vm2 = vcmask 392192   ;;  %v5627_v2 = vsel %vm2277_vm7, %v4073_v50, 0.0 }
 0x1be   : > { %v5624_v51 = vadd.f32 %v1184_v40, %v1032_v16  ;;  %v3509_v32 = vmov 0.0   ;;  %v5759_v60 = vpop.f32.mrb[24].mxu0  ;;  %v5948_v16 = vld [vmem:[#allocation13_spill] sm:$0xff]  ;;  %vm2857_vm10 = vcmask 386048  }
 0x1bf   : > { %v5629_v11 = vadd.f32 %v2136_v9, %v1979_v14  ;;  %273 = vst.msk [vmem:[#allocation2] sm:$0xff] %vm272_vm2, %v3509_v32  ;;  %274 = vst.msk [vmem:[#allocation2 + $0x8] sm:$0xff] %vm272_vm2, %v3509_v32  ;;  %v1410_v47 = vpop.f32.mrb[25].mxu0  ;;  %v5949_v14 = vld [vmem:[#allocation14_spill] sm:$0xff] }
 0x1c0   : > { %275 = vst.msk [vmem:[#allocation2 + $0x10] sm:$0xff] %vm272_vm2, %v3509_v32  ;;  %276 = vst.msk [vmem:[#allocation2 + $0x18] sm:$0xff] %vm272_vm2, %v3509_v32  ;;  %1502 = vmatmul.mubr.f32.gmra.mrb[62].mxu0 %v5624_v51 }
 0x1c1   : > { %277 = vst.msk [vmem:[#allocation2 + $0x20] sm:$0xff] %vm272_vm2, %v3509_v32  ;;  %278 = vst.msk [vmem:[#allocation2 + $0x28] sm:$0xff] %vm272_vm2, %v3509_v32  ;;  %v2416_v50 = vadd.f32 %v5627_v2, %v5629_v11  ;;  %v5764_v48 = vpop.f32.mrb[24].mxu1 }
 0x1c2   : > { %279 = vst.msk [vmem:[#allocation2 + $0x30] sm:$0xff] %vm272_vm2, %v3509_v32  ;;  %280 = vst.msk [vmem:[#allocation2 + $0x38] sm:$0xff] %vm272_vm2, %v3509_v32  ;;  %v2579_v23 = vpop.f32.mrb[25].mxu1 }
 0x1c3   : > { %281 = vst.msk [vmem:[#allocation2 + $0x40] sm:$0xff] %vm272_vm2, %v3509_v32  ;;  %282 = vst.msk [vmem:[#allocation2 + $0x48] sm:$0xff] %vm272_vm2, %v3509_v32  ;;  %2671 = vmatmul.mubr.f32.gmra.mrb[62].mxu1 %v2416_v50 }
 0x1c4   : > { %283 = vst.msk [vmem:[#allocation2 + $0x50] sm:$0xff] %vm272_vm2, %v3509_v32  ;;  %284 = vst.msk [vmem:[#allocation2 + $0x58] sm:$0xff] %vm272_vm2, %v3509_v32 }
 0x1c5   : > { %285 = vst.msk [vmem:[#allocation2 + $0x60] sm:$0xff] %vm272_vm2, %v3509_v32  ;;  %286 = vst.msk [vmem:[#allocation2 + $0x68] sm:$0xff] %vm272_vm2, %v3509_v32 }
 0x1c6   : > { %287 = vst.msk [vmem:[#allocation2 + $0x70] sm:$0xff] %vm272_vm2, %v3509_v32  ;;  %288 = vst.msk [vmem:[#allocation2 + $0x78] sm:$0xff] %vm272_vm2, %v3509_v32  ;;  %v1250_v35 = vld [vmem:[#allocation2] sm:$0xff]  ;;  %v1251_v37 = vld [vmem:[#allocation2 + $0x8] sm:$0xff] }
 0x1c7   : > { %289 = vst.msk [vmem:[#allocation2 + $0x80] sm:$0xff] %vm272_vm2, %v3509_v32  ;;  %290 = vst.msk [vmem:[#allocation2 + $0x88] sm:$0xff] %vm272_vm2, %v3509_v32  ;;  %v1507_v0 = vadd.f32 %v5079_v56, %v1250_v35  ;;  %v1508_v12 = vadd.f32 %v5098_v63, %v1251_v37  ;;  %v1252_v3 = vld [vmem:[#allocation2 + $0x10] sm:$0xff]  ;;  %v1253_v22 = vld [vmem:[#allocation2 + $0x18] sm:$0xff] }
 0x1c8   : > { %291 = vst.msk [vmem:[#allocation2 + $0x90] sm:$0xff] %vm272_vm2, %v3509_v32  ;;  %292 = vst.msk [vmem:[#allocation2 + $0x98] sm:$0xff] %vm272_vm2, %v3509_v32  ;;  %v1509_v13 = vadd.f32 %v5128_v8, %v1252_v3  ;;  %v1254_v20 = vld [vmem:[#allocation2 + $0x20] sm:$0xff]  ;;  %v1510_v56 = vadd.f32 %v5180_v53, %v1253_v22  ;;  %v1255_v18 = vld [vmem:[#allocation2 + $0x28] sm:$0xff] }
 0x1c9   : > { %293 = vst.msk [vmem:[#allocation2 + $0xa0] sm:$0xff] %vm272_vm2, %v3509_v32  ;;  %294 = vst.msk [vmem:[#allocation2 + $0xa8] sm:$0xff] %vm272_vm2, %v3509_v32  ;;  %v1511_v63 = vadd.f32 %v5234_v39, %v1254_v20  ;;  %v1413_v7 = vpop.f32.mrb[26].mxu0  ;;  %v1512_v30 = vadd.f32 %v5273_v55, %v1255_v18  ;;  %v1256_v27 = vld [vmem:[#allocation2 + $0x30] sm:$0xff]  ;;  %v1257_v43 = vld [vmem:[#allocation2 + $0x38] sm:$0xff] }
 0x1ca   : > { %295 = vst.msk [vmem:[#allocation2 + $0xb0] sm:$0xff] %vm272_vm2, %v3509_v32  ;;  %296 = vst.msk [vmem:[#allocation2 + $0xb8] sm:$0xff] %vm272_vm2, %v3509_v32  ;;  %v1415_v39 = vpop.f32.mrb[27].mxu0  ;;  %v1513_v19 = vadd.f32 %v5328_v25, %v1256_v27  ;;  %v1258_v55 = vld [vmem:[#allocation2 + $0x40] sm:$0xff]  ;;  %v1259_v25 = vld [vmem:[#allocation2 + $0x48] sm:$0xff] }
 0x1cb   : > { %297 = vst.msk [vmem:[#allocation2 + $0xc0] sm:$0xff] %vm272_vm2, %v3509_v32  ;;  %298 = vst.msk [vmem:[#allocation2 + $0xc8] sm:$0xff] %vm272_vm2, %v3509_v32  ;;  %v1515_v57 = vadd.f32 %v5946_v59, %v1258_v55  ;;  %v2582_v40 = vpop.f32.mrb[26].mxu1  ;;  %v1516_v42 = vadd.f32 %v5472_v6, %v1259_v25  ;;  %v1261_v2 = vld [vmem:[#allocation2 + $0x58] sm:$0xff] }
 0x1cc   : > { %299 = vst.msk [vmem:[#allocation2 + $0xd0] sm:$0xff] %vm272_vm2, %v3509_v32  ;;  %300 = vst.msk [vmem:[#allocation2 + $0xd8] sm:$0xff] %vm272_vm2, %v3509_v32  ;;  %v1518_v50 = vadd.f32 %v5580_v10, %v1261_v2  ;;  %v1262_v23 = vld [vmem:[#allocation2 + $0x60] sm:$0xff] }
 0x1cd   : > { %301 = vst.msk [vmem:[#allocation2 + $0xe0] sm:$0xff] %vm272_vm2, %v3509_v32  ;;  %302 = vst.msk [vmem:[#allocation2 + $0xe8] sm:$0xff] %vm272_vm2, %v3509_v32  ;;  %v1519_v37 = vadd.f32 %v5759_v60, %v1262_v23  ;;  %v1264_v10 = vld [vmem:[#allocation2 + $0x70] sm:$0xff] }
 0x1ce   : > { %303 = vst.msk [vmem:[#allocation2 + $0xf0] sm:$0xff] %vm272_vm2, %v3509_v32  ;;  %304 = vst.msk [vmem:[#allocation2 + $0xf8] sm:$0xff] %vm272_vm2, %v3509_v32 }
 0x1cf   : > { %305 = vst.msk [vmem:[#allocation2 + $0x100] sm:$0xff] %vm272_vm2, %v3509_v32  ;;  %306 = vst.msk [vmem:[#allocation2 + $0x108] sm:$0xff] %vm272_vm2, %v3509_v32  ;;  %v1268_v55 = vld [vmem:[#allocation2 + $0x90] sm:$0xff] }
 0x1d0   : > { %307 = vst.msk [vmem:[#allocation2 + $0x110] sm:$0xff] %vm272_vm2, %v3509_v32  ;;  %308 = vst.msk [vmem:[#allocation2 + $0x118] sm:$0xff] %vm272_vm2, %v3509_v32 }
 0x1d1   : > { %309 = vst.msk [vmem:[#allocation2 + $0x120] sm:$0xff] %vm272_vm2, %v3509_v32  ;;  %310 = vst.msk [vmem:[#allocation2 + $0x128] sm:$0xff] %vm272_vm2, %v3509_v32 }
 0x1d2   : > { %311 = vst.msk [vmem:[#allocation2 + $0x130] sm:$0xff] %vm272_vm2, %v3509_v32  ;;  %312 = vst.msk [vmem:[#allocation2 + $0x138] sm:$0xff] %vm272_vm2, %v3509_v32 }
 0x1d3   : > { %313 = vst.msk [vmem:[#allocation2 + $0x140] sm:$0xff] %vm272_vm2, %v3509_v32  ;;  %314 = vst.msk [vmem:[#allocation2 + $0x148] sm:$0xff] %vm272_vm2, %v3509_v32 }
 0x1d4   : > { %315 = vst.msk [vmem:[#allocation2 + $0x150] sm:$0xff] %vm272_vm2, %v3509_v32  ;;  %316 = vst.msk [vmem:[#allocation2 + $0x158] sm:$0xff] %vm272_vm2, %v3509_v32 }
 0x1d5   : > { %317 = vst.msk [vmem:[#allocation2 + $0x160] sm:$0xff] %vm272_vm2, %v3509_v32  ;;  %318 = vst.msk [vmem:[#allocation2 + $0x168] sm:$0xff] %vm272_vm2, %v3509_v32 }
 0x1d6   : > { %319 = vst.msk [vmem:[#allocation2 + $0x170] sm:$0xff] %vm272_vm2, %v3509_v32  ;;  %320 = vst.msk [vmem:[#allocation2 + $0x178] sm:$0xff] %vm272_vm2, %v3509_v32  ;;  %v2419_v45 = vld [vmem:[#allocation2 + $0x100] sm:$0xff]  ;;  %v2420_v61 = vld [vmem:[#allocation2 + $0x108] sm:$0xff] }
 0x1d7   : > { %321 = vst.msk [vmem:[#allocation2 + $0x180] sm:$0xff] %vm272_vm2, %v3509_v32  ;;  %322 = vst.msk [vmem:[#allocation2 + $0x188] sm:$0xff] %vm272_vm2, %v3509_v32  ;;  %v2676_v46 = vadd.f32 %v5096_v54, %v2419_v45  ;;  %v2421_v17 = vld [vmem:[#allocation2 + $0x110] sm:$0xff]  ;;  %v2677_v31 = vadd.f32 %v5108_v62, %v2420_v61  ;;  %v2422_v15 = vld [vmem:[#allocation2 + $0x118] sm:$0xff] }
 0x1d8   : > { %323 = vst.msk [vmem:[#allocation2 + $0x190] sm:$0xff] %vm272_vm2, %v3509_v32  ;;  %324 = vst.msk [vmem:[#allocation2 + $0x198] sm:$0xff] %vm272_vm2, %v3509_v32  ;;  %v2678_v28 = vadd.f32 %v5142_v33, %v2421_v17  ;;  %v2679_v54 = vadd.f32 %v5194_v21, %v2422_v15  ;;  %v2423_v62 = vld [vmem:[#allocation2 + $0x120] sm:$0xff]  ;;  %v2424_v8 = vld [vmem:[#allocation2 + $0x128] sm:$0xff] }
 0x1d9   : > { %325 = vst.msk [vmem:[#allocation2 + $0x1a0] sm:$0xff] %vm272_vm2, %v3509_v32  ;;  %326 = vst.msk [vmem:[#allocation2 + $0x1a8] sm:$0xff] %vm272_vm2, %v3509_v32  ;;  %v2680_v33 = vadd.f32 %v5246_v49, %v2423_v62  ;;  %v2681_v53 = vadd.f32 %v5287_v36, %v2424_v8  ;;  %v2425_v21 = vld [vmem:[#allocation2 + $0x130] sm:$0xff]  ;;  %v1514_v49 = vadd.f32 %v5944_v1, %v1257_v43  ;;  %v2426_v5 = vld [vmem:[#allocation2 + $0x138] sm:$0xff] }
 0x1da   : > { %327 = vst.msk [vmem:[#allocation2 + $0x1b0] sm:$0xff] %vm272_vm2, %v3509_v32  ;;  %328 = vst.msk [vmem:[#allocation2 + $0x1b8] sm:$0xff] %vm272_vm2, %v3509_v32  ;;  %v2682_v52 = vadd.f32 %v5341_v44, %v2425_v21  ;;  %v2427_v4 = vld [vmem:[#allocation2 + $0x140] sm:$0xff]  ;;  %v5945_v36 = vld [vmem:[#allocation10_spill] sm:$0xff] }
 0x1db   : > { %329 = vst.msk [vmem:[#allocation2 + $0x1c0] sm:$0xff] %vm272_vm2, %v3509_v32  ;;  %330 = vst.msk [vmem:[#allocation2 + $0x1c8] sm:$0xff] %vm272_vm2, %v3509_v32  ;;  %v2683_v29 = vadd.f32 %v5945_v36, %v2426_v5  ;;  %v2684_v58 = vadd.f32 %v5947_v24, %v2427_v4  ;;  %v2428_v38 = vld [vmem:[#allocation2 + $0x148] sm:$0xff]  ;;  %v1260_v44 = vld [vmem:[#allocation2 + $0x50] sm:$0xff] }
 0x1dc   : > { %331 = vst.msk [vmem:[#allocation2 + $0x1d0] sm:$0xff] %vm272_vm2, %v3509_v32  ;;  %332 = vst.msk [vmem:[#allocation2 + $0x1d8] sm:$0xff] %vm272_vm2, %v3509_v32  ;;  %v2685_v26 = vadd.f32 %v5948_v16, %v2428_v38  ;;  %v1517_v9 = vadd.f32 %v5949_v14, %v1260_v44  ;;  %v2429_v51 = vld [vmem:[#allocation2 + $0x150] sm:$0xff]  ;;  %v2430_v11 = vld [vmem:[#allocation2 + $0x158] sm:$0xff] }
 0x1dd   : > { %333 = vst.msk [vmem:[#allocation2 + $0x1e0] sm:$0xff] %vm272_vm2, %v3509_v32  ;;  %334 = vst.msk [vmem:[#allocation2 + $0x1e8] sm:$0xff] %vm272_vm2, %v3509_v32  ;;  %v2686_v47 = vadd.f32 %v5539_v41, %v2429_v51  ;;  %v2687_v6 = vadd.f32 %v5595_v34, %v2430_v11  ;;  %v2431_v35 = vld [vmem:[#allocation2 + $0x160] sm:$0xff]  ;;  %v1263_v45 = vld [vmem:[#allocation2 + $0x68] sm:$0xff]  ;;  %v1418_v34 = vpop.f32.mrb[28].mxu0 }
 0x1de   : > { %335 = vst.msk [vmem:[#allocation2 + $0x1f0] sm:$0xff] %vm272_vm2, %v3509_v32  ;;  %336 = vst.msk [vmem:[#allocation2 + $0x1f8] sm:$0xff] %vm272_vm2, %v3509_v32  ;;  %v2584_v32 = vpop.f32.mrb[27].mxu1  ;;  %v1521_v60 = vadd.f32 %v1418_v34, %v1264_v10  ;;  %v1420_v61 = vpop.f32.mrb[29].mxu0  ;;  %v2434_v15 = vld [vmem:[#allocation2 + $0x178] sm:$0xff]  ;;  %v1266_v62 = vld [vmem:[#allocation2 + $0x80] sm:$0xff] }
 0x1df   : > { %1540 = vst.msk [vmem:[#allocation2] sm:$0xff] %vm272_vm2, %v1507_v0  ;;  %2708 = vst.msk [vmem:[#allocation2 + $0x100] sm:$0xff] %vm272_vm2, %v2676_v46  ;;  %v2688_v0 = vadd.f32 %v5764_v48, %v2431_v35  ;;  %v1520_v46 = vadd.f32 %v1413_v7, %v1263_v45  ;;  %v2433_v48 = vld [vmem:[#allocation2 + $0x170] sm:$0xff]  ;;  %v2587_v3 = vpop.f32.mrb[28].mxu1  ;;  %v2435_v7 = vld [vmem:[#allocation2 + $0x180] sm:$0xff] }
 0x1e0   : > { %1541 = vst.msk [vmem:[#allocation2 + $0x8] sm:$0xff] %vm272_vm2, %v1508_v12  ;;  %2709 = vst.msk [vmem:[#allocation2 + $0x108] sm:$0xff] %vm272_vm2, %v2677_v31  ;;  %v2432_v12 = vld [vmem:[#allocation2 + $0x168] sm:$0xff]  ;;  %v2690_v17 = vadd.f32 %v2587_v3, %v2433_v48  ;;  %v2589_v31 = vpop.f32.mrb[29].mxu1  ;;  %v2437_v24 = vld [vmem:[#allocation2 + $0x190] sm:$0xff] }
 0x1e1   : > { %1542 = vst.msk [vmem:[#allocation2 + $0x10] sm:$0xff] %vm272_vm2, %v1509_v13  ;;  %2710 = vst.msk [vmem:[#allocation2 + $0x110] sm:$0xff] %vm272_vm2, %v2678_v28  ;;  %v2689_v41 = vadd.f32 %v2582_v40, %v2432_v12  ;;  %v1265_v13 = vld [vmem:[#allocation2 + $0x78] sm:$0xff]  ;;  %v1423_v28 = vpop.f32.mrb[30].mxu0  ;;  %v1267_v21 = vld [vmem:[#allocation2 + $0x88] sm:$0xff] }
 0x1e2   : > { %1543 = vst.msk [vmem:[#allocation2 + $0x18] sm:$0xff] %vm272_vm2, %v1510_v56  ;;  %2711 = vst.msk [vmem:[#allocation2 + $0x118] sm:$0xff] %vm272_vm2, %v2679_v54  ;;  %v1522_v22 = vadd.f32 %v1423_v28, %v1265_v13  ;;  %v1425_v20 = vpop.f32.mrb[31].mxu0  ;;  %v2592_v56 = vpop.f32.mrb[30].mxu1  ;;  %v2436_v39 = vld [vmem:[#allocation2 + $0x188] sm:$0xff]  ;;  %v1269_v32 = vld [vmem:[#allocation2 + $0x98] sm:$0xff] }
 0x1e3   : > { %1544 = vst.msk [vmem:[#allocation2 + $0x20] sm:$0xff] %vm272_vm2, %v1511_v63  ;;  %2712 = vst.msk [vmem:[#allocation2 + $0x120] sm:$0xff] %vm272_vm2, %v2680_v33  ;;  %v2691_v54 = vadd.f32 %v2592_v56, %v2434_v15  ;;  %v2594_v63 = vpop.f32.mrb[31].mxu1 }
 0x1e4   : > { %1545 = vst.msk [vmem:[#allocation2 + $0x28] sm:$0xff] %vm272_vm2, %v1512_v30  ;;  %2713 = vst.msk [vmem:[#allocation2 + $0x128] sm:$0xff] %vm272_vm2, %v2681_v53 }
 0x1e5   : > { %1546 = vst.msk [vmem:[#allocation2 + $0x30] sm:$0xff] %vm272_vm2, %v1513_v19  ;;  %2714 = vst.msk [vmem:[#allocation2 + $0x130] sm:$0xff] %vm272_vm2, %v2682_v52 }
 0x1e6   : > { %1547 = vst.msk [vmem:[#allocation2 + $0x38] sm:$0xff] %vm272_vm2, %v1514_v49  ;;  %2715 = vst.msk [vmem:[#allocation2 + $0x138] sm:$0xff] %vm272_vm2, %v2683_v29  ;;  %v2744_v38 = vld [vmem:[#allocation2] sm:$0xff] }
 0x1e7   : > { %1548 = vst.msk [vmem:[#allocation2 + $0x40] sm:$0xff] %vm272_vm2, %v1515_v57  ;;  %2716 = vst.msk [vmem:[#allocation2 + $0x140] sm:$0xff] %vm272_vm2, %v2684_v58  ;;  %v2745_v4 = vld [vmem:[#allocation2 + $0x8] sm:$0xff] }
 0x1e8   : > { %1549 = vst.msk [vmem:[#allocation2 + $0x48] sm:$0xff] %vm272_vm2, %v1516_v42  ;;  %2717 = vst.msk [vmem:[#allocation2 + $0x148] sm:$0xff] %vm272_vm2, %v2685_v26  ;;  %v2860_v44 = vld [vmem:[#allocation2 + $0x108] sm:$0xff]  ;;  %v3268_v16 = vpack.c.bf16 %v2745_v4, %v2744_v38  ;;  %v2746_v34 = vld [vmem:[#allocation2 + $0x10] sm:$0xff] }
 0x1e9   : > { %1550 = vst.msk [vmem:[#allocation2 + $0x50] sm:$0xff] %vm272_vm2, %v1517_v9  ;;  %2718 = vst.msk [vmem:[#allocation2 + $0x150] sm:$0xff] %vm272_vm2, %v2686_v47  ;;  %v2859_v9 = vld [vmem:[#allocation2 + $0x100] sm:$0xff]  ;;  %v2862_v61 = vld [vmem:[#allocation2 + $0x118] sm:$0xff] }
 0x1ea   : > { %1551 = vst.msk [vmem:[#allocation2 + $0x58] sm:$0xff] %vm272_vm2, %v1518_v50  ;;  %2719 = vst.msk [vmem:[#allocation2 + $0x158] sm:$0xff] %vm272_vm2, %v2687_v6  ;;  %v3300_v11 = vpack.c.bf16 %v2860_v44, %v2859_v9  ;;  %v2438_v6 = vld [vmem:[#allocation2 + $0x198] sm:$0xff]  ;;  %v2861_v15 = vld [vmem:[#allocation2 + $0x110] sm:$0xff] }
 0x1eb   : > { %1552 = vst.msk [vmem:[#allocation2 + $0x60] sm:$0xff] %vm272_vm2, %v1519_v37  ;;  %2720 = vst.msk [vmem:[#allocation2 + $0x160] sm:$0xff] %vm272_vm2, %v2688_v0  ;;  %v1428_v18 = vpop.f32.mrb[32].mxu0  ;;  %v2747_v0 = vld [vmem:[#allocation2 + $0x18] sm:$0xff]  ;;  %v3304_v56 = vpack.c.bf16 %v2862_v61, %v2861_v15  ;;  %v2863_v44 = vld [vmem:[#allocation2 + $0x120] sm:$0xff] }
 0x1ec   : > { %1553 = vst.msk [vmem:[#allocation2 + $0x68] sm:$0xff] %vm272_vm2, %v1520_v46  ;;  %2721 = vst.msk [vmem:[#allocation2 + $0x168] sm:$0xff] %vm272_vm2, %v2689_v41  ;;  %v1523_v8 = vadd.f32 %v1428_v18, %v1266_v62  ;;  %v1430_v33 = vpop.f32.mrb[33].mxu0  ;;  %v1270_v46 = vld [vmem:[#allocation2 + $0xa0] sm:$0xff]  ;;  %v3272_v48 = vpack.c.bf16 %v2747_v0, %v2746_v34  ;;  %v1271_v62 = vld [vmem:[#allocation2 + $0xa8] sm:$0xff] }
 0x1ed   : > { %1554 = vst.msk [vmem:[#allocation2 + $0x70] sm:$0xff] %vm272_vm2, %v1521_v60  ;;  %2722 = vst.msk [vmem:[#allocation2 + $0x170] sm:$0xff] %vm272_vm2, %v2690_v17  ;;  %v2439_v17 = vld [vmem:[#allocation2 + $0x1a0] sm:$0xff] }
 0x1ee   : > { %1555 = vst.msk [vmem:[#allocation2 + $0x78] sm:$0xff] %vm272_vm2, %v1522_v22  ;;  %2723 = vst.msk [vmem:[#allocation2 + $0x178] sm:$0xff] %vm272_vm2, %v2691_v54  ;;  %v2597_v30 = vpop.f32.mrb[32].mxu1 }
 0x1ef   : > { %1556 = vst.msk [vmem:[#allocation2 + $0x80] sm:$0xff] %vm272_vm2, %v1523_v8  ;;  %v2692_v53 = vadd.f32 %v2597_v30, %v2435_v7  ;;  %v2599_v27 = vpop.f32.mrb[33].mxu1  ;;  %v5837_v18 = vld.sshfl [vmem:[%s5921_s1] sm:$0x33 pattern:$0x76325410] }
 0x1f0   : > { %v2440_v7 = vld [vmem:[#allocation2 + $0x1a8] sm:$0xff]  ;;  %v2784_v33 = vcombine.high %v5837_v18, %v5837_v18 }
 0x1f1   : > { %2724 = vst.msk [vmem:[#allocation2 + $0x180] sm:$0xff] %vm272_vm2, %v2692_v53 }
 0x1f2   : > { %2851 = vmatprep.mubr.f32.mxu0 %v2784_v33  ;;  %2955 = vmatprep.mubr.f32.mxu1 %v2784_v33  ;;  %v2753_v33 = vld [vmem:[#allocation2 + $0x48] sm:$0xff] }
 0x1f6   : > { %v1433_v43 = vpop.f32.mrb[34].mxu0  ;;  %v2760_v29 = vld [vmem:[#allocation2 + $0x80] sm:$0xff] }
 0x1f7   : > { %v1524_v19 = vadd.f32 %v1433_v43, %v1267_v21  ;;  %v1435_v52 = vpop.f32.mrb[35].mxu0 }
 0x1f8   : > { %v2875_v40 = vld [vmem:[#allocation2 + $0x180] sm:$0xff] }
 0x1f9   : > { %v2602_v1 = vpop.f32.mrb[34].mxu1  ;;  %1557 = vst.msk [vmem:[#allocation2 + $0x88] sm:$0xff] %vm272_vm2, %v1524_v19  ;;  %v2749_v19 = vld [vmem:[#allocation2 + $0x28] sm:$0xff] }
 0x1fa   : > { %v2693_v49 = vadd.f32 %v2602_v1, %v2436_v39  ;;  %v2604_v5 = vpop.f32.mrb[35].mxu1  ;;  %v1272_v39 = vld [vmem:[#allocation2 + $0xb0] sm:$0xff] }
 0x1fc   : > { %2725 = vst.msk [vmem:[#allocation2 + $0x188] sm:$0xff] %vm272_vm2, %v2693_v49 }
 0x200   : > { %v2761_v59 = vld [vmem:[#allocation2 + $0x88] sm:$0xff] }
 0x201   : > { %v1438_v36 = vpop.f32.mrb[36].mxu0  ;;  %v3266_v25 = vpack.c.bf16 %v2761_v59, %v2760_v29  ;;  %v2748_v29 = vld [vmem:[#allocation2 + $0x20] sm:$0xff]  ;;  %v2864_v59 = vld [vmem:[#allocation2 + $0x128] sm:$0xff] }
 0x202   : > { %v1525_v57 = vadd.f32 %v1438_v36, %v1268_v55  ;;  %v1440_v58 = vpop.f32.mrb[37].mxu0  ;;  %v2441_v55 = vld [vmem:[#allocation2 + $0x1b0] sm:$0xff] }
 0x203   : > { %v2876_v42 = vld [vmem:[#allocation2 + $0x188] sm:$0xff]  ;;  %v2607_v26 = vpop.f32.mrb[36].mxu1  ;;  %3267 = vmatprep.subr.bf16.mxu0 %v3266_v25  ;;  %v3276_v58 = vpack.c.bf16 %v2749_v19, %v2748_v29  ;;  %v2867_v29 = vld [vmem:[#allocation2 + $0x140] sm:$0xff] }
 0x204   : > { %1558 = vst.msk [vmem:[#allocation2 + $0x90] sm:$0xff] %vm272_vm2, %v1525_v57  ;;  %v3298_v14 = vpack.c.bf16 %v2876_v42, %v2875_v40  ;;  %v2694_v51 = vadd.f32 %v2607_v26, %v2437_v24  ;;  %v2609_v2 = vpop.f32.mrb[37].mxu1  ;;  %3269 = vmatpush3.bf16.msra.mxu0 %v3268_v16  ;;  %v3308_v16 = vpack.c.bf16 %v2864_v59, %v2863_v44  ;;  %v1273_v26 = vld [vmem:[#allocation2 + $0xb8] sm:$0xff] }
 0x205   : > { %v2446_v44 = vld [vmem:[#allocation2 + $0x1d8] sm:$0xff] }
 0x206   : > { %3299 = vmatprep.subr.bf16.mxu1 %v3298_v14  ;;  %2726 = vst.msk [vmem:[#allocation2 + $0x190] sm:$0xff] %vm272_vm2, %v2694_v51  ;;  %v2442_v51 = vld [vmem:[#allocation2 + $0x1b8] sm:$0xff] }
 0x207   : > { %3301 = vmatpush3.bf16.msra.mxu1 %v3300_v11 }
 0x20b   : > { %v2762_v12 = vld [vmem:[#allocation2 + $0x90] sm:$0xff] }
 0x20c   : > { %v1443_v47 = vpop.f32.mrb[38].mxu0 }
 0x20d   : > { %v1526_v50 = vadd.f32 %v1443_v47, %v1269_v32  ;;  %v1445_v23 = vpop.f32.mrb[39].mxu0  ;;  %v2877_v13 = vld [vmem:[#allocation2 + $0x190] sm:$0xff] }
 0x20f   : > { %1559 = vst.msk [vmem:[#allocation2 + $0x98] sm:$0xff] %vm272_vm2, %v1526_v50  ;;  %v2612_v35 = vpop.f32.mrb[38].mxu1  ;;  %v2751_v50 = vld [vmem:[#allocation2 + $0x38] sm:$0xff] }
 0x210   : > { %v2695_v45 = vadd.f32 %v2612_v35, %v2438_v6  ;;  %v2614_v37 = vpop.f32.mrb[39].mxu1  ;;  %v1274_v6 = vld [vmem:[#allocation2 + $0xc0] sm:$0xff] }
 0x211   : > { %v2750_v37 = vld [vmem:[#allocation2 + $0x30] sm:$0xff] }
 0x212   : > { %2727 = vst.msk [vmem:[#allocation2 + $0x198] sm:$0xff] %vm272_vm2, %v2695_v45 }
 0x216   : > { %v2763_v41 = vld [vmem:[#allocation2 + $0x98] sm:$0xff] }
 0x217   : > { %v3270_v10 = vpack.c.bf16 %v2763_v41, %v2762_v12  ;;  %v2866_v12 = vld [vmem:[#allocation2 + $0x138] sm:$0xff] }
 0x218   : > { %v1448_v60 = vpop.f32.mrb[40].mxu0 }
 0x219   : > { %v1527_v3 = vadd.f32 %v1448_v60, %v1270_v46  ;;  %v1450_v31 = vpop.f32.mrb[41].mxu0  ;;  %3271 = vmatprep.subr.bf16.mxu0 %v3270_v10  ;;  %v2878_v28 = vld [vmem:[#allocation2 + $0x198] sm:$0xff]  ;;  %v3280_v46 = vpack.c.bf16 %v2751_v50, %v2750_v37  ;;  %v2443_v10 = vld [vmem:[#allocation2 + $0x1c0] sm:$0xff] }
 0x21a   : > { %v3302_v22 = vpack.c.bf16 %v2878_v28, %v2877_v13  ;;  %3273 = vmatpush3.bf16.msra.mxu0 %v3272_v48 }
 0x21b   : > { %1560 = vst.msk [vmem:[#allocation2 + $0xa0] sm:$0xff] %vm272_vm2, %v1527_v3  ;;  %v2617_v20 = vpop.f32.mrb[40].mxu1  ;;  %v2865_v3 = vld [vmem:[#allocation2 + $0x130] sm:$0xff] }
 0x21c   : > { %v2696_v54 = vadd.f32 %v2617_v20, %v2439_v17  ;;  %v2619_v63 = vpop.f32.mrb[41].mxu1  ;;  %3303 = vmatprep.subr.bf16.mxu1 %v3302_v22  ;;  %v3312_v31 = vpack.c.bf16 %v2866_v12, %v2865_v3  ;;  %v1275_v22 = vld [vmem:[#allocation2 + $0xc8] sm:$0xff]  ;;  %v2869_v12 = vld [vmem:[#allocation2 + $0x150] sm:$0xff] }
 0x21d   : > { %3305 = vmatpush3.bf16.msra.mxu1 %v3304_v56  ;;  %v2444_v20 = vld [vmem:[#allocation2 + $0x1c8] sm:$0xff] }
 0x21e   : > { %2728 = vst.msk [vmem:[#allocation2 + $0x1a0] sm:$0xff] %vm272_vm2, %v2696_v54  ;;  %v2448_v3 = vld [vmem:[#allocation2 + $0x1e8] sm:$0xff] }
 0x222   : > { %v2764_v1 = vld [vmem:[#allocation2 + $0xa0] sm:$0xff] }
 0x224   : > { %v1453_v8 = vpop.f32.mrb[42].mxu0 }
 0x225   : > { %v1528_v30 = vadd.f32 %v1453_v8, %v1271_v62  ;;  %v1455_v53 = vpop.f32.mrb[43].mxu0  ;;  %v2879_v57 = vld [vmem:[#allocation2 + $0x1a0] sm:$0xff] }
 0x226   : > { %v2622_v27 = vpop.f32.mrb[42].mxu1 }
 0x227   : > { %1561 = vst.msk [vmem:[#allocation2 + $0xa8] sm:$0xff] %vm272_vm2, %v1528_v30  ;;  %v2697_v21 = vadd.f32 %v2622_v27, %v2440_v7  ;;  %v2624_v43 = vpop.f32.mrb[43].mxu1  ;;  %v1276_v7 = vld [vmem:[#allocation2 + $0xd0] sm:$0xff] }
 0x228   : > { %v2445_v43 = vld [vmem:[#allocation2 + $0x1d0] sm:$0xff] }
 0x229   : > { %2729 = vst.msk [vmem:[#allocation2 + $0x1a8] sm:$0xff] %vm272_vm2, %v2697_v21 }
 0x22e   : > { %v1458_v52 = vpop.f32.mrb[44].mxu0  ;;  %v2765_v49 = vld [vmem:[#allocation2 + $0xa8] sm:$0xff] }
 0x22f   : > { %v1529_v5 = vadd.f32 %v1458_v52, %v1272_v39  ;;  %v1460_v4 = vpop.f32.mrb[45].mxu0  ;;  %v3274_v36 = vpack.c.bf16 %v2765_v49, %v2764_v1  ;;  %v2752_v52 = vld [vmem:[#allocation2 + $0x40] sm:$0xff]  ;;  %v2868_v1 = vld [vmem:[#allocation2 + $0x148] sm:$0xff] }
 0x230   : > { %v2880_v24 = vld [vmem:[#allocation2 + $0x1a8] sm:$0xff] }
 0x231   : > { %1562 = vst.msk [vmem:[#allocation2 + $0xb0] sm:$0xff] %vm272_vm2, %v1529_v5  ;;  %v2627_v25 = vpop.f32.mrb[44].mxu1  ;;  %3275 = vmatprep.subr.bf16.mxu0 %v3274_v36  ;;  %v3306_v38 = vpack.c.bf16 %v2880_v24, %v2879_v57  ;;  %v3316_v24 = vpack.c.bf16 %v2868_v1, %v2867_v29  ;;  %v2450_v29 = vld [vmem:[#allocation2 + $0x1f8] sm:$0xff] }
 0x232   : > { %v2698_v40 = vadd.f32 %v2627_v25, %v2441_v55  ;;  %v2629_v42 = vpop.f32.mrb[45].mxu1  ;;  %3277 = vmatpush3.bf16.msra.mxu0 %v3276_v58  ;;  %v3284_v55 = vpack.c.bf16 %v2753_v33, %v2752_v52  ;;  %v1277_v58 = vld [vmem:[#allocation2 + $0xd8] sm:$0xff]  ;;  %v2871_v52 = vld [vmem:[#allocation2 + $0x160] sm:$0xff] }
 0x233   : > { %3307 = vmatprep.subr.bf16.mxu1 %v3306_v38 }
 0x234   : > { %2730 = vst.msk [vmem:[#allocation2 + $0x1b0] sm:$0xff] %vm272_vm2, %v2698_v40  ;;  %3309 = vmatpush3.bf16.msra.mxu1 %v3308_v16 }
 0x238   : > { %v2766_v23 = vld [vmem:[#allocation2 + $0xb0] sm:$0xff] }
 0x239   : > { %v1463_v14 = vpop.f32.mrb[46].mxu0 }
 0x23a   : > { %v1530_v9 = vadd.f32 %v1463_v14, %v1273_v26  ;;  %v1465_v2 = vpop.f32.mrb[47].mxu0  ;;  %v2755_v14 = vld [vmem:[#allocation2 + $0x58] sm:$0xff] }
 0x23b   : > { %v2881_v60 = vld [vmem:[#allocation2 + $0x1b0] sm:$0xff] }
 0x23c   : > { %1563 = vst.msk [vmem:[#allocation2 + $0xb8] sm:$0xff] %vm272_vm2, %v1530_v9  ;;  %v2632_v11 = vpop.f32.mrb[46].mxu1  ;;  %v1278_v9 = vld [vmem:[#allocation2 + $0xe0] sm:$0xff] }
 0x23d   : > { %v2699_v32 = vadd.f32 %v2632_v11, %v2442_v51  ;;  %v2634_v47 = vpop.f32.mrb[47].mxu1 }
 0x23f   : > { %2731 = vst.msk [vmem:[#allocation2 + $0x1b8] sm:$0xff] %vm272_vm2, %v2699_v32  ;;  %v2754_v32 = vld [vmem:[#allocation2 + $0x50] sm:$0xff] }
 0x240   : > { %v3288_v50 = vpack.c.bf16 %v2755_v14, %v2754_v32 }
 0x243   : > { %v2767_v35 = vld [vmem:[#allocation2 + $0xb8] sm:$0xff] }
 0x244   : > { %v3278_v45 = vpack.c.bf16 %v2767_v35, %v2766_v23  ;;  %v2447_v35 = vld [vmem:[#allocation2 + $0x1e0] sm:$0xff] }
 0x245   : > { %v1468_v0 = vpop.f32.mrb[48].mxu0 }
 0x246   : > { %v1531_v41 = vadd.f32 %v1468_v0, %v1274_v6  ;;  %v1470_v34 = vpop.f32.mrb[49].mxu0  ;;  %3279 = vmatprep.subr.bf16.mxu0 %v3278_v45  ;;  %v2882_v48 = vld [vmem:[#allocation2 + $0x1b8] sm:$0xff] }
 0x247   : > { %v3310_v61 = vpack.c.bf16 %v2882_v48, %v2881_v60  ;;  %3281 = vmatpush3.bf16.msra.mxu0 %v3280_v46  ;;  %v2870_v6 = vld [vmem:[#allocation2 + $0x158] sm:$0xff]  ;;  %v1279_v48 = vld [vmem:[#allocation2 + $0xe8] sm:$0xff] }
 0x248   : > { %1564 = vst.msk [vmem:[#allocation2 + $0xc0] sm:$0xff] %vm272_vm2, %v1531_v41  ;;  %v2637_v17 = vpop.f32.mrb[48].mxu1 }
 0x249   : > { %v2700_v13 = vadd.f32 %v2637_v17, %v2443_v10  ;;  %v2639_v28 = vpop.f32.mrb[49].mxu1  ;;  %3311 = vmatprep.subr.bf16.mxu1 %v3310_v61  ;;  %v3320_v10 = vpack.c.bf16 %v2870_v6, %v2869_v12 }
 0x24a   : > { %3313 = vmatpush3.bf16.msra.mxu1 %v3312_v31 }
 0x24b   : > { %2732 = vst.msk [vmem:[#allocation2 + $0x1c0] sm:$0xff] %vm272_vm2, %v2700_v13 }
 0x24f   : > { %v2768_v53 = vld [vmem:[#allocation2 + $0xc0] sm:$0xff] }
 0x251   : > { %v1473_v15 = vpop.f32.mrb[50].mxu0 }
 0x252   : > { %v1532_v56 = vadd.f32 %v1473_v15, %v1275_v22  ;;  %v1475_v54 = vpop.f32.mrb[51].mxu0  ;;  %v2883_v49 = vld [vmem:[#allocation2 + $0x1c0] sm:$0xff]  ;;  %v1280_v15 = vld [vmem:[#allocation2 + $0xf0] sm:$0xff] }
 0x253   : > { %v2642_v63 = vpop.f32.mrb[50].mxu1 }
 0x254   : > { %1565 = vst.msk [vmem:[#allocation2 + $0xc8] sm:$0xff] %vm272_vm2, %v1532_v56  ;;  %v2701_v62 = vadd.f32 %v2642_v63, %v2444_v20  ;;  %v2644_v8 = vpop.f32.mrb[51].mxu1  ;;  %v2757_v20 = vld [vmem:[#allocation2 + $0x68] sm:$0xff] }
 0x255   : > { %v2449_v8 = vld [vmem:[#allocation2 + $0x1f0] sm:$0xff] }
 0x256   : > { %2733 = vst.msk [vmem:[#allocation2 + $0x1c8] sm:$0xff] %vm272_vm2, %v2701_v62 }
 0x25b   : > { %v1478_v30 = vpop.f32.mrb[52].mxu0  ;;  %v2769_v27 = vld [vmem:[#allocation2 + $0xc8] sm:$0xff] }
 0x25c   : > { %v1533_v21 = vadd.f32 %v1478_v30, %v1276_v7  ;;  %v1480_v39 = vpop.f32.mrb[53].mxu0  ;;  %v3282_v19 = vpack.c.bf16 %v2769_v27, %v2768_v53  ;;  %v2756_v30 = vld [vmem:[#allocation2 + $0x60] sm:$0xff]  ;;  %v2872_v53 = vld [vmem:[#allocation2 + $0x168] sm:$0xff] }
 0x25d   : > { %v2884_v5 = vld [vmem:[#allocation2 + $0x1c8] sm:$0xff] }
 0x25e   : > { %1566 = vst.msk [vmem:[#allocation2 + $0xd0] sm:$0xff] %vm272_vm2, %v1533_v21  ;;  %v2647_v4 = vpop.f32.mrb[52].mxu1  ;;  %3283 = vmatprep.subr.bf16.mxu0 %v3282_v19  ;;  %v3314_v36 = vpack.c.bf16 %v2884_v5, %v2883_v49  ;;  %v3324_v5 = vpack.c.bf16 %v2872_v53, %v2871_v52 }
 0x25f   : > { %v2702_v59 = vadd.f32 %v2647_v4, %v2445_v43  ;;  %v2649_v57 = vpop.f32.mrb[53].mxu1  ;;  %3285 = vmatpush3.bf16.msra.mxu0 %v3284_v55  ;;  %v3292_v43 = vpack.c.bf16 %v2757_v20, %v2756_v30  ;;  %v1281_v55 = vld [vmem:[#allocation2 + $0xf8] sm:$0xff] }
 0x260   : > { %3315 = vmatprep.subr.bf16.mxu1 %v3314_v36 }
 0x261   : > { %2734 = vst.msk [vmem:[#allocation2 + $0x1d0] sm:$0xff] %vm272_vm2, %v2702_v59  ;;  %3317 = vmatpush3.bf16.msra.mxu1 %v3316_v24 }
 0x265   : > { %v2770_v51 = vld [vmem:[#allocation2 + $0xd0] sm:$0xff] }
 0x266   : > { %v1483_v25 = vpop.f32.mrb[54].mxu0 }
 0x267   : > { %v1534_v38 = vadd.f32 %v1483_v25, %v1277_v58  ;;  %v1485_v40 = vpop.f32.mrb[55].mxu0  ;;  %v2759_v25 = vld [vmem:[#allocation2 + $0x78] sm:$0xff] }
 0x268   : > { %v2885_v37 = vld [vmem:[#allocation2 + $0x1d0] sm:$0xff] }
 0x269   : > { %1567 = vst.msk [vmem:[#allocation2 + $0xd8] sm:$0xff] %vm272_vm2, %v1534_v38  ;;  %v2652_v42 = vpop.f32.mrb[54].mxu1 }
 0x26a   : > { %v2703_v16 = vadd.f32 %v2652_v42, %v2446_v44  ;;  %v2654_v26 = vpop.f32.mrb[55].mxu1  ;;  %v2758_v42 = vld [vmem:[#allocation2 + $0x70] sm:$0xff] }
 0x26b   : > { %v2874_v26 = vld [vmem:[#allocation2 + $0x178] sm:$0xff] }
 0x26c   : > { %2735 = vst.msk [vmem:[#allocation2 + $0x1d8] sm:$0xff] %vm272_vm2, %v2703_v16  ;;  %v3296_v16 = vpack.c.bf16 %v2759_v25, %v2758_v42 }
 0x270   : > { %v2771_v2 = vld [vmem:[#allocation2 + $0xd8] sm:$0xff] }
 0x271   : > { %v3286_v11 = vpack.c.bf16 %v2771_v2, %v2770_v51  ;;  %v2873_v2 = vld [vmem:[#allocation2 + $0x170] sm:$0xff] }
 0x272   : > { %v1488_v47 = vpop.f32.mrb[56].mxu0 }
 0x273   : > { %v1535_v23 = vadd.f32 %v1488_v47, %v1278_v9  ;;  %v1490_v45 = vpop.f32.mrb[57].mxu0  ;;  %3287 = vmatprep.subr.bf16.mxu0 %v3286_v11  ;;  %v2886_v0 = vld [vmem:[#allocation2 + $0x1d8] sm:$0xff]  ;;  %v3328_v11 = vpack.c.bf16 %v2874_v26, %v2873_v2 }
 0x274   : > { %v3318_v46 = vpack.c.bf16 %v2886_v0, %v2885_v37  ;;  %3289 = vmatpush3.bf16.msra.mxu0 %v3288_v50 }
 0x275   : > { %1568 = vst.msk [vmem:[#allocation2 + $0xe0] sm:$0xff] %vm272_vm2, %v1535_v23  ;;  %v2657_v41 = vpop.f32.mrb[56].mxu1 }
 0x276   : > { %v2704_v34 = vadd.f32 %v2657_v41, %v2447_v35  ;;  %v2659_v60 = vpop.f32.mrb[57].mxu1  ;;  %3319 = vmatprep.subr.bf16.mxu1 %v3318_v46 }
 0x277   : > { %3321 = vmatpush3.bf16.msra.mxu1 %v3320_v10 }
 0x278   : > { %2736 = vst.msk [vmem:[#allocation2 + $0x1e0] sm:$0xff] %vm272_vm2, %v2704_v34 }
 0x27c   : > { %v2772_v54 = vld [vmem:[#allocation2 + $0xe0] sm:$0xff] }
 0x27e   : > { %v1493_v61 = vpop.f32.mrb[58].mxu0 }
 0x27f   : > { %v1536_v17 = vadd.f32 %v1493_v61, %v1279_v48  ;;  %v1495_v31 = vpop.f32.mrb[59].mxu0  ;;  %v2887_v27 = vld [vmem:[#allocation2 + $0x1e0] sm:$0xff] }
 0x280   : > { %v2662_v13 = vpop.f32.mrb[58].mxu1 }
 0x281   : > { %1569 = vst.msk [vmem:[#allocation2 + $0xe8] sm:$0xff] %vm272_vm2, %v1536_v17  ;;  %v2705_v28 = vadd.f32 %v2662_v13, %v2448_v3  ;;  %v2664_v22 = vpop.f32.mrb[59].mxu1 }
 0x283   : > { %2737 = vst.msk [vmem:[#allocation2 + $0x1e8] sm:$0xff] %vm272_vm2, %v2705_v28 }
 0x288   : > { %v1498_v56 = vpop.f32.mrb[60].mxu0  ;;  %v2773_v63 = vld [vmem:[#allocation2 + $0xe8] sm:$0xff] }
 0x289   : > { %v1537_v62 = vadd.f32 %v1498_v56, %v1280_v15  ;;  %v1500_v7 = vpop.f32.mrb[61].mxu0  ;;  %v3290_v33 = vpack.c.bf16 %v2773_v63, %v2772_v54 }
 0x28a   : > { %v2888_v21 = vld [vmem:[#allocation2 + $0x1e8] sm:$0xff] }
 0x28b   : > { %1570 = vst.msk [vmem:[#allocation2 + $0xf0] sm:$0xff] %vm272_vm2, %v1537_v62  ;;  %v2667_v39 = vpop.f32.mrb[60].mxu1  ;;  %3291 = vmatprep.subr.bf16.mxu0 %v3290_v33  ;;  %v3322_v19 = vpack.c.bf16 %v2888_v21, %v2887_v27 }
 0x28c   : > { %v2706_v1 = vadd.f32 %v2667_v39, %v2449_v8  ;;  %v2669_v49 = vpop.f32.mrb[61].mxu1  ;;  %3293 = vmatpush3.bf16.msra.mxu0 %v3292_v43 }
 0x28d   : > { %3323 = vmatprep.subr.bf16.mxu1 %v3322_v19 }
 0x28e   : > { %2738 = vst.msk [vmem:[#allocation2 + $0x1f0] sm:$0xff] %vm272_vm2, %v2706_v1  ;;  %3325 = vmatpush3.bf16.msra.mxu1 %v3324_v5 }
 0x292   : > { %v2774_v38 = vld [vmem:[#allocation2 + $0xf0] sm:$0xff] }
 0x293   : > { %v1503_v4 = vpop.f32.mrb[62].mxu0 }
 0x294   : > { %v1538_v36 = vadd.f32 %v1503_v4, %v1281_v55  ;;  %v1505_v59 = vpop.f32.mrb[63].mxu0 }
 0x295   : > { %v2889_v14 = vld [vmem:[#allocation2 + $0x1f0] sm:$0xff] }
 0x296   : > { %1571 = vst.msk [vmem:[#allocation2 + $0xf8] sm:$0xff] %vm272_vm2, %v1538_v36  ;;  %v2672_v57 = vpop.f32.mrb[62].mxu1 }
 0x297   : > { %v2707_v24 = vadd.f32 %v2672_v57, %v2450_v29  ;;  %v2674_v58 = vpop.f32.mrb[63].mxu1 }
 0x299   : > { %2739 = vst.msk [vmem:[#allocation2 + $0x1f8] sm:$0xff] %vm272_vm2, %v2707_v24 }
 0x29d   : > { %v2775_v44 = vld [vmem:[#allocation2 + $0xf8] sm:$0xff] }
 0x29e   : > { %v3294_v40 = vpack.c.bf16 %v2775_v44, %v2774_v38 }
 0x2a0   : > { %3295 = vmatprep.subr.bf16.mxu0 %v3294_v40  ;;  %v2890_v9 = vld [vmem:[#allocation2 + $0x1f8] sm:$0xff] }
 0x2a1   : > { %v3326_v51 = vpack.c.bf16 %v2890_v9, %v2889_v14  ;;  %3297 = vmatpush3.bf16.msra.mxu0 %v3296_v16 }
 0x2a3   : > { %3327 = vmatprep.subr.bf16.mxu1 %v3326_v51 }
 0x2a4   : > { %3329 = vmatpush3.bf16.msra.mxu1 %v3328_v11  ;;  %2852 = vmatmul.mubr.f32.vlgmr.msra.gmra.mrb[64].mxu0 %v5837_v18 }
 0x2a7   : > { %2956 = vmatmul.mubr.f32.vlgmr.msra.gmra.mrb[64].mxu1 %v5837_v18 }
 0x377   : > { %v3132_v32 = vpop.f32.mrb[64].mxu0 }
 0x378   : > { %v3133_v47 = vpop.f32.mrb[65].mxu0 }
 0x379   : > { %v3134_v50 = vadd.f32 %v3133_v47, %v3132_v32 }
 0x37a   : > { %v3167_v6 = vpop.f32.mrb[64].mxu1 }
 0x37b   : > { %2858 = vst.msk [vmem:[%s256_s7] sm:$0x3] %vm2857_vm10, %v3134_v50  ;;  %v3168_v23 = vpop.f32.mrb[65].mxu1 }
 0x37c   : > { %v3169_v18 = vadd.f32 %v3168_v23, %v3167_v6 }
 0x37e   : > { %3090 = vst.msk [vmem:[%s256_s7 + $0x2] sm:$0x3] %vm2857_vm10, %v3169_v18 }
 0x37f   : > { %3436 = shalt.err (!%p3433_p2)
}
 0x380   : > { %s3437_s10 = scalar_lea.hbm %s5872_s14, 64  ;;  %s3441_s27 = scalar_lea.hbm %s5925_s5, 256 }
 0x381   : > { %p3438_p3 = scmp.ne.s32.totalorder %s5872_s14, %s3437_s10  ;;  %p3442_p7 = scmp.lt.u32.totalorder %s5872_s14, %s5925_s5 }
 0x382   : > { %p3443_p9 = scmp.lt.u32.totalorder %s3441_s27, %s3437_s10  ;;  %p3445_p11 = scmp.lt.u32.totalorder %s3437_s10, %s5872_s14 }
 0x383   : > { %p3439_p5 = pnand %p3438_p3, %p3583_p4 }
 0x384   : > { %p3444_p10 = por %p3443_p9, %p3442_p7 }
 0x385   : > { %p3440_p6 = pneg %p3439_p5 }
 0x386   : > { %p3446_p12 = por %p3445_p11, %p3444_p10 }
 0x388   : > { %p3447_p13 = pnand %p3446_p12, %p3440_p6 }
 0x38a   : > { %3450 = shalt.err (!%p3447_p13)
}
 0x38b   : > { %s3511_s9 = smov 32   ;;  %s3512_s11 = smov 2  }
 0x38c   : > { %3342 = dma.vmem_to_hbm [thread:$0]  (%p3583_p4), %s5867_s24, 64, %s5872_s14, %s5874_s15, %s3511_s9, %s3511_s9, %s3512_s11  }
 0x38d PF: > { %p3354_p0 = scmp.ge.s32.totalorder %s3505_s23, 2  ;;  %s2992_s13 = sand.u32 1, %s3485_s18  }
 0x38e   : > { %s2993_s16 = scalar_lea.sflag [#allocation4], %s2992_s13 }
 0x38f   : > { %p3349_p1 = pnand %p3354_p0, %p3590_p8 }
 0x391   : > { %3480 = dma.done.wait (!%p3349_p1), %s2993_s16, 64  }
 0x392   : > { %3482 = vsyncadd (!%p3349_p1), %s2993_s16, 4294967232  ;;  %s19_s23 = sadd.s32 1, %s3505_s23   ;;  %s5950_s18 = smov %s3489_s19 }
 0x393   : > { %p16_p2 = scmp.ge.s32.totalorder %s19_s23, 6   ;;  %s5951_s19 = smov %s3493_s20 }
 0x394   : > { %s5952_s20 = smov %s3596_s6  ;;  %s5953_s21 = smov %s3501_s22 }
 0x395   : > { %s5954_s22 = smov %s5956_s26  ;;  %18 = sbr.rel (!%p16_p2) target bundleno = 5 (0x5), region = 94 }
 0x39c   :  { %2998 = vsyncpa [#allocation4], 1 }
 0x39d   :  { %3000 = vsyncpa [#allocation4 + $0x1], 1 }
 0x39e   :  { %3001 = vsyncpa [#allocation5], 1 }
 0x39f   :  { %3003 = vsyncpa [#allocation5 + $0x1], 1 }

</bundles_post_ra>
